<compile_context>
chip_gen: v5e
topology: v5e:2x2
jax: 0.10.0
libtpu: 0.0.40
codegen_flags: <defaults>
</compile_context>

<pallas_src>
import functools

import jax
import jax.numpy as jnp
from jax.experimental import pallas as pl
from jax.experimental.pallas import tpu as pltpu


def _round_up(x, m):
    return (x + m - 1) // m * m


@functools.lru_cache(maxsize=1)
def _vmem_budget_bytes():
    """Usable VMEM for this generation (~25% headroom). 48 MiB fallback fits v7x."""
    cap = 64 * 1024 * 1024
    try:
        info = pltpu.get_tpu_info()
        cap = int(getattr(info, "vmem_capacity_bytes", cap))
    except Exception:
        pass
    return (cap * 3) // 4


def _vmem_tile_bytes(rows, cols, itemsize):
    """Layout-aware VMEM footprint of a (rows, cols) block ((8,128) f32 / (16,128) bf16 tiles)."""
    sublane = 8 * max(1, 4 // itemsize)
    return _round_up(rows, sublane) * _round_up(cols, 128) * itemsize


_TM_MAX = 2048  # [R2] raised M-tile cap


def _pick_tiles(M, K, N, out_bytes, budget):
    """Pick (tm, tk, tn) and return the estimated VMEM bytes for that plan."""
    if N % 256 == 0:
        tn = 256
    elif N % 128 == 0:
        tn = 128
    else:
        tn = N  # exact full extent -> no padding, always legal

    def cost(tm_, tk_):
        c = (2 * _vmem_tile_bytes(tm_, tk_, 2)            # double-buffered bf16 x
             + 2 * _vmem_tile_bytes(tk_, tn, 2)           # double-buffered bf16 w
             + 2 * _vmem_tile_bytes(1, tn, 4)             # bias row
             + 2 * _vmem_tile_bytes(tm_, tn, out_bytes))  # double-buffered output
        if tk_ != K:
            c += _vmem_tile_bytes(tm_, tn, 4)             # f32 accumulator scratch
        return c

    tm = min(_TM_MAX, _round_up(M, 8))
    tk = K

    # Prefer shrinking the M tile (down to 256 rows), then tiling K, then M again.
    while cost(tm, tk) > budget and tm > 256:
        tm = max(256, _round_up(tm // 2, 8))
    if cost(tm, tk) > budget and K % 128 == 0 and K > 128:
        for mult in range(K // 128, 0, -1):
            cand = 128 * mult
            if K % cand == 0 and cost(tm, cand) <= budget:
                tk = cand
                break
        else:
            tk = 128
    while cost(tm, tk) > budget and tm > 8:
        tm = max(8, _round_up(tm // 2, 8))

    # [R3]/[R8] keep at least two parallel grid blocks so both v7x cores get work.
    if pl.cdiv(M, tm) * (N // tn) < 2:
        if tn % 256 == 0:
            tn //= 2          # e.g. conv4: tn 256 -> 128 (also the v5e preference)
        elif M > 16:
            tm = max(8, _round_up(pl.cdiv(M, 2), 8))

    return tm, tk, tn, cost(tm, tk)


def _vmem_limit(est_bytes):
    # [R7] tight per-call limit with margin, never above the physical budget.
    return int(min(_vmem_budget_bytes(), max(est_bytes + (8 << 20), 16 << 20)))


# ---------------------------------------------------------------------------
# Fused matmul + bias + activation kernels (bf16 MXU inputs, f32 accumulation).
# ---------------------------------------------------------------------------
def _apply_act(acc, act, neg_slope):
    if act == "leaky_relu":
        return jnp.where(acc >= 0.0, acc, neg_slope * acc)
    if act == "sigmoid":
        return jax.nn.sigmoid(acc)
    return acc


def _mm_bias_act_kernel(x_ref, w_ref, b_ref, o_ref, *, act, neg_slope):
    # [R6] whole-K contraction in one block: no scratch, no K grid axis.
    acc = jnp.dot(x_ref[...], w_ref[...], preferred_element_type=jnp.float32)
    acc = acc + b_ref[...]
    o_ref[...] = _apply_act(acc, act, neg_slope).astype(o_ref.dtype)


def _mm_bias_act_acc_kernel(x_ref, w_ref, b_ref, o_ref, acc_ref, *, act, neg_slope):
    k = pl.program_id(2)

    @pl.when(k == 0)
    def _init():
        acc_ref[...] = jnp.broadcast_to(b_ref[...], acc_ref.shape)

    acc_ref[...] += jnp.dot(x_ref[...], w_ref[...],
                            preferred_element_type=jnp.float32)

    @pl.when(k == pl.num_programs(2) - 1)
    def _finalize():
        o_ref[...] = _apply_act(acc_ref[...], act, neg_slope).astype(o_ref.dtype)


def matmul_bias_act(x, w, b_row, act="none", neg_slope=0.2, out_dtype=jnp.float32):
    """y = act(x @ w + b) via a tiled Pallas TPU kernel (no runtime padding)."""
    M, K = x.shape
    K2, N = w.shape
    assert K == K2 and b_row.shape == (1, N), (x.shape, w.shape, b_row.shape)

    x = x.astype(jnp.bfloat16)
    w = w.astype(jnp.bfloat16)
    b_row = b_row.astype(jnp.float32)

    out_bytes = jnp.dtype(out_dtype).itemsize
    tm, tk, tn, est = _pick_tiles(M, K, N, out_bytes, _vmem_budget_bytes())
    nm, nn, nk = pl.cdiv(M, tm), N // tn, K // tk

    if nk == 1:
        kernel = functools.partial(_mm_bias_act_kernel, act=act, neg_slope=neg_slope)
        grid = (nm, nn)
        in_specs = [
            pl.BlockSpec((tm, tk), lambda i, j: (i, 0)),
            pl.BlockSpec((tk, tn), lambda i, j: (0, j)),
            pl.BlockSpec((1, tn), lambda i, j: (0, j)),
        ]
        out_specs = pl.BlockSpec((tm, tn), lambda i, j: (i, j))
        scratch = []
        dims = ("parallel", "parallel")
    else:
        kernel = functools.partial(_mm_bias_act_acc_kernel, act=act, neg_slope=neg_slope)
        grid = (nm, nn, nk)
        in_specs = [
            pl.BlockSpec((tm, tk), lambda i, j, k: (i, k)),
            pl.BlockSpec((tk, tn), lambda i, j, k: (k, j)),
            pl.BlockSpec((1, tn), lambda i, j, k: (0, j)),
        ]
        out_specs = pl.BlockSpec((tm, tn), lambda i, j, k: (i, j))
        scratch = [pltpu.VMEM((tm, tn), jnp.float32)]
        dims = ("parallel", "parallel", "arbitrary")

    return pl.pallas_call(
        kernel,
        out_shape=jax.ShapeDtypeStruct((M, N), out_dtype),
        grid_spec=pltpu.PrefetchScalarGridSpec(
            num_scalar_prefetch=0,
            grid=grid,
            in_specs=in_specs,
            out_specs=out_specs,
            scratch_shapes=scratch,
        ),
        compiler_params=pltpu.CompilerParams(
            dimension_semantics=dims,
            vmem_limit_bytes=_vmem_limit(est),
        ),
    )(x, w, b_row)


# ---------------------------------------------------------------------------
# [R1] Final FC (12544 -> 1) + sigmoid as a lane-dense VPU kernel.
# ---------------------------------------------------------------------------
def _fc_sigmoid_kernel(x_ref, w_ref, b_ref, o_ref):
    # x_ref: (bm, CH, 128) bf16; w_ref: (CH, 128) f32; b_ref: (1, 1) f32; o_ref: (bm, 1) f32
    prod = x_ref[...].astype(jnp.float32) * w_ref[...][None, :, :]
    s = jnp.sum(prod, axis=2, keepdims=True)   # lane reduce   -> (bm, CH, 1)
    s = jnp.sum(s, axis=1)                     # sublane reduce -> (bm, 1)
    o_ref[...] = jax.nn.sigmoid(s + b_ref[...])


def fc_sigmoid(flat, w_chunks, b_scalar):
    """sigmoid(flat @ w + b) for a single output unit, lane-dense, VPU-only."""
    B, K = flat.shape
    CH, L = w_chunks.shape
    assert CH * L == K and L == 128 and b_scalar.shape == (1, 1)

    x = flat.reshape(B, CH, L).astype(jnp.bfloat16)   # free row-major split
    bm = B if B <= 512 else 256
    grid = (pl.cdiv(B, bm),)

    est = (2 * bm * _vmem_tile_bytes(CH, L, 2)
           + 2 * _vmem_tile_bytes(CH, L, 4)
           + 2 * _vmem_tile_bytes(bm, 1, 4)
           + 2 * _vmem_tile_bytes(1, 1, 4))

    return pl.pallas_call(
        _fc_sigmoid_kernel,
        out_shape=jax.ShapeDtypeStruct((B, 1), jnp.float32),
        grid_spec=pltpu.PrefetchScalarGridSpec(
            num_scalar_prefetch=0,
            grid=grid,
            in_specs=[
                pl.BlockSpec((bm, CH, L), lambda i: (i, 0, 0)),
                pl.BlockSpec((CH, L), lambda i: (0, 0)),
                pl.BlockSpec((1, 1), lambda i: (0, 0)),
            ],
            out_specs=pl.BlockSpec((bm, 1), lambda i: (i, 0)),
        ),
        compiler_params=pltpu.CompilerParams(
            dimension_semantics=("parallel",),
            vmem_limit_bytes=_vmem_limit(est),
        ),
    )(x, w_chunks, b_scalar)


# ---------------------------------------------------------------------------
# Conv2d = im2col (XLA glue) + the fused Pallas matmul kernel.
# ---------------------------------------------------------------------------
def _im2col(x, k, stride, pad):
    # x: (N, H, W, C) NHWC -> (N*Ho*Wo, k*k*C); tap-major then channel order,
    # matching the (kH, kW, Cin, Cout) -> (kH*kW*Cin, Cout) weight reshape.
    n, h, w, c = x.shape
    xp = jnp.pad(x, ((0, 0), (pad, pad), (pad, pad), (0, 0)))
    ho = (h + 2 * pad - k) // stride + 1
    wo = (w + 2 * pad - k) // stride + 1
    cols = []
    for di in range(k):
        for dj in range(k):
            cols.append(xp[:, di:di + stride * ho:stride,
                           dj:dj + stride * wo:stride, :])
    cols = jnp.concatenate(cols, axis=-1)            # (N, Ho, Wo, k*k*C)
    return cols.reshape(n * ho * wo, k * k * c), ho, wo


def conv2d_leaky(x, w_mat, b_row, stride, pad, neg_slope=0.2):
    # TODO(synk): [R4] fuse the 9-tap im2col gather into the Pallas K loop to drop
    # the 9x-expanded HBM intermediate.
    n = x.shape[0]
    _, cout = w_mat.shape
    cols, ho, wo = _im2col(x, 3, stride, pad)
    y = matmul_bias_act(cols, w_mat, b_row, act="leaky_relu",
                        neg_slope=neg_slope, out_dtype=jnp.bfloat16)
    return y.reshape(n, ho, wo, cout)


# ---------------------------------------------------------------------------
# Parameters: generated in PyTorch layouts, converted ONCE to kernel-ready form.
# ---------------------------------------------------------------------------
def init_params(key):
    ks = jax.random.split(key, 6)

    def linear_pt(k, fan_in, fan_out):
        k1, k2 = jax.random.split(k)
        bound = float(fan_in) ** -0.5
        w = jax.random.uniform(k1, (fan_out, fan_in), jnp.float32, -bound, bound)
        b = jax.random.uniform(k2, (fan_out,), jnp.float32, -bound, bound)
        return w, b

    def conv_pt(k, cin, cout, ksz=3):
        k1, k2 = jax.random.split(k)
        bound = float(cin * ksz * ksz) ** -0.5
        w = jax.random.uniform(k1, (cout, cin, ksz, ksz), jnp.float32, -bound, bound)
        b = jax.random.uniform(k2, (cout,), jnp.float32, -bound, bound)
        return w, b

    p = {}

    # nn.Linear(10, 784)
    lw, lb = linear_pt(ks[0], 10, 28 * 28)
    p["label_w"] = jnp.transpose(lw, (1, 0)).astype(jnp.bfloat16)      # (10, 784)
    p["label_b"] = lb.reshape(1, -1).astype(jnp.float32)               # (1, 784)

    # Conv2d weights: OIHW -> HWIO -> (kH*kW*Cin, Cout) im2col matrix, bf16.
    def conv_pack(w_oihw, b):
        w_hwio = jnp.transpose(w_oihw, (2, 3, 1, 0))
        kh, kw, ci, co = w_hwio.shape
        return (w_hwio.reshape(kh * kw * ci, co).astype(jnp.bfloat16),
                b.reshape(1, -1).astype(jnp.float32))

    for i, (cin, cout) in enumerate([(2, 32), (32, 64), (64, 128), (128, 256)], 1):
        w, b = conv_pt(ks[i], cin, cout)
        p[f"c{i}_w"], p[f"c{i}_b"] = conv_pack(w, b)

    # nn.Linear(12544, 1): fold the NCHW flatten into the weights by reordering
    # rows from (c, h, w) to (h, w, c); [R1] store lane-dense as (98, 128) f32.
    fw, fb = linear_pt(ks[5], 256 * 7 * 7, 1)                          # fw: (1, 12544)
    fw = jnp.transpose(fw, (1, 0))                                     # (12544, 1), (c,h,w) row order
    fw = jnp.transpose(fw.reshape(256, 7, 7, 1), (1, 2, 0, 3)).reshape(256 * 7 * 7)
    p["fc_w"] = fw.reshape(98, 128).astype(jnp.float32)                # (98, 128)
    p["fc_b"] = fb.reshape(1, 1).astype(jnp.float32)                   # (1, 1)
    return p


# ---------------------------------------------------------------------------
# Forward pass (mirrors discriminator.forward).
# ---------------------------------------------------------------------------
def discriminator_forward(params, image, labels):
    n = labels.shape[0]
    # image.view(-1, 1, 28, 28); activations carried as NHWC bf16.
    img_nhwc = jnp.transpose(image.reshape(n, 1, 28, 28), (0, 2, 3, 1)).astype(jnp.bfloat16)

    # TODO(synk): [R9] fuse label-linear + concat into the conv1 pipeline.
    lab = matmul_bias_act(labels, params["label_w"], params["label_b"],
                          act="none", out_dtype=jnp.bfloat16)          # (N, 784)
    lab_nhwc = lab.reshape(n, 28, 28, 1)                               # label view(-1,1,28,28)

    x = jnp.concatenate([img_nhwc, lab_nhwc], axis=-1)                 # cat on channels -> (N,28,28,2)

    x = conv2d_leaky(x, params["c1_w"], params["c1_b"], stride=2, pad=1)   # (N,14,14,32)
    x = conv2d_leaky(x, params["c2_w"], params["c2_b"], stride=1, pad=1)   # (N,14,14,64)
    x = conv2d_leaky(x, params["c3_w"], params["c3_b"], stride=1, pad=1)   # (N,14,14,128)
    x = conv2d_leaky(x, params["c4_w"], params["c4_b"], stride=2, pad=1)   # (N,7,7,256)

    # NHWC flatten; the NCHW permutation lives in the pre-permuted fc weights.
    flat = x.reshape(n, -1)                                                # (N, 12544)
    return fc_sigmoid(flat, params["fc_w"], params["fc_b"])                # (N, 1)


if __name__ == "__main__":
    key = jax.random.PRNGKey(0)
    pkey, ikey, lkey = jax.random.split(key, 3)

    params = init_params(pkey)
    image = jax.random.normal(ikey, (2, 1, 28, 28), jnp.float32)
    labels = jax.nn.one_hot(
        jax.random.randint(lkey, (2,), 0, 10), 10
    ).astype(jnp.float32)

    fwd = jax.jit(discriminator_forward)
    out = fwd(params, image, labels)
    out = jax.block_until_ready(out)

    assert out.shape == (2, 1), out.shape
    assert bool(jnp.all((out >= 0.0) & (out <= 1.0)))
    print("KERNEL_OK")
</pallas_src>

<mosaic_0001>
module attributes {stable_mosaic.version = 11 : i64} {
  func.func @_mm_bias_act_kernel(%arg0: i32, %arg1: i32, %arg2: memref<8x10xbf16, #tpu.memory_space<vmem>>, %arg3: memref<10x784xbf16, #tpu.memory_space<vmem>>, %arg4: memref<1x784xf32, #tpu.memory_space<vmem>>, %arg5: memref<8x784xbf16, #tpu.memory_space<vmem>>) attributes {dimension_semantics = [#tpu.dimension_semantics<parallel>, #tpu.dimension_semantics<parallel>], iteration_bounds = array<i64: 1, 1>, scalar_prefetch = 0 : i64, scratch_operands = 0 : i64, tpu.core_type = #tpu.core_type<tc>, window_params = [{transform_indices = @transform_0, window_bounds = array<i64: 8, 10>}, {transform_indices = @transform_1, window_bounds = array<i64: 10, 784>}, {transform_indices = @transform_2, window_bounds = array<i64: 1, 784>}, {transform_indices = @transform_3, window_bounds = array<i64: 8, 784>}]} {
    %c0 = arith.constant 0 : index
    %c0_0 = arith.constant 0 : index
    %0 = vector.load %arg2[%c0, %c0_0] : memref<8x10xbf16, #tpu.memory_space<vmem>>, vector<8x10xbf16>
    %c0_1 = arith.constant 0 : index
    %c0_2 = arith.constant 0 : index
    %1 = vector.load %arg3[%c0_1, %c0_2] : memref<10x784xbf16, #tpu.memory_space<vmem>>, vector<10x784xbf16>
    %cst = arith.constant dense<0.000000e+00> : vector<8x784xf32>
    %2 = tpu.matmul %0, %1, %cst {dimension_numbers = #tpu.dot_dimension_numbers<[1], [0], [0], [1], [0, 0, 1, 1], [], []>} : vector<8x10xbf16>, vector<10x784xbf16>, vector<8x784xf32> -> vector<8x784xf32>
    %c0_3 = arith.constant 0 : index
    %c0_4 = arith.constant 0 : index
    %3 = vector.load %arg4[%c0_3, %c0_4] : memref<1x784xf32, #tpu.memory_space<vmem>>, vector<1x784xf32>
    %4 = vector.broadcast %3 : vector<1x784xf32> to vector<8x784xf32>
    %5 = arith.addf %2, %4 : vector<8x784xf32>
    %6 = arith.truncf %5 : vector<8x784xf32> to vector<8x784xbf16>
    %c0_5 = arith.constant 0 : index
    %c0_6 = arith.constant 0 : index
    %7 = vector.load %arg5[%c0_5, %c0_6] : memref<8x784xbf16, #tpu.memory_space<vmem>>, vector<8x784xbf16>
    tpu.vector_store %arg5[%c0_5, %c0_6], %6 {strides = array<i32>} : memref<8x784xbf16, #tpu.memory_space<vmem>>, vector<8x784xbf16>,
    return
  }
  func.func @transform_0(%arg0: i32, %arg1: i32) -> (i32, i32) {
    %c0_i32 = arith.constant 0 : i32
    %c0_i32_0 = arith.constant 0 : i32
    return %arg0, %c0_i32 : i32, i32
  }
  func.func @transform_1(%arg0: i32, %arg1: i32) -> (i32, i32) {
    %c0_i32 = arith.constant 0 : i32
    %c0_i32_0 = arith.constant 0 : i32
    return %c0_i32, %arg1 : i32, i32
  }
  func.func @transform_2(%arg0: i32, %arg1: i32) -> (i32, i32) {
    %c0_i32 = arith.constant 0 : i32
    %c0_i32_0 = arith.constant 0 : i32
    return %c0_i32, %arg1 : i32, i32
  }
  func.func @transform_3(%arg0: i32, %arg1: i32) -> (i32, i32) {
    %c0_i32 = arith.constant 0 : i32
    return %arg0, %arg1 : i32, i32
  }
}

module attributes {stable_mosaic.version = 11 : i64} {
  func.func @_mm_bias_act_kernel(%arg0: i32, %arg1: i32, %arg2: memref<200x18xbf16, #tpu.memory_space<vmem>>, %arg3: memref<18x32xbf16, #tpu.memory_space<vmem>>, %arg4: memref<1x32xf32, #tpu.memory_space<vmem>>, %arg5: memref<200x32xbf16, #tpu.memory_space<vmem>>) attributes {dimension_semantics = [#tpu.dimension_semantics<parallel>, #tpu.dimension_semantics<parallel>], iteration_bounds = array<i64: 2, 1>, scalar_prefetch = 0 : i64, scratch_operands = 0 : i64, tpu.core_type = #tpu.core_type<tc>, window_params = [{transform_indices = @transform_0, window_bounds = array<i64: 200, 18>}, {transform_indices = @transform_1, window_bounds = array<i64: 18, 32>}, {transform_indices = @transform_2, window_bounds = array<i64: 1, 32>}, {transform_indices = @transform_3, window_bounds = array<i64: 200, 32>}]} {
    %c0 = arith.constant 0 : index
    %c0_0 = arith.constant 0 : index
    %0 = vector.load %arg2[%c0, %c0_0] : memref<200x18xbf16, #tpu.memory_space<vmem>>, vector<200x18xbf16>
    %c0_1 = arith.constant 0 : index
    %c0_2 = arith.constant 0 : index
    %1 = vector.load %arg3[%c0_1, %c0_2] : memref<18x32xbf16, #tpu.memory_space<vmem>>, vector<18x32xbf16>
    %cst = arith.constant dense<0.000000e+00> : vector<200x32xf32>
    %2 = tpu.matmul %0, %1, %cst {dimension_numbers = #tpu.dot_dimension_numbers<[1], [0], [0], [1], [0, 0, 1, 1], [], []>} : vector<200x18xbf16>, vector<18x32xbf16>, vector<200x32xf32> -> vector<200x32xf32>
    %c0_3 = arith.constant 0 : index
    %c0_4 = arith.constant 0 : index
    %3 = vector.load %arg4[%c0_3, %c0_4] : memref<1x32xf32, #tpu.memory_space<vmem>>, vector<1x32xf32>
    %4 = vector.broadcast %3 : vector<1x32xf32> to vector<200x32xf32>
    %5 = arith.addf %2, %4 : vector<200x32xf32>
    %cst_5 = arith.constant 0.000000e+00 : f32
    %6 = vector.broadcast %cst_5 : f32 to vector<200x32xf32>
    %7 = arith.cmpf oge, %5, %6 : vector<200x32xf32>
    %cst_6 = arith.constant 2.000000e-01 : f32
    %8 = vector.broadcast %cst_6 : f32 to vector<200x32xf32>
    %9 = arith.mulf %8, %5 : vector<200x32xf32>
    %10 = arith.select %7, %5, %9 : vector<200x32xi1>, vector<200x32xf32>
    %11 = arith.truncf %10 : vector<200x32xf32> to vector<200x32xbf16>
    %c0_7 = arith.constant 0 : index
    %c0_8 = arith.constant 0 : index
    %12 = vector.load %arg5[%c0_7, %c0_8] : memref<200x32xbf16, #tpu.memory_space<vmem>>, vector<200x32xbf16>
    tpu.vector_store %arg5[%c0_7, %c0_8], %11 {strides = array<i32>} : memref<200x32xbf16, #tpu.memory_space<vmem>>, vector<200x32xbf16>,
    return
  }
  func.func @transform_0(%arg0: i32, %arg1: i32) -> (i32, i32) {
    %c0_i32 = arith.constant 0 : i32
    %c0_i32_0 = arith.constant 0 : i32
    return %arg0, %c0_i32 : i32, i32
  }
  func.func @transform_1(%arg0: i32, %arg1: i32) -> (i32, i32) {
    %c0_i32 = arith.constant 0 : i32
    %c0_i32_0 = arith.constant 0 : i32
    return %c0_i32, %arg1 : i32, i32
  }
  func.func @transform_2(%arg0: i32, %arg1: i32) -> (i32, i32) {
    %c0_i32 = arith.constant 0 : i32
    %c0_i32_0 = arith.constant 0 : i32
    return %c0_i32, %arg1 : i32, i32
  }
  func.func @transform_3(%arg0: i32, %arg1: i32) -> (i32, i32) {
    %c0_i32 = arith.constant 0 : i32
    return %arg0, %arg1 : i32, i32
  }
}

module attributes {stable_mosaic.version = 11 : i64} {
  func.func @_mm_bias_act_kernel(%arg0: i32, %arg1: i32, %arg2: memref<200x288xbf16, #tpu.memory_space<vmem>>, %arg3: memref<288x64xbf16, #tpu.memory_space<vmem>>, %arg4: memref<1x64xf32, #tpu.memory_space<vmem>>, %arg5: memref<200x64xbf16, #tpu.memory_space<vmem>>) attributes {dimension_semantics = [#tpu.dimension_semantics<parallel>, #tpu.dimension_semantics<parallel>], iteration_bounds = array<i64: 2, 1>, scalar_prefetch = 0 : i64, scratch_operands = 0 : i64, tpu.core_type = #tpu.core_type<tc>, window_params = [{transform_indices = @transform_0, window_bounds = array<i64: 200, 288>}, {transform_indices = @transform_1, window_bounds = array<i64: 288, 64>}, {transform_indices = @transform_2, window_bounds = array<i64: 1, 64>}, {transform_indices = @transform_3, window_bounds = array<i64: 200, 64>}]} {
    %c0 = arith.constant 0 : index
    %c0_0 = arith.constant 0 : index
    %0 = vector.load %arg2[%c0, %c0_0] : memref<200x288xbf16, #tpu.memory_space<vmem>>, vector<200x288xbf16>
    %c0_1 = arith.constant 0 : index
    %c0_2 = arith.constant 0 : index
    %1 = vector.load %arg3[%c0_1, %c0_2] : memref<288x64xbf16, #tpu.memory_space<vmem>>, vector<288x64xbf16>
    %cst = arith.constant dense<0.000000e+00> : vector<200x64xf32>
    %2 = tpu.matmul %0, %1, %cst {dimension_numbers = #tpu.dot_dimension_numbers<[1], [0], [0], [1], [0, 0, 1, 1], [], []>} : vector<200x288xbf16>, vector<288x64xbf16>, vector<200x64xf32> -> vector<200x64xf32>
    %c0_3 = arith.constant 0 : index
    %c0_4 = arith.constant 0 : index
    %3 = vector.load %arg4[%c0_3, %c0_4] : memref<1x64xf32, #tpu.memory_space<vmem>>, vector<1x64xf32>
    %4 = vector.broadcast %3 : vector<1x64xf32> to vector<200x64xf32>
    %5 = arith.addf %2, %4 : vector<200x64xf32>
    %cst_5 = arith.constant 0.000000e+00 : f32
    %6 = vector.broadcast %cst_5 : f32 to vector<200x64xf32>
    %7 = arith.cmpf oge, %5, %6 : vector<200x64xf32>
    %cst_6 = arith.constant 2.000000e-01 : f32
    %8 = vector.broadcast %cst_6 : f32 to vector<200x64xf32>
    %9 = arith.mulf %8, %5 : vector<200x64xf32>
    %10 = arith.select %7, %5, %9 : vector<200x64xi1>, vector<200x64xf32>
    %11 = arith.truncf %10 : vector<200x64xf32> to vector<200x64xbf16>
    %c0_7 = arith.constant 0 : index
    %c0_8 = arith.constant 0 : index
    %12 = vector.load %arg5[%c0_7, %c0_8] : memref<200x64xbf16, #tpu.memory_space<vmem>>, vector<200x64xbf16>
    tpu.vector_store %arg5[%c0_7, %c0_8], %11 {strides = array<i32>} : memref<200x64xbf16, #tpu.memory_space<vmem>>, vector<200x64xbf16>,
    return
  }
  func.func @transform_0(%arg0: i32, %arg1: i32) -> (i32, i32) {
    %c0_i32 = arith.constant 0 : i32
    %c0_i32_0 = arith.constant 0 : i32
    return %arg0, %c0_i32 : i32, i32
  }
  func.func @transform_1(%arg0: i32, %arg1: i32) -> (i32, i32) {
    %c0_i32 = arith.constant 0 : i32
    %c0_i32_0 = arith.constant 0 : i32
    return %c0_i32, %arg1 : i32, i32
  }
  func.func @transform_2(%arg0: i32, %arg1: i32) -> (i32, i32) {
    %c0_i32 = arith.constant 0 : i32
    %c0_i32_0 = arith.constant 0 : i32
    return %c0_i32, %arg1 : i32, i32
  }
  func.func @transform_3(%arg0: i32, %arg1: i32) -> (i32, i32) {
    %c0_i32 = arith.constant 0 : i32
    return %arg0, %arg1 : i32, i32
  }
}

module attributes {stable_mosaic.version = 11 : i64} {
  func.func @_mm_bias_act_kernel(%arg0: i32, %arg1: i32, %arg2: memref<200x576xbf16, #tpu.memory_space<vmem>>, %arg3: memref<576x128xbf16, #tpu.memory_space<vmem>>, %arg4: memref<1x128xf32, #tpu.memory_space<vmem>>, %arg5: memref<200x128xbf16, #tpu.memory_space<vmem>>) attributes {dimension_semantics = [#tpu.dimension_semantics<parallel>, #tpu.dimension_semantics<parallel>], iteration_bounds = array<i64: 2, 1>, scalar_prefetch = 0 : i64, scratch_operands = 0 : i64, tpu.core_type = #tpu.core_type<tc>, window_params = [{transform_indices = @transform_0, window_bounds = array<i64: 200, 576>}, {transform_indices = @transform_1, window_bounds = array<i64: 576, 128>}, {transform_indices = @transform_2, window_bounds = array<i64: 1, 128>}, {transform_indices = @transform_3, window_bounds = array<i64: 200, 128>}]} {
    %c0 = arith.constant 0 : index
    %c0_0 = arith.constant 0 : index
    %0 = vector.load %arg2[%c0, %c0_0] : memref<200x576xbf16, #tpu.memory_space<vmem>>, vector<200x576xbf16>
    %c0_1 = arith.constant 0 : index
    %c0_2 = arith.constant 0 : index
    %1 = vector.load %arg3[%c0_1, %c0_2] : memref<576x128xbf16, #tpu.memory_space<vmem>>, vector<576x128xbf16>
    %cst = arith.constant dense<0.000000e+00> : vector<200x128xf32>
    %2 = tpu.matmul %0, %1, %cst {dimension_numbers = #tpu.dot_dimension_numbers<[1], [0], [0], [1], [0, 0, 1, 1], [], []>} : vector<200x576xbf16>, vector<576x128xbf16>, vector<200x128xf32> -> vector<200x128xf32>
    %c0_3 = arith.constant 0 : index
    %c0_4 = arith.constant 0 : index
    %3 = vector.load %arg4[%c0_3, %c0_4] : memref<1x128xf32, #tpu.memory_space<vmem>>, vector<1x128xf32>
    %4 = vector.broadcast %3 : vector<1x128xf32> to vector<200x128xf32>
    %5 = arith.addf %2, %4 : vector<200x128xf32>
    %cst_5 = arith.constant 0.000000e+00 : f32
    %6 = vector.broadcast %cst_5 : f32 to vector<200x128xf32>
    %7 = arith.cmpf oge, %5, %6 : vector<200x128xf32>
    %cst_6 = arith.constant 2.000000e-01 : f32
    %8 = vector.broadcast %cst_6 : f32 to vector<200x128xf32>
    %9 = arith.mulf %8, %5 : vector<200x128xf32>
    %10 = arith.select %7, %5, %9 : vector<200x128xi1>, vector<200x128xf32>
    %11 = arith.truncf %10 : vector<200x128xf32> to vector<200x128xbf16>
    %c0_7 = arith.constant 0 : index
    %c0_8 = arith.constant 0 : index
    %12 = vector.load %arg5[%c0_7, %c0_8] : memref<200x128xbf16, #tpu.memory_space<vmem>>, vector<200x128xbf16>
    tpu.vector_store %arg5[%c0_7, %c0_8], %11 {strides = array<i32>} : memref<200x128xbf16, #tpu.memory_space<vmem>>, vector<200x128xbf16>,
    return
  }
  func.func @transform_0(%arg0: i32, %arg1: i32) -> (i32, i32) {
    %c0_i32 = arith.constant 0 : i32
    %c0_i32_0 = arith.constant 0 : i32
    return %arg0, %c0_i32 : i32, i32
  }
  func.func @transform_1(%arg0: i32, %arg1: i32) -> (i32, i32) {
    %c0_i32 = arith.constant 0 : i32
    %c0_i32_0 = arith.constant 0 : i32
    return %c0_i32, %arg1 : i32, i32
  }
  func.func @transform_2(%arg0: i32, %arg1: i32) -> (i32, i32) {
    %c0_i32 = arith.constant 0 : i32
    %c0_i32_0 = arith.constant 0 : i32
    return %c0_i32, %arg1 : i32, i32
  }
  func.func @transform_3(%arg0: i32, %arg1: i32) -> (i32, i32) {
    %c0_i32 = arith.constant 0 : i32
    return %arg0, %arg1 : i32, i32
  }
}

module attributes {stable_mosaic.version = 11 : i64} {
  func.func @_fc_sigmoid_kernel(%arg0: i32, %arg1: memref<2x98x128xbf16, #tpu.memory_space<vmem>>, %arg2: memref<98x128xf32, #tpu.memory_space<vmem>>, %arg3: memref<1x1xf32, #tpu.memory_space<vmem>>, %arg4: memref<2x1xf32, #tpu.memory_space<vmem>>) attributes {dimension_semantics = [#tpu.dimension_semantics<parallel>], iteration_bounds = array<i64: 1>, scalar_prefetch = 0 : i64, scratch_operands = 0 : i64, tpu.core_type = #tpu.core_type<tc>, window_params = [{transform_indices = @transform_0, window_bounds = array<i64: 2, 98, 128>}, {pipeline_mode = #tpu.pipeline_mode<synchronous>, transform_indices = @transform_1, window_bounds = array<i64: 98, 128>}, {pipeline_mode = #tpu.pipeline_mode<synchronous>, transform_indices = @transform_2, window_bounds = array<i64: 1, 1>}, {transform_indices = @transform_3, window_bounds = array<i64: 2, 1>}]} {
    %c0 = arith.constant 0 : index
    %c0_0 = arith.constant 0 : index
    %c0_1 = arith.constant 0 : index
    %0 = vector.load %arg1[%c0, %c0_0, %c0_1] : memref<2x98x128xbf16, #tpu.memory_space<vmem>>, vector<2x98x128xbf16>
    %1 = arith.extf %0 : vector<2x98x128xbf16> to vector<2x98x128xf32>
    %c0_2 = arith.constant 0 : index
    %c0_3 = arith.constant 0 : index
    %2 = vector.load %arg2[%c0_2, %c0_3] : memref<98x128xf32, #tpu.memory_space<vmem>>, vector<98x128xf32>
    %3 = vector.shape_cast %2 : vector<98x128xf32> to vector<1x98x128xf32>
    %4 = vector.broadcast %3 : vector<1x98x128xf32> to vector<2x98x128xf32>
    %5 = arith.mulf %1, %4 : vector<2x98x128xf32>
    %cst = arith.constant dense<0.000000e+00> : vector<2x98xf32>
    %6 = vector.multi_reduction <add>, %5, %cst [2] : vector<2x98x128xf32> to vector<2x98xf32>
    %7 = vector.shape_cast %6 : vector<2x98xf32> to vector<2x98x1xf32>
    %cst_4 = arith.constant dense<0.000000e+00> : vector<2x1xf32>
    %8 = vector.multi_reduction <add>, %7, %cst_4 [1] : vector<2x98x1xf32> to vector<2x1xf32>
    %c0_5 = arith.constant 0 : index
    %c0_6 = arith.constant 0 : index
    %9 = vector.load %arg3[%c0_5, %c0_6] : memref<1x1xf32, #tpu.memory_space<vmem>>, vector<1x1xf32>
    %10 = vector.broadcast %9 : vector<1x1xf32> to vector<2x1xf32>
    %11 = arith.addf %8, %10 : vector<2x1xf32>
    %12 = arith.negf %11 : vector<2x1xf32>
    %13 = math.exp %12 : vector<2x1xf32>
    %cst_7 = arith.constant 1.000000e+00 : f32
    %14 = vector.broadcast %cst_7 : f32 to vector<2x1xf32>
    %15 = arith.addf %14, %13 : vector<2x1xf32>
    %16 = arith.divf %14, %15 : vector<2x1xf32>
    %c0_8 = arith.constant 0 : index
    %c0_9 = arith.constant 0 : index
    %17 = vector.load %arg4[%c0_8, %c0_9] : memref<2x1xf32, #tpu.memory_space<vmem>>, vector<2x1xf32>
    tpu.vector_store %arg4[%c0_8, %c0_9], %16 {strides = array<i32>} : memref<2x1xf32, #tpu.memory_space<vmem>>, vector<2x1xf32>,
    return
  }
  func.func @transform_0(%arg0: i32) -> (i32, i32, i32) {
    %c0_i32 = arith.constant 0 : i32
    %c0_i32_0 = arith.constant 0 : i32
    %c0_i32_1 = arith.constant 0 : i32
    return %arg0, %c0_i32, %c0_i32_0 : i32, i32, i32
  }
  func.func @transform_1(%arg0: i32) -> (i32, i32) {
    %c0_i32 = arith.constant 0 : i32
    %c0_i32_0 = arith.constant 0 : i32
    %c0_i32_1 = arith.constant 0 : i32
    return %c0_i32, %c0_i32_0 : i32, i32
  }
  func.func @transform_2(%arg0: i32) -> (i32, i32) {
    %c0_i32 = arith.constant 0 : i32
    %c0_i32_0 = arith.constant 0 : i32
    %c0_i32_1 = arith.constant 0 : i32
    return %c0_i32, %c0_i32_0 : i32, i32
  }
  func.func @transform_3(%arg0: i32) -> (i32, i32) {
    %c0_i32 = arith.constant 0 : i32
    %c0_i32_0 = arith.constant 0 : i32
    return %arg0, %c0_i32 : i32, i32
  }
}

module attributes {stable_mosaic.version = 11 : i64} {
  func.func @_mm_bias_act_kernel(%arg0: i32, %arg1: i32, %arg2: memref<104x1152xbf16, #tpu.memory_space<vmem>>, %arg3: memref<1152x128xbf16, #tpu.memory_space<vmem>>, %arg4: memref<1x128xf32, #tpu.memory_space<vmem>>, %arg5: memref<104x128xbf16, #tpu.memory_space<vmem>>) attributes {dimension_semantics = [#tpu.dimension_semantics<parallel>, #tpu.dimension_semantics<parallel>], iteration_bounds = array<i64: 1, 2>, scalar_prefetch = 0 : i64, scratch_operands = 0 : i64, tpu.core_type = #tpu.core_type<tc>, window_params = [{transform_indices = @transform_0, window_bounds = array<i64: 104, 1152>}, {transform_indices = @transform_1, window_bounds = array<i64: 1152, 128>}, {transform_indices = @transform_2, window_bounds = array<i64: 1, 128>}, {transform_indices = @transform_3, window_bounds = array<i64: 104, 128>}]} {
    %c0 = arith.constant 0 : index
    %c0_0 = arith.constant 0 : index
    %0 = vector.load %arg2[%c0, %c0_0] : memref<104x1152xbf16, #tpu.memory_space<vmem>>, vector<104x1152xbf16>
    %c0_1 = arith.constant 0 : index
    %c0_2 = arith.constant 0 : index
    %1 = vector.load %arg3[%c0_1, %c0_2] : memref<1152x128xbf16, #tpu.memory_space<vmem>>, vector<1152x128xbf16>
    %cst = arith.constant dense<0.000000e+00> : vector<104x128xf32>
    %2 = tpu.matmul %0, %1, %cst {dimension_numbers = #tpu.dot_dimension_numbers<[1], [0], [0], [1], [0, 0, 1, 1], [], []>} : vector<104x1152xbf16>, vector<1152x128xbf16>, vector<104x128xf32> -> vector<104x128xf32>
    %c0_3 = arith.constant 0 : index
    %c0_4 = arith.constant 0 : index
    %3 = vector.load %arg4[%c0_3, %c0_4] : memref<1x128xf32, #tpu.memory_space<vmem>>, vector<1x128xf32>
    %4 = vector.broadcast %3 : vector<1x128xf32> to vector<104x128xf32>
    %5 = arith.addf %2, %4 : vector<104x128xf32>
    %cst_5 = arith.constant 0.000000e+00 : f32
    %6 = vector.broadcast %cst_5 : f32 to vector<104x128xf32>
    %7 = arith.cmpf oge, %5, %6 : vector<104x128xf32>
    %cst_6 = arith.constant 2.000000e-01 : f32
    %8 = vector.broadcast %cst_6 : f32 to vector<104x128xf32>
    %9 = arith.mulf %8, %5 : vector<104x128xf32>
    %10 = arith.select %7, %5, %9 : vector<104x128xi1>, vector<104x128xf32>
    %11 = arith.truncf %10 : vector<104x128xf32> to vector<104x128xbf16>
    %c0_7 = arith.constant 0 : index
    %c0_8 = arith.constant 0 : index
    %12 = vector.load %arg5[%c0_7, %c0_8] : memref<104x128xbf16, #tpu.memory_space<vmem>>, vector<104x128xbf16>
    tpu.vector_store %arg5[%c0_7, %c0_8], %11 {strides = array<i32>} : memref<104x128xbf16, #tpu.memory_space<vmem>>, vector<104x128xbf16>,
    return
  }
  func.func @transform_0(%arg0: i32, %arg1: i32) -> (i32, i32) {
    %c0_i32 = arith.constant 0 : i32
    %c0_i32_0 = arith.constant 0 : i32
    return %arg0, %c0_i32 : i32, i32
  }
  func.func @transform_1(%arg0: i32, %arg1: i32) -> (i32, i32) {
    %c0_i32 = arith.constant 0 : i32
    %c0_i32_0 = arith.constant 0 : i32
    return %c0_i32, %arg1 : i32, i32
  }
  func.func @transform_2(%arg0: i32, %arg1: i32) -> (i32, i32) {
    %c0_i32 = arith.constant 0 : i32
    %c0_i32_0 = arith.constant 0 : i32
    return %c0_i32, %arg1 : i32, i32
  }
  func.func @transform_3(%arg0: i32, %arg1: i32) -> (i32, i32) {
    %c0_i32 = arith.constant 0 : i32
    return %arg0, %arg1 : i32, i32
  }
}

</mosaic_0001>

<bundles_post_ra>
// kernel: discriminator_forward.6
= control target key start
LH: loop header
LB: loop body
LE: loop exit
PB: predicated region body
PF: predicated region fallthrough
CT: control target
= control target key end

     0   :  { %vm87_vm0 = vcmask 1044480   ;;  %vm84_vm1 = vcmask 80896   ;;  %vm215_vm2 = vcmask 1040384   ;;  %vm237_vm3 = vcmask 1041409   ;;  %s473_s0 = inlined_call_operand.vmem [shape: bf16[2,10], index: 0, kind: input, shape index: {}]   ;;  %s474_s1 = inlined_call_operand.vmem [shape: bf16[10,784], index: 1, kind: input, shape index: {}]   ;;  %s475_s2 = inlined_call_operand.vmem [shape: f32[1,784], index: 2, kind: input, shape index: {}]   ;;  %s476_s3 = inlined_call_operand.vmem [shape: bf16[2,784], index: 3, kind: output, shape index: {}]  }
   0x1   :  { %v335_v0 = vld [vmem:[%s474_s1] sm:$0xf]  ;;  %v371_v1 = vld [vmem:[%s474_s1 + $0x18] sm:$0x10]  ;;  %v368_v3 = vld [vmem:[%s474_s1 + $0x4] sm:$0xf] }
   0x2   :  { %v336_v2 = vor.u32 %v371_v1, %v335_v0  ;;  %v337_v4 = vld [vmem:[%s474_s1 + $0x1c] sm:$0x10]  ;;  %v343_v5 = vld [vmem:[%s474_s1 + $0x8] sm:$0xf]  ;;  %v372_v7 = vld [vmem:[%s474_s1 + $0x20] sm:$0x10] }
   0x3   :  { %v340_v6 = vor.u32 %v368_v3, %v337_v4  ;;  %v369_v8 = vld [vmem:[%s474_s1 + $0xc] sm:$0xf]  ;;  %v345_v9 = vld [vmem:[%s474_s1 + $0x24] sm:$0x10]  ;;  %v344_v11 = vor.u32 %v372_v7, %v343_v5  ;;  %v15_v13 = vld [vmem:[%s473_s0] sm:$0x1] }
   0x4   :  { %v89_v10 = vsel %vm87_vm0, %v336_v2, 0  ;;  %v348_v12 = vor.u32 %v369_v8, %v345_v9  ;;  %v16_v14 = vld [vmem:[%s473_s0 + $0x1] sm:$0x1]  ;;  %v17_v16 = vld [vmem:[%s473_s0 + $0x2] sm:$0x1]  ;;  %vm281_vm4 = vmor %vm237_vm3, %vm215_vm2  ;;  %vm219_vm5 = vcmask 1042434  }
   0x5   :  { %116 = vmatpush.bf16.msra.mxu0 %v89_v10  ;;  %v92_v15 = vsel %vm87_vm0, %v340_v6, 0  ;;  %v18_v17 = vld [vmem:[%s473_s0 + $0x3] sm:$0x1]  ;;  %v95_v18 = vsel %vm87_vm0, %v344_v11, 0  ;;  %44 = vst [vmem:[#allocation1] ss:$9 sm:$0xff] %v15_v13  ;;  %vm282_vm7 = vmor %vm219_vm5, %vm281_vm4 }
   0x6   :  { %129 = vmatpush.bf16.msra.mxu1 %v92_v15  ;;  %v98_v19 = vsel %vm87_vm0, %v348_v12, 0  ;;  %v359_v20 = vld [vmem:[%s474_s1 + $0x18] sm:$0xf]  ;;  %142 = vmatpush.bf16.msra.mxu2 %v95_v18  ;;  %47 = vst [vmem:[#allocation1 + $0x1] ss:$9 sm:$0xff] %v16_v14  ;;  %vm239_vm6 = vcmask 1043459  }
   0x7   :  { %155 = vmatpush.bf16.msra.mxu3 %v98_v19  ;;  %v374_v21 = vld [vmem:[%s474_s1 + $0x30] sm:$0x10]  ;;  %v351_v22 = vld [vmem:[%s474_s1 + $0x10] sm:$0xf]  ;;  %50 = vst [vmem:[#allocation1 + $0x2] ss:$9 sm:$0xff] %v17_v16  ;;  %vm283_vm12 = vmor %vm239_vm6, %vm282_vm7 }
   0x8   :  { %v360_v23 = vor.u32 %v374_v21, %v359_v20  ;;  %v373_v24 = vld [vmem:[%s474_s1 + $0x28] sm:$0x10]  ;;  %v370_v25 = vld [vmem:[%s474_s1 + $0x14] sm:$0xf]  ;;  %53 = vst [vmem:[#allocation1 + $0x3] ss:$9 sm:$0xff] %v18_v17 }
   0x9   :  { %v352_v26 = vor.u32 %v373_v24, %v351_v22  ;;  %v353_v27 = vld [vmem:[%s474_s1 + $0x2c] sm:$0x10]  ;;  %v27_v35 = vld [vmem:[%s475_s2] sm:$0x7f]  ;;  %vm225_vm8 = vcmask 1044484   ;;  %vm243_vm9 = vcmask 1045509  }
   0xa   :  { %v107_v28 = vsel %vm87_vm0, %v360_v23, 0  ;;  %v356_v29 = vor.u32 %v370_v25, %v353_v27  ;;  %v29_v40 = vperm.slane %v27_v35, 0  ;;  %v30_v41 = vperm.slane %v27_v35, 1  ;;  %vm284_vm15 = vmor %vm225_vm8, %vm283_vm12 }
   0xb   :  { %194 = vmatpush.bf16.msrb.mxu2 %v107_v28  ;;  %v101_v30 = vsel %vm87_vm0, %v352_v26, 0  ;;  %v31_v42 = vperm.slane %v27_v35, 2  ;;  %v32_v43 = vperm.slane %v27_v35, 3  ;;  %v33_v44 = vperm.slane %v27_v35, 4 }
   0xc   :  { %168 = vmatpush.bf16.msrb.mxu0 %v101_v30  ;;  %v104_v31 = vsel %vm87_vm0, %v356_v29, 0  ;;  %v34_v45 = vperm.slane %v27_v35, 5  ;;  %v35_v59 = vperm.slane %v27_v35, 6  ;;  %vm223_vm10 = vcmask 1041408  }
   0xd   :  { %181 = vmatpush.bf16.msrb.mxu1 %v104_v31  ;;  %vm229_vm11 = vcmask 1046534   ;;  %vm233_vm13 = vcmask 1045508   ;;  %vm235_vm14 = vcmask 1043456   ;;  %vm286_vm0 = vcmask 129030  }
   0xf   :  { %v54_v32 = vld [vmem:[#allocation1] sm:$0xff] }
  0x10   :  { %361 = vmatmul.msk.bf16.vlgmr.msra.gmra.mxu0 %vm84_vm1, %v54_v32  ;;  %362 = vmatmul.msk.bf16.vlgmr.msra.gmra.mxu1 %vm84_vm1, %v54_v32 }
  0x11   :  { %363 = vmatmul.msk.bf16.vlgmr.msra.gmra.mxu2 %vm84_vm1, %v54_v32  ;;  %364 = vmatmul.msk.bf16.vlgmr.msra.gmra.mxu3 %vm84_vm1, %v54_v32 }
  0x20   :  { %365 = vmatmul.msk.bf16.vlgmr.msrb.gmra.mxu0 %vm84_vm1, %v54_v32  ;;  %366 = vmatmul.msk.bf16.vlgmr.msrb.gmra.mxu1 %vm84_vm1, %v54_v32 }
  0x21   :  { %367 = vmatmul.msk.bf16.vlgmr.msrb.gmra.mxu2 %vm84_vm1, %v54_v32  ;;  %vm285_vm1 = vmor %vm243_vm9, %vm284_vm15 }
  0x22   :  { %vm287_vm3 = vmor %vm286_vm0, %vm285_vm1 }
  0x8d   :  { %v118_v33 = vpop.f32.mrf.mxu0  ;;  %v131_v34 = vpop.f32.mrf.mxu1 }
  0x8e   :  { %v119_v46 = vadd.f32 %v118_v33, %v29_v40  ;;  %v132_v47 = vadd.f32 %v131_v34, %v30_v41 }
  0x90   :  { %v200_v54 = vpack.c.bf16 %v132_v47, %v119_v46 }
  0x92   :  { %v208_v60 = vrot.slane %v200_v54, 3 }
  0x94   :  { %v144_v36 = vpop.f32.mrf.mxu2  ;;  %v157_v37 = vpop.f32.mrf.mxu3  ;;  %v218_v8 = vsel %vm215_vm2, %v200_v54, %v208_v60 }
  0x95   :  { %v120_v38 = vpop.f32.mrf.mxu0  ;;  %v133_v39 = vpop.f32.mrf.mxu1  ;;  %v145_v48 = vadd.f32 %v144_v36, %v31_v42  ;;  %v158_v49 = vadd.f32 %v157_v37, %v32_v43 }
  0x97   :  { %v201_v55 = vpack.c.bf16 %v158_v49, %v145_v48 }
  0x99   :  { %v209_v61 = vrot.slane %v201_v55, 6  ;;  %v210_v62 = vrot.slane %v201_v55, 1 }
  0x9b   :  { %v222_v5 = vsel %vm219_vm5, %v209_v61, %v210_v62 }
  0x9c   :  { %v146_v50 = vpop.f32.mrf.mxu2  ;;  %v159_v51 = vpop.f32.mrf.mxu3  ;;  %v224_v11 = vsel %vm223_vm10, %v218_v8, %v222_v5 }
  0x9d   :  { %v170_v52 = vpop.f32.mrf.mxu0  ;;  %v183_v53 = vpop.f32.mrf.mxu1 }
  0x9e   :  { %v171_v56 = vadd.f32 %v170_v52, %v33_v44  ;;  %v184_v57 = vadd.f32 %v183_v53, %v34_v45 }
  0xa0   :  { %v202_v58 = vpack.c.bf16 %v184_v57, %v171_v56 }
  0xa2   :  { %v211_v63 = vrot.slane %v202_v58, 4  ;;  %v212_v0 = vrot.slane %v202_v58, 7 }
  0xa4   :  { %v196_v1 = vpop.f32.mrf.mxu2  ;;  %v228_v7 = vsel %vm225_vm8, %v211_v63, %v212_v0 }
  0xa5   :  { %v197_v2 = vadd.f32 %v196_v1, %v35_v59  ;;  %v172_v3 = vpop.f32.mrf.mxu0  ;;  %v185_v4 = vpop.f32.mrf.mxu1 }
  0xa7   :  { %v203_v6 = vpack.c.bf16 %v197_v2, %v197_v2 }
  0xa9   :  { %v213_v9 = vrot.slane %v203_v6, 2  ;;  %v214_v10 = vrot.slane %v203_v6, 5 }
  0xab   :  { %v232_v12 = vsel %vm229_vm11, %v213_v9, %v214_v10 }
  0xac   :  { %v234_v13 = vsel %vm233_vm13, %v228_v7, %v232_v12  ;;  %v198_v14 = vpop.f32.mrf.mxu2 }
  0xad   :  { %v236_v15 = vsel %vm235_vm14, %v224_v11, %v234_v13 }
  0xae   :  { %288 = vst.msk [vmem:[#allocation2] sm:$0x7f] %vm287_vm3, %v236_v15 }
  0xb5   :  { %v310_v16 = vld [vmem:[#allocation2] sm:$0x7f] }
  0xb6   :  { %311 = vst [vmem:[%s476_s3] sm:$0x7f] %v310_v16 }

// kernel: discriminator_forward.7
= control target key start
LH: loop header
LB: loop body
LE: loop exit
PB: predicated region body
PF: predicated region fallthrough
CT: control target
= control target key end

     0   :  { %s1279_s12 = smov 0   ;;  %s1281_s13 = smov 0   ;;  %s1576_s0 = inlined_call_operand.vmem [shape: bf16[392,18], index: 0, kind: input, shape index: {}]   ;;  %s1577_s1 = inlined_call_operand.vmem [shape: bf16[18,32], index: 1, kind: input, shape index: {}]   ;;  %s1578_s2 = inlined_call_operand.vmem [shape: f32[1,32], index: 2, kind: input, shape index: {}]   ;;  %s1579_s3 = inlined_call_operand.vmem [shape: bf16[392,32], index: 3, kind: output, shape index: {}]  }
   0x1   :  { %s1283_s14 = smov 0   ;;  %s1285_s15 = smov 0  }
   0x2   :  { %s1287_s16 = smov 0  }
   0x3 LB: > { %s937_s17 = sadd.s32 4294967295, %s1225_s16   ;;  %s25_s18 = sadd.s32 1, %s1221_s15  ;;  %s1225_s16 = sphi %s1287_s16, %s13_s16   ;;  %s1221_s15 = sphi %s1285_s15, %s1589_s15   ;;  %s1217_s14 = sphi %s1283_s14, %s1588_s14   ;;  %s1213_s13 = sphi %s1281_s13, %s1587_s13   ;;  %s1209_s12 = sphi %s1279_s12, %s1586_s12  }
   0x4   : > { %p27_p0 = scmp.ge.s32.totalorder %s25_s18, 2  ;;  %s112_s19 = sadd.s32 1, %s1213_s13 }
   0x5   : > { %p122_p1 = scmp.ne.s32.totalorder %s1213_s13, %s1209_s12  ;;  %p123_p2 = scmp.eq.s32.totalorder %s937_s17, 1 }
   0x6   : > { %s1591_s18 = smov (%p27_p0, %s25_s18), 0  ;;  %p943_p4 = scmp.ge.s32.totalorder %s1225_s16, 1 }
   0x7   : > { %p1311_p3 = por %p123_p2, %p122_p1  ;;  %s107_s21 = ssub.s32 %s1221_s15, %s1591_s18 }
   0x8   : > { %p177_p5 = scmp.lt.s32.totalorder %s1225_s16, 3  ;;  %p110_p6 = scmp.eq.s32.totalorder %s107_s21, 0 }
   0xa   : > { %p178_p7 = pnand %p943_p4, %p177_p5 }
   0xb   : > { %s1320_s22 = scalar_select %p110_p6, %s1213_s13, %s112_s19  }
   0xc   : > { %181 = sbr.rel (%p178_p7) target bundleno = 298 (0x12a), region = 32  ;;  %s208_s8 = sand.u32 (!%p178_p7), 1, %s1209_s12  }
   0xd   : > { %s1326_s25 = smul.u32 (!%p178_p7), 25, %s1217_s14 }
   0xe   : > { %s1042_s9 = smul.u32 (!%p178_p7), 100, %s208_s8 }
   0xf   : > { %p216_p8 = scmp.lt.s32.totalorder (!%p178_p7), %s1326_s25, 48 }
  0x10   : > { %s1373_s10 = scalar_lea.vmem (!%p178_p7), [#allocation2], %s1042_s9  }
  0x11   : > { %v265_v0 = vld [vmem:[%s1577_s1 + $0x8] sm:$0x1]  ;;  %vm382_vm0 = vcmask 1040384   ;;  %s217_s26 = scalar_select %p216_p8, %s1326_s25, 48  ;;  %v1034_v4 = vld [vmem:[%s1577_s1] sm:$0xff]  ;;  %vm342_vm1 = vcmask 146432  }
  0x12   : > { %v338_v1 = vunpack.c.l.b16 %v265_v0  ;;  %v1367_v20 = vld [vmem:[%s1578_s2] ss:$0 sm:$0xff]  ;;  %vm559_vm4 = vcmask 257024   ;;  %s593_s11 = ssub.s32 (%p1311_p3), 49, %s1326_s25  ;;  %s1035_s12 = smul.u32 (%p1311_p3), 100, %s1217_s14 }
  0x13   : > { %s944_s29 = sshll.u32 %s217_s26, 2  ;;  %p594_p9 = scmp.lt.s32.totalorder (%p1311_p3), %s593_s11, 25 }
  0x14   : > { %v340_v2 = vpack.c.b16 %v338_v1, %v338_v1  ;;  %s1336_s5 = scalar_lea.vmem %s1576_s0, %s944_s29  ;;  %s1454_s21 = scalar_lea.vmem (%p1311_p3), %s1579_s3, %s1035_s12  }
  0x15   : > { %v1025_v5 = vld [vmem:[%s1336_s5 + $0x18] sm:$0xff]  ;;  %v1022_v7 = vld [vmem:[%s1336_s5] sm:$0xff]  ;;  %v1023_v13 = vld [vmem:[%s1336_s5 + $0x8] sm:$0xff] }
  0x16   : > { %v384_v3 = vsel %vm382_vm0, %v340_v2, 0  ;;  %v1029_v6 = vld [vmem:[%s1336_s5 + $0x38] sm:$0xff]  ;;  %v262_v9 = vld [vmem:[%s1336_s5 + $0x60] sm:$0xf]  ;;  %v1027_v15 = vld [vmem:[%s1336_s5 + $0x28] sm:$0xff] }
  0x17   : > { %1036 = vmatpush.bf16.msra.mxu1 %v384_v3  ;;  %1037 = vmatpush.bf16.msra.mxu2 %v384_v3  ;;  %v1033_v8 = vld [vmem:[%s1336_s5 + $0x58] sm:$0xff]  ;;  %v1026_v10 = vld [vmem:[%s1336_s5 + $0x20] sm:$0xff]  ;;  %v319_v12 = vunpack.c.l.b16 %v262_v9  ;;  %v1031_v16 = vld [vmem:[%s1336_s5 + $0x48] sm:$0xff] }
  0x18   : > { %392 = vmatpush.bf16.msra.mxu0 %v384_v3  ;;  %1038 = vmatpush.bf16.msra.mxu3 %v384_v3  ;;  %v1030_v11 = vld [vmem:[%s1336_s5 + $0x40] sm:$0xff]  ;;  %v1024_v17 = vld [vmem:[%s1336_s5 + $0x10] sm:$0xff] }
  0x19   : > { %v332_v14 = vpack.c.b16 %v319_v12, %v319_v12  ;;  %v1028_v18 = vld [vmem:[%s1336_s5 + $0x30] sm:$0xff] }
  0x1a   : > { %v1032_v19 = vld [vmem:[%s1336_s5 + $0x50] sm:$0xff] }
  0x1b   : > { %1039 = vmatpush.bf16.msra.mxu1 %v1034_v4  ;;  %1040 = vmatpush.bf16.msra.mxu2 %v1034_v4 }
  0x1c   : > { %393 = vmatpush.bf16.msra.mxu0 %v1034_v4  ;;  %1041 = vmatpush.bf16.msra.mxu3 %v1034_v4 }
  0x1e   : > { %1000 = vmatmul.msk.bf16.vlgmr.msra.gmra.mxu1 %vm342_vm1, %v1025_v5  ;;  %1004 = vmatmul.msk.bf16.vlgmr.msra.gmra.mxu2 %vm342_vm1, %v1029_v6 }
  0x1f   : > { %997 = vmatmul.msk.bf16.vlgmr.msra.gmra.mxu0 %vm342_vm1, %v1022_v7  ;;  %1008 = vmatmul.msk.bf16.vlgmr.msra.gmra.mxu3 %vm342_vm1, %v1033_v8 }
  0x2e   : > { %1001 = vmatmul.msk.bf16.gmra.mxu1 %vm342_vm1, %v1026_v10  ;;  %1005 = vmatmul.msk.bf16.gmra.mxu2 %vm342_vm1, %v1030_v11 }
  0x2f   : > { %998 = vmatmul.msk.bf16.gmra.mxu0 %vm342_vm1, %v1023_v13  ;;  %1009 = vmatmul.msk.bf16.gmra.mxu3 %vm342_vm1, %v332_v14 }
  0x3e   : > { %1002 = vmatmul.msk.bf16.gmra.mxu1 %vm342_vm1, %v1027_v15  ;;  %1006 = vmatmul.msk.bf16.gmra.mxu2 %vm342_vm1, %v1031_v16 }
  0x3f   : > { %999 = vmatmul.msk.bf16.gmra.mxu0 %vm342_vm1, %v1024_v17 }
  0x4e   : > { %1003 = vmatmul.msk.bf16.gmra.mxu1 %vm342_vm1, %v1028_v18  ;;  %1007 = vmatmul.msk.bf16.gmra.mxu2 %vm342_vm1, %v1032_v19 }
  0x9b   : > { %v410_v21 = vpop.f32.mrf.mxu1 }
  0x9c   : > { %v411_v22 = vadd.f32 %v1367_v20, %v410_v21  ;;  %v395_v23 = vpop.f32.mrf.mxu0 }
  0x9d   : > { %v396_v24 = vadd.f32 %v1367_v20, %v395_v23 }
  0x9e   : > { %vm465_vm2 = vcmp.ge.f32.partialorder %v411_v22, 0.0  ;;  %v490_v25 = vmul.f32 0.2, %v411_v22 }
  0x9f   : > { %vm459_vm3 = vcmp.ge.f32.partialorder %v396_v24, 0.0  ;;  %v484_v26 = vmul.f32 0.2, %v396_v24 }
  0xa0   : > { %v515_v27 = vsel %vm465_vm2, %v411_v22, %v490_v25 }
  0xa1   : > { %v540_v28 = vpack.c.bf16 %v515_v27, %v515_v27  ;;  %v430_v29 = vpop.f32.mrf.mxu2  ;;  %v509_v30 = vsel %vm459_vm3, %v396_v24, %v484_v26 }
  0xa2   : > { %v431_v31 = vadd.f32 %v1367_v20, %v430_v29  ;;  %v534_v32 = vpack.c.bf16 %v509_v30, %v509_v30  ;;  %v450_v33 = vpop.f32.mrf.mxu3 }
  0xa3   : > { %566 = vst.msk [vmem:[%s1373_s10 + $0x18] sm:$0xf] %vm559_vm4, %v540_v28  ;;  %v412_v34 = vpop.f32.mrf.mxu1  ;;  %v451_v35 = vadd.f32 %v1367_v20, %v450_v33 }
  0xa4   : > { %vm473_vm5 = vcmp.ge.f32.partialorder %v431_v31, 0.0  ;;  %v498_v36 = vmul.f32 0.2, %v431_v31  ;;  %v413_v37 = vadd.f32 %v1367_v20, %v412_v34  ;;  %560 = vst.msk [vmem:[%s1373_s10] sm:$0xf] %vm559_vm4, %v534_v32  ;;  %v397_v38 = vpop.f32.mrf.mxu0 }
  0xa5   : > { %v398_v39 = vadd.f32 %v1367_v20, %v397_v38  ;;  %vm481_vm6 = vcmp.ge.f32.partialorder %v451_v35, 0.0  ;;  %v506_v40 = vmul.f32 0.2, %v451_v35 }
  0xa6   : > { %v523_v41 = vsel %vm473_vm5, %v431_v31, %v498_v36  ;;  %vm466_vm7 = vcmp.ge.f32.partialorder %v413_v37, 0.0  ;;  %v491_v42 = vmul.f32 0.2, %v413_v37 }
  0xa7   : > { %v548_v43 = vpack.c.bf16 %v523_v41, %v523_v41  ;;  %vm460_vm8 = vcmp.ge.f32.partialorder %v398_v39, 0.0  ;;  %v485_v44 = vmul.f32 0.2, %v398_v39  ;;  %v531_v45 = vsel %vm481_vm6, %v451_v35, %v506_v40 }
  0xa8   : > { %v516_v46 = vsel %vm466_vm7, %v413_v37, %v491_v42  ;;  %v556_v47 = vpack.c.bf16 %v531_v45, %v531_v45 }
  0xa9   : > { %574 = vst.msk [vmem:[%s1373_s10 + $0x38] sm:$0xf] %vm559_vm4, %v548_v43  ;;  %v541_v48 = vpack.c.bf16 %v516_v46, %v516_v46  ;;  %v432_v49 = vpop.f32.mrf.mxu2  ;;  %v510_v50 = vsel %vm460_vm8, %v398_v39, %v485_v44 }
  0xaa   : > { %v433_v51 = vadd.f32 %v1367_v20, %v432_v49  ;;  %v535_v52 = vpack.c.bf16 %v510_v50, %v510_v50  ;;  %582 = vst.msk [vmem:[%s1373_s10 + $0x58] sm:$0xf] %vm559_vm4, %v556_v47  ;;  %v452_v53 = vpop.f32.mrf.mxu3 }
  0xab   : > { %567 = vst.msk [vmem:[%s1373_s10 + $0x1c] sm:$0xf] %vm559_vm4, %v541_v48  ;;  %v415_v54 = vpop.f32.mrf.mxu1  ;;  %v453_v55 = vadd.f32 %v1367_v20, %v452_v53 }
  0xac   : > { %vm474_vm9 = vcmp.ge.f32.partialorder %v433_v51, 0.0  ;;  %v499_v56 = vmul.f32 0.2, %v433_v51  ;;  %v416_v57 = vadd.f32 %v1367_v20, %v415_v54  ;;  %561 = vst.msk [vmem:[%s1373_s10 + $0x4] sm:$0xf] %vm559_vm4, %v535_v52  ;;  %v400_v58 = vpop.f32.mrf.mxu0 }
  0xad   : > { %v401_v59 = vadd.f32 %v1367_v20, %v400_v58  ;;  %vm482_vm10 = vcmp.ge.f32.partialorder %v453_v55, 0.0  ;;  %v507_v60 = vmul.f32 0.2, %v453_v55 }
  0xae   : > { %v524_v61 = vsel %vm474_vm9, %v433_v51, %v499_v56  ;;  %vm467_vm11 = vcmp.ge.f32.partialorder %v416_v57, 0.0  ;;  %v492_v62 = vmul.f32 0.2, %v416_v57 }
  0xaf   : > { %v549_v63 = vpack.c.bf16 %v524_v61, %v524_v61  ;;  %vm461_vm12 = vcmp.ge.f32.partialorder %v401_v59, 0.0  ;;  %v486_v0 = vmul.f32 0.2, %v401_v59  ;;  %v532_v1 = vsel %vm482_vm10, %v453_v55, %v507_v60 }
  0xb0   : > { %v517_v2 = vsel %vm467_vm11, %v416_v57, %v492_v62  ;;  %v557_v3 = vpack.c.bf16 %v532_v1, %v532_v1 }
  0xb1   : > { %575 = vst.msk [vmem:[%s1373_s10 + $0x3c] sm:$0xf] %vm559_vm4, %v549_v63  ;;  %v542_v4 = vpack.c.bf16 %v517_v2, %v517_v2  ;;  %v435_v5 = vpop.f32.mrf.mxu2  ;;  %v511_v6 = vsel %vm461_vm12, %v401_v59, %v486_v0 }
  0xb2   : > { %v436_v7 = vadd.f32 %v1367_v20, %v435_v5  ;;  %v536_v8 = vpack.c.bf16 %v511_v6, %v511_v6  ;;  %583 = vst.msk [vmem:[%s1373_s10 + $0x5c] sm:$0xf] %vm559_vm4, %v557_v3  ;;  %v455_v9 = vpop.f32.mrf.mxu3 }
  0xb3   : > { %568 = vst.msk [vmem:[%s1373_s10 + $0x20] sm:$0xf] %vm559_vm4, %v542_v4  ;;  %v417_v10 = vpop.f32.mrf.mxu1  ;;  %v456_v21 = vadd.f32 %v1367_v20, %v455_v9 }
  0xb4   : > { %vm475_vm13 = vcmp.ge.f32.partialorder %v436_v7, 0.0  ;;  %v500_v11 = vmul.f32 0.2, %v436_v7  ;;  %v418_v12 = vadd.f32 %v1367_v20, %v417_v10  ;;  %562 = vst.msk [vmem:[%s1373_s10 + $0x8] sm:$0xf] %vm559_vm4, %v536_v8  ;;  %v402_v13 = vpop.f32.mrf.mxu0 }
  0xb5   : > { %v403_v14 = vadd.f32 %v1367_v20, %v402_v13  ;;  %vm483_vm0 = vcmp.ge.f32.partialorder %v456_v21, 0.0  ;;  %v508_v27 = vmul.f32 0.2, %v456_v21 }
  0xb6   : > { %v525_v15 = vsel %vm475_vm13, %v436_v7, %v500_v11  ;;  %vm468_vm14 = vcmp.ge.f32.partialorder %v418_v12, 0.0  ;;  %v493_v16 = vmul.f32 0.2, %v418_v12 }
  0xb7   : > { %v550_v17 = vpack.c.bf16 %v525_v15, %v525_v15  ;;  %vm462_vm15 = vcmp.ge.f32.partialorder %v403_v14, 0.0  ;;  %v487_v18 = vmul.f32 0.2, %v403_v14  ;;  %v533_v33 = vsel %vm483_vm0, %v456_v21, %v508_v27 }
  0xb8   : > { %v518_v19 = vsel %vm468_vm14, %v418_v12, %v493_v16  ;;  %v558_v35 = vpack.c.bf16 %v533_v33, %v533_v33 }
  0xb9   : > { %576 = vst.msk [vmem:[%s1373_s10 + $0x40] sm:$0xf] %vm559_vm4, %v550_v17  ;;  %v543_v22 = vpack.c.bf16 %v518_v19, %v518_v19  ;;  %v437_v23 = vpop.f32.mrf.mxu2  ;;  %v512_v24 = vsel %vm462_vm15, %v403_v14, %v487_v18 }
  0xba   : > { %v438_v25 = vadd.f32 %v1367_v20, %v437_v23  ;;  %v537_v26 = vpack.c.bf16 %v512_v24, %v512_v24  ;;  %v457_v28 = vpop.f32.mrf.mxu3  ;;  %584 = vst.msk [vmem:[%s1373_s10 + $0x60] sm:$0xf] %vm559_vm4, %v558_v35 }
  0xbb   : > { %569 = vst.msk [vmem:[%s1373_s10 + $0x24] sm:$0xf] %vm559_vm4, %v543_v22  ;;  %v420_v29 = vpop.f32.mrf.mxu1 }
  0xbc   : > { %vm476_vm1 = vcmp.ge.f32.partialorder %v438_v25, 0.0  ;;  %v501_v30 = vmul.f32 0.2, %v438_v25  ;;  %v421_v31 = vadd.f32 %v1367_v20, %v420_v29  ;;  %563 = vst.msk [vmem:[%s1373_s10 + $0xc] sm:$0xf] %vm559_vm4, %v537_v26  ;;  %v405_v32 = vpop.f32.mrf.mxu0 }
  0xbd   : > { %v406_v34 = vadd.f32 %v1367_v20, %v405_v32 }
  0xbe   : > { %v526_v36 = vsel %vm476_vm1, %v438_v25, %v501_v30  ;;  %vm469_vm2 = vcmp.ge.f32.partialorder %v421_v31, 0.0  ;;  %v494_v37 = vmul.f32 0.2, %v421_v31 }
  0xbf   : > { %v551_v38 = vpack.c.bf16 %v526_v36, %v526_v36  ;;  %vm463_vm3 = vcmp.ge.f32.partialorder %v406_v34, 0.0  ;;  %v488_v39 = vmul.f32 0.2, %v406_v34 }
  0xc0   : > { %v519_v40 = vsel %vm469_vm2, %v421_v31, %v494_v37 }
  0xc1   : > { %577 = vst.msk [vmem:[%s1373_s10 + $0x44] sm:$0xf] %vm559_vm4, %v551_v38  ;;  %v544_v41 = vpack.c.bf16 %v519_v40, %v519_v40  ;;  %v440_v42 = vpop.f32.mrf.mxu2  ;;  %v513_v43 = vsel %vm463_vm3, %v406_v34, %v488_v39 }
  0xc2   : > { %v441_v44 = vadd.f32 %v1367_v20, %v440_v42  ;;  %v538_v45 = vpack.c.bf16 %v513_v43, %v513_v43 }
  0xc3   : > { %570 = vst.msk [vmem:[%s1373_s10 + $0x28] sm:$0xf] %vm559_vm4, %v544_v41  ;;  %v422_v46 = vpop.f32.mrf.mxu1 }
  0xc4   : > { %vm477_vm5 = vcmp.ge.f32.partialorder %v441_v44, 0.0  ;;  %v502_v47 = vmul.f32 0.2, %v441_v44  ;;  %v423_v48 = vadd.f32 %v1367_v20, %v422_v46  ;;  %564 = vst.msk [vmem:[%s1373_s10 + $0x10] sm:$0xf] %vm559_vm4, %v538_v45  ;;  %v407_v49 = vpop.f32.mrf.mxu0 }
  0xc5   : > { %v408_v50 = vadd.f32 %v1367_v20, %v407_v49 }
  0xc6   : > { %v527_v51 = vsel %vm477_vm5, %v441_v44, %v502_v47  ;;  %vm470_vm6 = vcmp.ge.f32.partialorder %v423_v48, 0.0  ;;  %v495_v52 = vmul.f32 0.2, %v423_v48 }
  0xc7   : > { %v552_v53 = vpack.c.bf16 %v527_v51, %v527_v51  ;;  %vm464_vm7 = vcmp.ge.f32.partialorder %v408_v50, 0.0  ;;  %v489_v54 = vmul.f32 0.2, %v408_v50 }
  0xc8   : > { %v520_v55 = vsel %vm470_vm6, %v423_v48, %v495_v52 }
  0xc9   : > { %578 = vst.msk [vmem:[%s1373_s10 + $0x48] sm:$0xf] %vm559_vm4, %v552_v53  ;;  %v545_v56 = vpack.c.bf16 %v520_v55, %v520_v55  ;;  %v442_v57 = vpop.f32.mrf.mxu2  ;;  %v514_v58 = vsel %vm464_vm7, %v408_v50, %v489_v54 }
  0xca   : > { %v443_v59 = vadd.f32 %v1367_v20, %v442_v57  ;;  %v539_v60 = vpack.c.bf16 %v514_v58, %v514_v58 }
  0xcb   : > { %571 = vst.msk [vmem:[%s1373_s10 + $0x2c] sm:$0xf] %vm559_vm4, %v545_v56  ;;  %v425_v61 = vpop.f32.mrf.mxu1 }
  0xcc   : > { %vm478_vm8 = vcmp.ge.f32.partialorder %v443_v59, 0.0  ;;  %v503_v62 = vmul.f32 0.2, %v443_v59  ;;  %v426_v63 = vadd.f32 %v1367_v20, %v425_v61  ;;  %565 = vst.msk [vmem:[%s1373_s10 + $0x14] sm:$0xf] %vm559_vm4, %v539_v60 }
  0xce   : > { %v528_v0 = vsel %vm478_vm8, %v443_v59, %v503_v62  ;;  %vm471_vm9 = vcmp.ge.f32.partialorder %v426_v63, 0.0  ;;  %v496_v1 = vmul.f32 0.2, %v426_v63 }
  0xcf   : > { %v553_v2 = vpack.c.bf16 %v528_v0, %v528_v0 }
  0xd0   : > { %v521_v3 = vsel %vm471_vm9, %v426_v63, %v496_v1 }
  0xd1   : > { %579 = vst.msk [vmem:[%s1373_s10 + $0x4c] sm:$0xf] %vm559_vm4, %v553_v2  ;;  %v546_v4 = vpack.c.bf16 %v521_v3, %v521_v3  ;;  %v445_v5 = vpop.f32.mrf.mxu2 }
  0xd2   : > { %v446_v6 = vadd.f32 %v1367_v20, %v445_v5 }
  0xd3   : > { %572 = vst.msk [vmem:[%s1373_s10 + $0x30] sm:$0xf] %vm559_vm4, %v546_v4  ;;  %v427_v7 = vpop.f32.mrf.mxu1 }
  0xd4   : > { %vm479_vm10 = vcmp.ge.f32.partialorder %v446_v6, 0.0  ;;  %v504_v8 = vmul.f32 0.2, %v446_v6  ;;  %v428_v9 = vadd.f32 %v1367_v20, %v427_v7 }
  0xd6   : > { %v529_v10 = vsel %vm479_vm10, %v446_v6, %v504_v8  ;;  %vm472_vm11 = vcmp.ge.f32.partialorder %v428_v9, 0.0  ;;  %v497_v11 = vmul.f32 0.2, %v428_v9 }
  0xd7   : > { %v554_v12 = vpack.c.bf16 %v529_v10, %v529_v10 }
  0xd8   : > { %v522_v13 = vsel %vm472_vm11, %v428_v9, %v497_v11 }
  0xd9   : > { %580 = vst.msk [vmem:[%s1373_s10 + $0x50] sm:$0xf] %vm559_vm4, %v554_v12  ;;  %v547_v14 = vpack.c.bf16 %v522_v13, %v522_v13  ;;  %v447_v15 = vpop.f32.mrf.mxu2 }
  0xda   : > { %v448_v16 = vadd.f32 %v1367_v20, %v447_v15 }
  0xdb   : > { %573 = vst.msk [vmem:[%s1373_s10 + $0x34] sm:$0xf] %vm559_vm4, %v547_v14 }
  0xdc   : > { %vm480_vm12 = vcmp.ge.f32.partialorder %v448_v16, 0.0  ;;  %v505_v17 = vmul.f32 0.2, %v448_v16 }
  0xdd   : > { %591 = sbr.rel (!%p1311_p3) target bundleno = 298 (0x12a), region = 36 }
  0xde   : > { %v530_v18 = vsel %vm480_vm12, %v448_v16, %v505_v17 }
  0xdf   : > { %v555_v19 = vpack.c.bf16 %v530_v18, %v530_v18 }
  0xe1   : > { %581 = vst.msk [vmem:[%s1373_s10 + $0x54] sm:$0xf] %vm559_vm4, %v555_v19 }
  0xe2   : > { %s1593_s11 = smov (!%p594_p9, %s593_s11), 25 }
  0xe3   : > { %s1010_s23 = sshll.u32 %s1593_s11, 2 }
  0xe4   : > { %p1013_p10 = scmp.eq.s32.totalorder %s1010_s23, 0 }
  0xe5   : > { %1149 = sdivrem.u32 (!%p1013_p10), %s1593_s11, 25 }
  0xe6   : > { %603 = sbr.rel (%p1013_p10) target bundleno = 298 (0x12a), region = 40 }
  0xee   : > { %s1460_s20 = spop.drf %1149 }
  0xef   : > { %s1151_s24 = spop.drf %1149  ;;  %p1014_p11 = scmp.le.s32.totalorder %s1460_s20, 0 }
  0xf0   : > { %s1581_s14 = smov (!%p1014_p11), %s1454_s21  ;;  %s1582_s25 = smov (!%p1014_p11), %s1373_s10 }
  0xf1   : > { %867 = sbr.rel (%p1014_p11) target bundleno = 272 (0x110), region = 118  ;;  %s1469_s26 = smov (!%p1014_p11), 0  }
  0xf2   : > { %s1471_s27 = smov (!%p1014_p11), 0  }
  0xf6 LB: >> { %v621_v20 = vld [vmem:[%s1233_s25] sm:$0xf]  ;;  %v623_v21 = vld [vmem:[%s1233_s25 + $0x4] sm:$0xf]  ;;  %v625_v22 = vld [vmem:[%s1233_s25 + $0x8] sm:$0xf]  ;;  %s1241_s27 = sphi %s1471_s27, %s615_s27   ;;  %s1237_s26 = sphi %s1469_s26, %s1585_s26   ;;  %s1233_s25 = sphi %s1582_s25, %s1584_s25   ;;  %s1229_s14 = sphi %s1581_s14, %s1583_s14  }
  0xf7   : >> { %622 = vst [vmem:[%s1229_s14] sm:$0xf] %v621_v20  ;;  %v627_v23 = vld [vmem:[%s1233_s25 + $0xc] sm:$0xf]  ;;  %v629_v24 = vld [vmem:[%s1233_s25 + $0x10] sm:$0xf]  ;;  %s671_s28 = sadd.s32 1, %s1237_s26 }
  0xf8   : >> { %624 = vst [vmem:[%s1229_s14 + $0x4] sm:$0xf] %v623_v21  ;;  %v631_v25 = vld [vmem:[%s1233_s25 + $0x14] sm:$0xf]  ;;  %v633_v26 = vld [vmem:[%s1233_s25 + $0x18] sm:$0xf]  ;;  %p672_p12 = scmp.ge.s32.totalorder %s671_s28, %s1460_s20 }
  0xf9   : >> { %626 = vst [vmem:[%s1229_s14 + $0x8] sm:$0xf] %v625_v22  ;;  %v635_v27 = vld [vmem:[%s1233_s25 + $0x1c] sm:$0xf]  ;;  %v637_v28 = vld [vmem:[%s1233_s25 + $0x20] sm:$0xf] }
  0xfa   : >> { %628 = vst [vmem:[%s1229_s14 + $0xc] sm:$0xf] %v627_v23  ;;  %v639_v29 = vld [vmem:[%s1233_s25 + $0x24] sm:$0xf]  ;;  %v641_v30 = vld [vmem:[%s1233_s25 + $0x28] sm:$0xf] }
  0xfb   : >> { %630 = vst [vmem:[%s1229_s14 + $0x10] sm:$0xf] %v629_v24  ;;  %v643_v31 = vld [vmem:[%s1233_s25 + $0x2c] sm:$0xf]  ;;  %v645_v32 = vld [vmem:[%s1233_s25 + $0x30] sm:$0xf] }
  0xfc   : >> { %632 = vst [vmem:[%s1229_s14 + $0x14] sm:$0xf] %v631_v25  ;;  %v647_v33 = vld [vmem:[%s1233_s25 + $0x34] sm:$0xf]  ;;  %v649_v34 = vld [vmem:[%s1233_s25 + $0x38] sm:$0xf] }
  0xfd   : >> { %634 = vst [vmem:[%s1229_s14 + $0x18] sm:$0xf] %v633_v26  ;;  %s1595_s28 = smov (%p672_p12, %s671_s28), 0  ;;  %v651_v35 = vld [vmem:[%s1233_s25 + $0x3c] sm:$0xf]  ;;  %s615_s27 = sadd.s32 1, %s1241_s27  }
  0xfe   : >> { %636 = vst [vmem:[%s1229_s14 + $0x1c] sm:$0xf] %v635_v27  ;;  %v653_v36 = vld [vmem:[%s1233_s25 + $0x40] sm:$0xf]  ;;  %s674_s29 = smul.u32 100, %s1595_s28  ;;  %p614_p13 = scmp.ge.s32.totalorder %s615_s27, %s1460_s20 }
  0xff   : >> { %638 = vst [vmem:[%s1229_s14 + $0x20] sm:$0xf] %v637_v28  ;;  %v655_v37 = vld [vmem:[%s1233_s25 + $0x44] sm:$0xf]  ;;  %v657_v38 = vld [vmem:[%s1233_s25 + $0x48] sm:$0xf]  ;;  %s1585_s26 = smov %s1595_s28 }
 0x100   : >> { %640 = vst [vmem:[%s1229_s14 + $0x24] sm:$0xf] %v639_v29  ;;  %s676_s30 = scalar_lea.vmem %s1373_s10, %s674_s29 [#allocation2]   ;;  %s677_s4 = scalar_lea.vmem %s1454_s21, %s674_s29   ;;  %v659_v39 = vld [vmem:[%s1233_s25 + $0x4c] sm:$0xf]  ;;  %v661_v40 = vld [vmem:[%s1233_s25 + $0x50] sm:$0xf] }
 0x101   : >> { %642 = vst [vmem:[%s1229_s14 + $0x28] sm:$0xf] %v641_v30  ;;  %v663_v41 = vld [vmem:[%s1233_s25 + $0x54] sm:$0xf]  ;;  %v665_v42 = vld [vmem:[%s1233_s25 + $0x58] sm:$0xf] }
 0x102   : >> { %644 = vst [vmem:[%s1229_s14 + $0x2c] sm:$0xf] %v643_v31  ;;  %v667_v43 = vld [vmem:[%s1233_s25 + $0x5c] sm:$0xf]  ;;  %v669_v44 = vld [vmem:[%s1233_s25 + $0x60] sm:$0xf]  ;;  %s1584_s25 = smov %s676_s30 }
 0x103   : >> { %646 = vst [vmem:[%s1229_s14 + $0x30] sm:$0xf] %v645_v32 }
 0x104   : >> { %648 = vst [vmem:[%s1229_s14 + $0x34] sm:$0xf] %v647_v33 }
 0x105   : >> { %650 = vst [vmem:[%s1229_s14 + $0x38] sm:$0xf] %v649_v34 }
 0x106   : >> { %652 = vst [vmem:[%s1229_s14 + $0x3c] sm:$0xf] %v651_v35 }
 0x107   : >> { %654 = vst [vmem:[%s1229_s14 + $0x40] sm:$0xf] %v653_v36 }
 0x108   : >> { %656 = vst [vmem:[%s1229_s14 + $0x44] sm:$0xf] %v655_v37 }
 0x109   : >> { %658 = vst [vmem:[%s1229_s14 + $0x48] sm:$0xf] %v657_v38 }
 0x10a   : >> { %660 = vst [vmem:[%s1229_s14 + $0x4c] sm:$0xf] %v659_v39 }
 0x10b   : >> { %662 = vst [vmem:[%s1229_s14 + $0x50] sm:$0xf] %v661_v40  ;;  %617 = sbr.rel (!%p614_p13) target bundleno = 246 (0xf6), region = 124 }
 0x10c   : >> { %664 = vst [vmem:[%s1229_s14 + $0x54] sm:$0xf] %v663_v41 }
 0x10d   : >> { %666 = vst [vmem:[%s1229_s14 + $0x58] sm:$0xf] %v665_v42 }
 0x10e   : >> { %668 = vst [vmem:[%s1229_s14 + $0x5c] sm:$0xf] %v667_v43 }
 0x10f   : >> { %670 = vst [vmem:[%s1229_s14 + $0x60] sm:$0xf] %v669_v44  ;;  %s1583_s14 = smov %s677_s4 }
 0x110 PF: > { %1152 = sdivrem.u32 %s1593_s11, 25 }
 0x111   : > { %s1015_s5 = smul.u32 100, %s1460_s20 }
 0x113   : > { %s1556_s6 = scalar_lea.vmem %s1373_s10, %s1015_s5 [#allocation2]   ;;  %s684_s7 = scalar_lea.vmem %s1454_s21, %s1015_s5  }
 0x119   : > { %s1153_s8 = spop.drf %1152 }
 0x11a   : > { %s1154_s9 = spop.drf %1152 }
 0x11b   : > { %p1017_p0 = scmp.le.s32.totalorder %s1154_s9, 0 }
 0x11c   : > { %s1243_s12 = smov (!%p1017_p0), %s684_s7   ;;  %s1247_s17 = smov (!%p1017_p0), %s1556_s6  }
 0x11d   : > { %881 = sbr.rel (%p1017_p0) target bundleno = 298 (0x12a), region = 129  ;;  %s1251_s19 = smov (!%p1017_p0), 0  }
 0x11e   : > { %s1255_s23 = smov (!%p1017_p0), 0  }
 0x122 LB: >> { %v694_v45 = vld [vmem:[%s1249_s17] sm:$0xf]  ;;  %s696_s10 = sadd.s32 1, %s1253_s19  ;;  %s688_s23 = sadd.s32 1, %s1257_s23   ;;  %s1257_s23 = sphi %s1255_s23, %s688_s23   ;;  %s1253_s19 = sphi %s1251_s19, %s1252_s19   ;;  %s1249_s17 = sphi %s1247_s17, %s701_s17   ;;  %s1245_s12 = sphi %s1243_s12, %s702_s12  }
 0x123   : >> { %695 = vst [vmem:[%s1245_s12] sm:$0xf] %v694_v45  ;;  %p697_p1 = scmp.ge.s32.totalorder %s696_s10, %s1154_s9  ;;  %p687_p2 = scmp.ge.s32.totalorder %s688_s23, %s1154_s9 }
 0x125   : >> { %s1597_s10 = smov (%p697_p1, %s696_s10), 0  ;;  %690 = sbr.rel (!%p687_p2) target bundleno = 290 (0x122), region = 135 }
 0x126   : >> { %s1018_s11 = sshll.u32 %s1597_s10, 2  ;;  %s1252_s19 = smov %s1597_s10  }
 0x127   : >> { %s701_s17 = scalar_lea.vmem %s1556_s6, %s1018_s11 [#allocation2]   ;;  %s702_s12 = scalar_lea.vmem %s684_s7, %s1018_s11  }
 0x12a PF: > { %s13_s16 = sadd.s32 1, %s1225_s16   ;;  %s1586_s12 = smov %s1213_s13 }
 0x12b   : > { %p10_p3 = scmp.ge.s32.totalorder %s13_s16, 4   ;;  %s1587_s13 = smov %s1320_s22 }
 0x12c   : > { %s1588_s14 = smov %s1221_s15  ;;  %s1589_s15 = smov %s1591_s18 }
 0x12d   :  { %12 = sbr.rel (!%p10_p3) target bundleno = 3 (0x3), region = 146 }

// kernel: discriminator_forward.8
= control target key start
LH: loop header
LB: loop body
LE: loop exit
PB: predicated region body
PF: predicated region fallthrough
CT: control target
= control target key end

     0   :  { %s1931_s12 = smov 0   ;;  %s1933_s13 = smov 0   ;;  %s2373_s0 = inlined_call_operand.vmem [shape: bf16[392,288], index: 0, kind: input, shape index: {}]   ;;  %s2374_s1 = inlined_call_operand.vmem [shape: bf16[288,64], index: 1, kind: input, shape index: {}]   ;;  %s2375_s2 = inlined_call_operand.vmem [shape: f32[1,64], index: 2, kind: input, shape index: {}]   ;;  %s2376_s3 = inlined_call_operand.vmem [shape: bf16[392,64], index: 3, kind: output, shape index: {}]  }
   0x1   :  { %s1935_s14 = smov 0   ;;  %s1937_s15 = smov 0  }
   0x2   :  { %s1939_s16 = smov 0  }
   0x3 LB: > { %s1371_s17 = sadd.s32 4294967295, %s1877_s16   ;;  %s25_s18 = sadd.s32 1, %s1873_s15  ;;  %s1877_s16 = sphi %s1939_s16, %s13_s16   ;;  %s1873_s15 = sphi %s1937_s15, %s2386_s15   ;;  %s1869_s14 = sphi %s1935_s14, %s2385_s14   ;;  %s1865_s13 = sphi %s1933_s13, %s2384_s13   ;;  %s1861_s12 = sphi %s1931_s12, %s2383_s12  }
   0x4   : > { %p27_p0 = scmp.ge.s32.totalorder %s25_s18, 2  ;;  %s112_s19 = sadd.s32 1, %s1865_s13 }
   0x5   : > { %p122_p1 = scmp.ne.s32.totalorder %s1865_s13, %s1861_s12  ;;  %p123_p2 = scmp.eq.s32.totalorder %s1371_s17, 1 }
   0x6   : > { %s2388_s18 = smov (%p27_p0, %s25_s18), 0  ;;  %p1377_p4 = scmp.ge.s32.totalorder %s1877_s16, 1 }
   0x7   : > { %p1963_p3 = por %p123_p2, %p122_p1  ;;  %s107_s21 = ssub.s32 %s1873_s15, %s2388_s18 }
   0x8   : > { %p180_p5 = scmp.lt.s32.totalorder %s1877_s16, 3  ;;  %p110_p6 = scmp.eq.s32.totalorder %s107_s21, 0 }
   0xa   : > { %p181_p7 = pnand %p1377_p4, %p180_p5 }
   0xb   : > { %s1972_s22 = scalar_select %p110_p6, %s1865_s13, %s112_s19  }
   0xc   : > { %184 = sbr.rel (%p181_p7) target bundleno = 411 (0x19b), region = 32  ;;  %s213_s5 = sand.u32 (!%p181_p7), 1, %s1861_s12  }
   0xd   : > { %s1988_s29 = smul.u32 (!%p181_p7), 25, %s1869_s14 }
   0xe   : > { %s1693_s6 = smul.u32 (!%p181_p7), 100, %s213_s5 }
   0xf   : > { %p222_p8 = scmp.lt.s32.totalorder (!%p181_p7), %s1988_s29, 48 }
  0x10   : > { %s2142_s12 = scalar_lea.vmem (!%p181_p7), [#allocation2], %s1693_s6  }
  0x11   : > { %v1663_v0 = vld [vmem:[%s2374_s1 + $0x38] sm:$0xff]  ;;  %v1985_v2 = vld [vmem:[%s2374_s1 + $0x88] sm:$0xff]  ;;  %v1662_v3 = vld [vmem:[%s2374_s1 + $0x30] sm:$0xff]  ;;  %s223_s9 = scalar_select %p222_p8, %s1988_s29, 48  ;;  %vm634_vm0 = vcmask 261120   ;;  %vm993_vm2 = vcmask 519168  }
  0x12   : > { %v1980_v1 = vld [vmem:[%s2374_s1 + $0x78] sm:$0xff]  ;;  %674 = vmatpush.bf16.msra.mxu0 %v1663_v0  ;;  %1675 = vmatpush.bf16.msra.mxu3 %v1663_v0  ;;  %v1670_v4 = vld [vmem:[%s2374_s1 + $0x70] sm:$0xff]  ;;  %v2002_v5 = vld [vmem:[%s2374_s1 + $0x80] sm:$0xff]  ;;  %s1674_s7 = smul.u32 (%p1963_p3), 100, %s1869_s14 }
  0x13   : > { %747 = vmatpush.bf16.msra.mxu1 %v1980_v1  ;;  %826 = vmatpush.bf16.msra.mxu2 %v1985_v2  ;;  %v1661_v6 = vld [vmem:[%s2374_s1 + $0x28] sm:$0xff]  ;;  %s1694_s17 = smul.u32 12, %s223_s9  ;;  %v1660_v11 = vld [vmem:[%s2374_s1 + $0x20] sm:$0xff]  ;;  %v1659_v13 = vld [vmem:[%s2374_s1 + $0x18] sm:$0xff] }
  0x14   : > { %v1669_v7 = vld [vmem:[%s2374_s1 + $0x68] sm:$0xff]  ;;  %v1668_v12 = vld [vmem:[%s2374_s1 + $0x60] sm:$0xff]  ;;  %v1667_v14 = vld [vmem:[%s2374_s1 + $0x58] sm:$0xff]  ;;  %s2251_s10 = scalar_lea.vmem (%p1963_p3), %s2376_s3, %s1674_s7  }
  0x15   : > { %s2015_s25 = scalar_lea.vmem %s2373_s0, %s1694_s17  ;;  %v1658_v15 = vld [vmem:[%s2374_s1 + $0x10] sm:$0xff]  ;;  %v1657_v19 = vld [vmem:[%s2374_s1 + $0x8] sm:$0xff]  ;;  %v1656_v22 = vld [vmem:[%s2374_s1] sm:$0xff] }
  0x16   : > { %675 = vmatpush.bf16.msra.mxu0 %v1662_v3  ;;  %1676 = vmatpush.bf16.msra.mxu3 %v1662_v3  ;;  %v1389_v8 = vld [vmem:[%s2015_s25 + $0x8] sm:$0xf]  ;;  %v1622_v9 = vld [vmem:[%s2015_s25 + $0x10] sm:$0xf0]  ;;  %v1401_v17 = vld [vmem:[%s2015_s25 + $0x20] sm:$0xf] }
  0x17   : > { %748 = vmatpush.bf16.msra.mxu1 %v1670_v4  ;;  %827 = vmatpush.bf16.msra.mxu2 %v2002_v5  ;;  %v1390_v10 = vor.u32 %v1622_v9, %v1389_v8  ;;  %v1666_v16 = vld [vmem:[%s2374_s1 + $0x50] sm:$0xff]  ;;  %v1625_v18 = vld [vmem:[%s2015_s25 + $0x28] sm:$0xf0]  ;;  %v1381_v23 = vld [vmem:[%s2015_s25] sm:$0xf] }
  0x18   : > { %v1665_v20 = vld [vmem:[%s2374_s1 + $0x48] sm:$0xff]  ;;  %v1402_v21 = vor.u32 %v1625_v18, %v1401_v17  ;;  %v1501_v25 = vld [vmem:[%s2015_s25 + $0xf0] sm:$0xf]  ;;  %v1651_v26 = vld [vmem:[%s2015_s25 + $0xf8] sm:$0xf0] }
  0x19   : > { %v1621_v24 = vld [vmem:[%s2015_s25 + $0x8] sm:$0xf0]  ;;  %v1664_v27 = vld [vmem:[%s2374_s1 + $0x40] sm:$0xff]  ;;  %v1383_v29 = vld [vmem:[%s2015_s25 + $0xc] sm:$0xf0]  ;;  %v1502_v31 = vor.u32 %v1651_v26, %v1501_v25 }
  0x1a   : > { %676 = vmatpush.bf16.msra.mxu0 %v1661_v6  ;;  %1677 = vmatpush.bf16.msra.mxu3 %v1661_v6  ;;  %v1620_v28 = vld [vmem:[%s2015_s25 + $0x4] sm:$0xf]  ;;  %v1382_v30 = vor.u32 %v1621_v24, %v1381_v23  ;;  %v1413_v33 = vld [vmem:[%s2015_s25 + $0x38] sm:$0xf]  ;;  %v1513_v38 = vld [vmem:[%s2015_s25 + $0x108] sm:$0xf] }
  0x1b   : > { %749 = vmatpush.bf16.msra.mxu1 %v1669_v7  ;;  %1595 = vmatmul.msk.bf16.vlgmr.msra.gmra.mxu2 %vm634_vm0, %v1390_v10  ;;  %v1386_v32 = vor.u32 %v1620_v28, %v1383_v29  ;;  %v1628_v34 = vld [vmem:[%s2015_s25 + $0x40] sm:$0xf0]  ;;  %v1393_v36 = vld [vmem:[%s2015_s25 + $0x18] sm:$0xf]  ;;  %v1654_v39 = vld [vmem:[%s2015_s25 + $0x110] sm:$0xf0] }
  0x1c   : > { %v1414_v35 = vor.u32 %v1628_v34, %v1413_v33  ;;  %v1624_v37 = vld [vmem:[%s2015_s25 + $0x20] sm:$0xf0]  ;;  %v1623_v40 = vld [vmem:[%s2015_s25 + $0x1c] sm:$0xf]  ;;  %v1395_v41 = vld [vmem:[%s2015_s25 + $0x24] sm:$0xf0]  ;;  %v1514_v43 = vor.u32 %v1654_v39, %v1513_v38 }
  0x1d   : > { %v1394_v42 = vor.u32 %v1624_v37, %v1393_v36  ;;  %v1398_v44 = vor.u32 %v1623_v40, %v1395_v41  ;;  %v1425_v45 = vld [vmem:[%s2015_s25 + $0x50] sm:$0xf]  ;;  %v1631_v46 = vld [vmem:[%s2015_s25 + $0x58] sm:$0xf0]  ;;  %v294_v47 = vld [vmem:[%s2015_s25 + $0x120] sm:$0xff] }
  0x1e   : > { %677 = vmatpush.bf16.msra.mxu0 %v1660_v11  ;;  %1678 = vmatpush.bf16.msra.mxu3 %v1660_v11  ;;  %v1426_v48 = vor.u32 %v1631_v46, %v1425_v45  ;;  %v458_v49 = vunpack.c.l.b16 %v294_v47  ;;  %v1405_v50 = vld [vmem:[%s2015_s25 + $0x30] sm:$0xf]  ;;  %v1627_v51 = vld [vmem:[%s2015_s25 + $0x38] sm:$0xf0]  ;;  %v1626_v52 = vld [vmem:[%s2015_s25 + $0x34] sm:$0xf] }
  0x1f   : > { %750 = vmatpush.bf16.msra.mxu1 %v1668_v12  ;;  %v1407_v53 = vld [vmem:[%s2015_s25 + $0x3c] sm:$0xf0]  ;;  %v1406_v54 = vor.u32 %v1627_v51, %v1405_v50  ;;  %v1437_v57 = vld [vmem:[%s2015_s25 + $0x68] sm:$0xf]  ;;  %v1634_v58 = vld [vmem:[%s2015_s25 + $0x70] sm:$0xf0] }
  0x20   : > { %v497_v55 = vpack.c.b16 %v458_v49, %v458_v49  ;;  %v1410_v56 = vor.u32 %v1626_v52, %v1407_v53  ;;  %v1438_v59 = vor.u32 %v1634_v58, %v1437_v57  ;;  %v1417_v60 = vld [vmem:[%s2015_s25 + $0x48] sm:$0xf]  ;;  %v1630_v61 = vld [vmem:[%s2015_s25 + $0x50] sm:$0xf0]  ;;  %v1503_v63 = vld [vmem:[%s2015_s25 + $0xfc] sm:$0xf0] }
  0x21   : > { %v1650_v62 = vld [vmem:[%s2015_s25 + $0xf4] sm:$0xf]  ;;  %v1629_v0 = vld [vmem:[%s2015_s25 + $0x4c] sm:$0xf]  ;;  %v1429_v8 = vld [vmem:[%s2015_s25 + $0x60] sm:$0xf] }
  0x22   : > { %678 = vmatpush.bf16.msra.mxu0 %v1659_v13  ;;  %1679 = vmatpush.bf16.msra.mxu3 %v1659_v13  ;;  %v1506_v3 = vor.u32 %v1650_v62, %v1503_v63  ;;  %v1637_v6 = vld [vmem:[%s2015_s25 + $0x88] sm:$0xf0]  ;;  %v1515_v11 = vld [vmem:[%s2015_s25 + $0x114] sm:$0xf0]  ;;  %v1431_v13 = vld [vmem:[%s2015_s25 + $0x6c] sm:$0xf0] }
  0x23   : > { %751 = vmatpush.bf16.msra.mxu1 %v1667_v14  ;;  %v1633_v9 = vld [vmem:[%s2015_s25 + $0x68] sm:$0xf0]  ;;  %v1461_v17 = vld [vmem:[%s2015_s25 + $0x98] sm:$0xf]  ;;  %v1640_v18 = vld [vmem:[%s2015_s25 + $0xa0] sm:$0xf0] }
  0x24   : > { %v1653_v10 = vld [vmem:[%s2015_s25 + $0x10c] sm:$0xf]  ;;  %v1635_v23 = vld [vmem:[%s2015_s25 + $0x7c] sm:$0xf]  ;;  %v1443_v24 = vld [vmem:[%s2015_s25 + $0x84] sm:$0xf0] }
  0x25   : > { %v1473_v28 = vld [vmem:[%s2015_s25 + $0xb0] sm:$0xf]  ;;  %v1643_v29 = vld [vmem:[%s2015_s25 + $0xb8] sm:$0xf0]  ;;  %v1455_v36 = vld [vmem:[%s2015_s25 + $0x9c] sm:$0xf0] }
  0x26   : > { %679 = vmatpush.bf16.msra.mxu0 %v1658_v15  ;;  %1680 = vmatpush.bf16.msra.mxu3 %v1658_v15  ;;  %v1518_v15 = vor.u32 %v1653_v10, %v1515_v11  ;;  %v1521_v33 = vld [vmem:[%s2015_s25 + $0x110] sm:$0xf]  ;;  %v1655_v34 = vld [vmem:[%s2015_s25 + $0x118] sm:$0xf0]  ;;  %v1485_v40 = vld [vmem:[%s2015_s25 + $0xc8] sm:$0xf] }
  0x27   : > { %752 = vmatpush.bf16.msra.mxu1 %v1666_v16  ;;  %v1522_v38 = vor.u32 %v1655_v34, %v1521_v33  ;;  %v1646_v41 = vld [vmem:[%s2015_s25 + $0xd0] sm:$0xf0]  ;;  %v1465_v45 = vld [vmem:[%s2015_s25 + $0xa8] sm:$0xf]  ;;  %v1497_v53 = vld [vmem:[%s2015_s25 + $0xe0] sm:$0xf] }
  0x28   : > { %v1642_v46 = vld [vmem:[%s2015_s25 + $0xb0] sm:$0xf0]  ;;  %v1477_v57 = vld [vmem:[%s2015_s25 + $0xc0] sm:$0xf]  ;;  %v1645_v58 = vld [vmem:[%s2015_s25 + $0xc8] sm:$0xf0] }
  0x29   : > { %v1466_v49 = vor.u32 %v1642_v46, %v1465_v45  ;;  %v1478_v62 = vor.u32 %v1645_v58, %v1477_v57 }
  0x2a   : > { %680 = vmatpush.bf16.msra.mxu0 %v1657_v19  ;;  %1681 = vmatpush.bf16.msra.mxu3 %v1657_v19  ;;  %v1462_v19 = vor.u32 %v1640_v18, %v1461_v17  ;;  %v1489_v18 = vld [vmem:[%s2015_s25 + $0xd8] sm:$0xf] }
  0x2b   : > { %753 = vmatpush.bf16.msra.mxu1 %v1665_v20  ;;  %1596 = vmatmul.msk.bf16.gmra.mxu2 %vm634_vm0, %v1402_v21  ;;  %v1441_v21 = vld [vmem:[%s2015_s25 + $0x78] sm:$0xf] }
  0x2e   : > { %681 = vmatpush.bf16.msra.mxu0 %v1656_v22  ;;  %1682 = vmatpush.bf16.msra.mxu3 %v1656_v22  ;;  %v1636_v22 = vld [vmem:[%s2015_s25 + $0x80] sm:$0xf0] }
  0x2f   : > { %754 = vmatpush.bf16.msra.mxu1 %v1664_v27  ;;  %v1442_v25 = vor.u32 %v1636_v22, %v1441_v21  ;;  %v1647_v21 = vld [vmem:[%s2015_s25 + $0xdc] sm:$0xf]  ;;  %v1491_v22 = vld [vmem:[%s2015_s25 + $0xe4] sm:$0xf0] }
  0x31   : > { %682 = vmatmul.bf16.vlgmr.msra.gmra.mxu0 %v1382_v30  ;;  %732 = vmatmul.bf16.vlgmr.msra.gmra.mxu3 %v1502_v31  ;;  %v1474_v30 = vor.u32 %v1643_v29, %v1473_v28  ;;  %v1453_v31 = vld [vmem:[%s2015_s25 + $0x90] sm:$0xf] }
  0x32   : > { %1683 = vmatpush.bf16.msrb.mxu3 %v1980_v1  ;;  %755 = vmatmul.bf16.vlgmr.msra.gmra.mxu1 %v1386_v32  ;;  %v1419_v1 = vld [vmem:[%s2015_s25 + $0x54] sm:$0xf0]  ;;  %v1639_v32 = vld [vmem:[%s2015_s25 + $0x98] sm:$0xf0] }
  0x33   : > { %v1454_v37 = vor.u32 %v1639_v32, %v1453_v31 }
  0x36   : > { %1684 = vmatpush.bf16.msrb.mxu3 %v1670_v4  ;;  %v1422_v4 = vor.u32 %v1629_v0, %v1419_v1 }
  0x3a   : > { %1685 = vmatpush.bf16.msrb.mxu3 %v1669_v7 }
  0x3b   : > { %1597 = vmatmul.msk.bf16.gmra.mxu2 %vm634_vm0, %v1414_v35  ;;  %v1638_v35 = vld [vmem:[%s2015_s25 + $0x94] sm:$0xf] }
  0x3c   : > { %v1458_v39 = vor.u32 %v1638_v35, %v1455_v36 }
  0x3e   : > { %1686 = vmatpush.bf16.msrb.mxu3 %v1668_v12  ;;  %v1632_v12 = vld [vmem:[%s2015_s25 + $0x64] sm:$0xf] }
  0x41   : > { %687 = vmatmul.bf16.gmra.mxu0 %v1394_v42  ;;  %737 = vmatmul.bf16.gmra.mxu3 %v1514_v43  ;;  %v295_v42 = vld [vmem:[%s2015_s25 + $0x128] sm:$0xf]  ;;  %v1486_v43 = vor.u32 %v1646_v41, %v1485_v40 }
  0x42   : > { %1687 = vmatpush.bf16.msrb.mxu3 %v1667_v14  ;;  %760 = vmatmul.bf16.gmra.mxu1 %v1398_v44  ;;  %v1430_v14 = vor.u32 %v1633_v9, %v1429_v8  ;;  %v460_v44 = vunpack.c.l.b16 %v295_v42  ;;  %v1652_v9 = vld [vmem:[%s2015_s25 + $0x100] sm:$0xf0] }
  0x44   : > { %v499_v50 = vpack.c.b16 %v460_v44, %v460_v44 }
  0x46   : > { %1688 = vmatpush.bf16.msrb.mxu3 %v1666_v16  ;;  %v1434_v16 = vor.u32 %v1632_v12, %v1431_v13 }
  0x4a   : > { %1689 = vmatpush.bf16.msrb.mxu3 %v1665_v20  ;;  %v459_v20 = vunpack.c.h.b16 %v294_v47  ;;  %v1641_v47 = vld [vmem:[%s2015_s25 + $0xac] sm:$0xf] }
  0x4b   : > { %1598 = vmatmul.msk.bf16.gmra.mxu2 %vm634_vm0, %v1426_v48  ;;  %v1467_v48 = vld [vmem:[%s2015_s25 + $0xb4] sm:$0xf0] }
  0x4c   : > { %v498_v26 = vpack.c.b16 %v459_v20, %v459_v20  ;;  %v1470_v51 = vor.u32 %v1641_v47, %v1467_v48 }
  0x4e   : > { %1690 = vmatpush.bf16.msrb.mxu3 %v1664_v27  ;;  %v1446_v27 = vor.u32 %v1635_v23, %v1443_v24 }
  0x51   : > { %692 = vmatmul.bf16.gmra.mxu0 %v1406_v54  ;;  %742 = vmatmul.bf16.gmra.mxu3 %v497_v55  ;;  %v1649_v54 = vld [vmem:[%s2015_s25 + $0xe8] sm:$0xf0] }
  0x52   : > { %1691 = vmatpush.bf16.msra.mxu3 %v1985_v2  ;;  %765 = vmatmul.bf16.gmra.mxu1 %v1410_v56  ;;  %v1418_v2 = vor.u32 %v1630_v61, %v1417_v60  ;;  %v1498_v56 = vor.u32 %v1649_v54, %v1497_v53  ;;  %v1644_v60 = vld [vmem:[%s2015_s25 + $0xc4] sm:$0xf]  ;;  %v1479_v61 = vld [vmem:[%s2015_s25 + $0xcc] sm:$0xf0] }
  0x53   : > { %v1482_v0 = vor.u32 %v1644_v60, %v1479_v61 }
  0x56   : > { %1692 = vmatpush.bf16.msra.mxu3 %v2002_v5  ;;  %v1449_v5 = vld [vmem:[%s2015_s25 + $0x80] sm:$0xf] }
  0x57   : > { %v1450_v7 = vor.u32 %v1637_v6, %v1449_v5 }
  0x5b   : > { %1599 = vmatmul.msk.bf16.gmra.mxu2 %vm634_vm0, %v1438_v59  ;;  %v2130_v59 = vld [vmem:[%s2375_s2] ss:$0 sm:$0xff] }
  0x61   : > { %697 = vmatmul.bf16.gmra.mxu0 %v1418_v2  ;;  %805 = vmatmul.bf16.vlgmr.msrb.gmra.mxu3 %v1506_v3 }
  0x62   : > { %770 = vmatmul.bf16.gmra.mxu1 %v1422_v4 }
  0x6b   : > { %1600 = vmatmul.msk.bf16.gmra.mxu2 %vm634_vm0, %v1450_v7  ;;  %v1509_v7 = vld [vmem:[%s2015_s25 + $0xf8] sm:$0xf] }
  0x71   : > { %702 = vmatmul.bf16.gmra.mxu0 %v1430_v14  ;;  %810 = vmatmul.bf16.gmra.mxu3 %v1518_v15 }
  0x72   : > { %775 = vmatmul.bf16.gmra.mxu1 %v1434_v16  ;;  %v1510_v16 = vor.u32 %v1652_v9, %v1509_v7 }
  0x7b   : > { %1601 = vmatmul.msk.bf16.gmra.mxu2 %vm634_vm0, %v1462_v19  ;;  %v1648_v19 = vld [vmem:[%s2015_s25 + $0xe0] sm:$0xf0]  ;;  %s1027_s25 = ssub.s32 (%p1963_p3), 49, %s1988_s29 }
  0x7c   : > { %p1028_p9 = scmp.lt.s32.totalorder (%p1963_p3), %s1027_s25, 25 }
  0x81   : > { %707 = vmatmul.bf16.gmra.mxu0 %v1442_v25  ;;  %815 = vmatmul.bf16.gmra.mxu3 %v498_v26  ;;  %v1490_v25 = vor.u32 %v1648_v19, %v1489_v18 }
  0x82   : > { %780 = vmatmul.bf16.gmra.mxu1 %v1446_v27  ;;  %v1494_v27 = vor.u32 %v1647_v21, %v1491_v22 }
  0x8b   : > { %1602 = vmatmul.msk.bf16.gmra.mxu2 %vm634_vm0, %v1474_v30 }
  0x91   : > { %712 = vmatmul.bf16.gmra.mxu0 %v1454_v37  ;;  %1606 = vmatmul.msk.bf16.vlgmr.msra.gmra.mxu3 %vm634_vm0, %v1522_v38 }
  0x92   : > { %785 = vmatmul.bf16.gmra.mxu1 %v1458_v39 }
  0x9b   : > { %1603 = vmatmul.msk.bf16.gmra.mxu2 %vm634_vm0, %v1486_v43 }
  0x9e   : > { %v829_v52 = vpop.f32.mrf.mxu2 }
  0xa1   : > { %717 = vmatmul.bf16.gmra.mxu0 %v1466_v49  ;;  %1607 = vmatmul.msk.bf16.gmra.mxu3 %vm634_vm0, %v499_v50 }
  0xa2   : > { %790 = vmatmul.bf16.gmra.mxu1 %v1470_v51 }
  0xa6   : > { %v831_v55 = vpop.f32.mrf.mxu2 }
  0xab   : > { %1604 = vmatmul.msk.bf16.gmra.mxu2 %vm634_vm0, %v1498_v56 }
  0xae   : > { %v683_v63 = vpop.f32.mrf.mxu0  ;;  %v834_v3 = vpop.f32.mrf.mxu2 }
  0xaf   : > { %v684_v1 = vadd.f32 %v2130_v59, %v683_v63  ;;  %v756_v2 = vpop.f32.mrf.mxu1 }
  0xb1   : > { %v757_v4 = vadd.f32 %v756_v2, %v684_v1  ;;  %722 = vmatmul.bf16.gmra.mxu0 %v1478_v62 }
  0xb2   : > { %795 = vmatmul.bf16.gmra.mxu1 %v1482_v0 }
  0xb3   : > { %v830_v5 = vadd.f32 %v829_v52, %v757_v4 }
  0xb4   : > { %v2137_v6 = vpop.f32.mrf.mxu3 }
  0xb5   : > { %vm893_vm1 = vcmp.ge.f32.partialorder %v830_v5, 0.0  ;;  %v918_v8 = vmul.f32 0.2, %v830_v5 }
  0xb6   : > { %v685_v10 = vpop.f32.mrf.mxu0  ;;  %v836_v14 = vpop.f32.mrf.mxu2 }
  0xb7   : > { %v943_v11 = vsel %vm893_vm1, %v830_v5, %v918_v8  ;;  %v686_v12 = vadd.f32 %v2130_v59, %v685_v10  ;;  %v758_v13 = vpop.f32.mrf.mxu1 }
  0xb8   : > { %v968_v15 = vpack.c.bf16 %v943_v11, %v943_v11 }
  0xb9   : > { %v759_v17 = vadd.f32 %v758_v13, %v686_v12  ;;  %v734_v12 = vadd.f32 %v2130_v59, %v2137_v6 }
  0xba   : > { %994 = vst.msk [vmem:[%s2142_s12] sm:$0xf] %vm993_vm2, %v968_v15 }
  0xbb   : > { %v832_v20 = vadd.f32 %v831_v55, %v759_v17  ;;  %1605 = vmatmul.msk.bf16.gmra.mxu2 %vm634_vm0, %v1510_v16 }
  0xbc   : > { %v2151_v23 = vpop.f32.mrf.mxu3 }
  0xbd   : > { %vm894_vm3 = vcmp.ge.f32.partialorder %v832_v20, 0.0  ;;  %v919_v24 = vmul.f32 0.2, %v832_v20  ;;  %v736_v6 = vadd.f32 %v2130_v59, %v2151_v23 }
  0xbe   : > { %v688_v26 = vpop.f32.mrf.mxu0  ;;  %v839_v31 = vpop.f32.mrf.mxu2 }
  0xbf   : > { %v944_v28 = vsel %vm894_vm3, %v832_v20, %v919_v24  ;;  %v689_v29 = vadd.f32 %v2130_v59, %v688_v26  ;;  %v761_v30 = vpop.f32.mrf.mxu1 }
  0xc0   : > { %v969_v32 = vpack.c.bf16 %v944_v28, %v944_v28 }
  0xc1   : > { %v762_v33 = vadd.f32 %v761_v30, %v689_v29  ;;  %727 = vmatmul.bf16.gmra.mxu0 %v1490_v25 }
  0xc2   : > { %995 = vst.msk [vmem:[%s2142_s12 + $0x4] sm:$0xf] %vm993_vm2, %v969_v32  ;;  %800 = vmatmul.bf16.gmra.mxu1 %v1494_v27 }
  0xc3   : > { %v835_v34 = vadd.f32 %v834_v3, %v762_v33 }
  0xc4   : > { %v2156_v35 = vpop.f32.mrf.mxu3 }
  0xc5   : > { %vm895_vm4 = vcmp.ge.f32.partialorder %v835_v34, 0.0  ;;  %v920_v36 = vmul.f32 0.2, %v835_v34 }
  0xc6   : > { %v690_v37 = vpop.f32.mrf.mxu0  ;;  %v841_v41 = vpop.f32.mrf.mxu2 }
  0xc7   : > { %v945_v38 = vsel %vm895_vm4, %v835_v34, %v920_v36  ;;  %v691_v39 = vadd.f32 %v2130_v59, %v690_v37  ;;  %v763_v40 = vpop.f32.mrf.mxu1 }
  0xc8   : > { %v970_v42 = vpack.c.bf16 %v945_v38, %v945_v38 }
  0xc9   : > { %v764_v43 = vadd.f32 %v763_v40, %v691_v39 }
  0xca   : > { %996 = vst.msk [vmem:[%s2142_s12 + $0x8] sm:$0xf] %vm993_vm2, %v970_v42 }
  0xcb   : > { %v837_v44 = vadd.f32 %v836_v14, %v764_v43 }
  0xcc   : > { %v2161_v45 = vpop.f32.mrf.mxu3 }
  0xcd   : > { %vm896_vm5 = vcmp.ge.f32.partialorder %v837_v44, 0.0  ;;  %v921_v46 = vmul.f32 0.2, %v837_v44 }
  0xce   : > { %v693_v47 = vpop.f32.mrf.mxu0  ;;  %v844_v51 = vpop.f32.mrf.mxu2 }
  0xcf   : > { %v946_v48 = vsel %vm896_vm5, %v837_v44, %v921_v46  ;;  %v694_v49 = vadd.f32 %v2130_v59, %v693_v47  ;;  %v766_v50 = vpop.f32.mrf.mxu1 }
  0xd0   : > { %v971_v52 = vpack.c.bf16 %v946_v48, %v946_v48 }
  0xd1   : > { %v767_v53 = vadd.f32 %v766_v50, %v694_v49 }
  0xd2   : > { %997 = vst.msk [vmem:[%s2142_s12 + $0xc] sm:$0xf] %vm993_vm2, %v971_v52 }
  0xd3   : > { %v840_v54 = vadd.f32 %v839_v31, %v767_v53 }
  0xd4   : > { %v2166_v55 = vpop.f32.mrf.mxu3 }
  0xd5   : > { %vm897_vm6 = vcmp.ge.f32.partialorder %v840_v54, 0.0  ;;  %v922_v56 = vmul.f32 0.2, %v840_v54 }
  0xd6   : > { %v695_v57 = vpop.f32.mrf.mxu0  ;;  %v846_v62 = vpop.f32.mrf.mxu2 }
  0xd7   : > { %v947_v58 = vsel %vm897_vm6, %v840_v54, %v922_v56  ;;  %v696_v60 = vadd.f32 %v2130_v59, %v695_v57  ;;  %v768_v61 = vpop.f32.mrf.mxu1 }
  0xd8   : > { %v972_v63 = vpack.c.bf16 %v947_v58, %v947_v58 }
  0xd9   : > { %v769_v0 = vadd.f32 %v768_v61, %v696_v60 }
  0xda   : > { %998 = vst.msk [vmem:[%s2142_s12 + $0x10] sm:$0xf] %vm993_vm2, %v972_v63 }
  0xdb   : > { %v842_v1 = vadd.f32 %v841_v41, %v769_v0 }
  0xdc   : > { %v745_v2 = vpop.f32.mrf.mxu3 }
  0xdd   : > { %vm898_vm7 = vcmp.ge.f32.partialorder %v842_v1, 0.0  ;;  %v923_v3 = vmul.f32 0.2, %v842_v1 }
  0xde   : > { %v698_v4 = vpop.f32.mrf.mxu0  ;;  %v849_v9 = vpop.f32.mrf.mxu2 }
  0xdf   : > { %v948_v5 = vsel %vm898_vm7, %v842_v1, %v923_v3  ;;  %v699_v7 = vadd.f32 %v2130_v59, %v698_v4  ;;  %v771_v8 = vpop.f32.mrf.mxu1 }
  0xe0   : > { %v973_v10 = vpack.c.bf16 %v948_v5, %v948_v5 }
  0xe1   : > { %v772_v11 = vadd.f32 %v771_v8, %v699_v7 }
  0xe2   : > { %999 = vst.msk [vmem:[%s2142_s12 + $0x14] sm:$0xf] %vm993_vm2, %v973_v10 }
  0xe3   : > { %v845_v13 = vadd.f32 %v844_v51, %v772_v11 }
  0xe4   : > { %v806_v14 = vpop.f32.mrf.mxu3 }
  0xe5   : > { %vm899_vm8 = vcmp.ge.f32.partialorder %v845_v13, 0.0  ;;  %v924_v15 = vmul.f32 0.2, %v845_v13  ;;  %v2176_v16 = vadd.f32 %v806_v14, %v734_v12 }
  0xe6   : > { %v700_v17 = vpop.f32.mrf.mxu0  ;;  %v851_v21 = vpop.f32.mrf.mxu2 }
  0xe7   : > { %v949_v18 = vsel %vm899_vm8, %v845_v13, %v924_v15  ;;  %v701_v19 = vadd.f32 %v2130_v59, %v700_v17  ;;  %v773_v20 = vpop.f32.mrf.mxu1  ;;  %v739_v15 = vadd.f32 %v2130_v59, %v2156_v35 }
  0xe8   : > { %v974_v22 = vpack.c.bf16 %v949_v18, %v949_v18 }
  0xe9   : > { %v774_v24 = vadd.f32 %v773_v20, %v701_v19 }
  0xea   : > { %1000 = vst.msk [vmem:[%s2142_s12 + $0x18] sm:$0xf] %vm993_vm2, %v974_v22 }
  0xeb   : > { %v847_v25 = vadd.f32 %v846_v62, %v774_v24 }
  0xec   : > { %v808_v26 = vpop.f32.mrf.mxu3 }
  0xed   : > { %vm900_vm9 = vcmp.ge.f32.partialorder %v847_v25, 0.0  ;;  %v925_v27 = vmul.f32 0.2, %v847_v25  ;;  %v2183_v28 = vadd.f32 %v808_v26, %v736_v6 }
  0xee   : > { %v703_v29 = vpop.f32.mrf.mxu0  ;;  %v854_v33 = vpop.f32.mrf.mxu2 }
  0xef   : > { %v950_v30 = vsel %vm900_vm9, %v847_v25, %v925_v27  ;;  %v704_v31 = vadd.f32 %v2130_v59, %v703_v29  ;;  %v776_v32 = vpop.f32.mrf.mxu1 }
  0xf0   : > { %v975_v34 = vpack.c.bf16 %v950_v30, %v950_v30  ;;  %v741_v30 = vadd.f32 %v2130_v59, %v2161_v45 }
  0xf1   : > { %v777_v36 = vadd.f32 %v776_v32, %v704_v31 }
  0xf2   : > { %1001 = vst.msk [vmem:[%s2142_s12 + $0x1c] sm:$0xf] %vm993_vm2, %v975_v34 }
  0xf3   : > { %v850_v37 = vadd.f32 %v849_v9, %v777_v36 }
  0xf4   : > { %v811_v38 = vpop.f32.mrf.mxu3 }
  0xf5   : > { %vm901_vm10 = vcmp.ge.f32.partialorder %v850_v37, 0.0  ;;  %v926_v23 = vmul.f32 0.2, %v850_v37  ;;  %v812_v18 = vadd.f32 %v811_v38, %v739_v15 }
  0xf6   : > { %v705_v39 = vpop.f32.mrf.mxu0  ;;  %v856_v43 = vpop.f32.mrf.mxu2 }
  0xf7   : > { %v951_v40 = vsel %vm901_vm10, %v850_v37, %v926_v23  ;;  %v706_v41 = vadd.f32 %v2130_v59, %v705_v39  ;;  %v778_v42 = vpop.f32.mrf.mxu1 }
  0xf8   : > { %v976_v44 = vpack.c.bf16 %v951_v40, %v951_v40 }
  0xf9   : > { %v779_v46 = vadd.f32 %v778_v42, %v706_v41 }
  0xfa   : > { %1002 = vst.msk [vmem:[%s2142_s12 + $0x20] sm:$0xf] %vm993_vm2, %v976_v44 }
  0xfb   : > { %v852_v47 = vadd.f32 %v851_v21, %v779_v46  ;;  %v744_v46 = vadd.f32 %v2130_v59, %v2166_v55 }
  0xfc   : > { %v813_v48 = vpop.f32.mrf.mxu3 }
  0xfd   : > { %vm902_vm11 = vcmp.ge.f32.partialorder %v852_v47, 0.0  ;;  %v927_v49 = vmul.f32 0.2, %v852_v47  ;;  %v814_v34 = vadd.f32 %v813_v48, %v741_v30 }
  0xfe   : > { %v708_v50 = vpop.f32.mrf.mxu0  ;;  %v859_v54 = vpop.f32.mrf.mxu2 }
  0xff   : > { %v952_v51 = vsel %vm902_vm11, %v852_v47, %v927_v49  ;;  %v709_v52 = vadd.f32 %v2130_v59, %v708_v50  ;;  %v781_v53 = vpop.f32.mrf.mxu1 }
 0x100   : > { %v977_v56 = vpack.c.bf16 %v952_v51, %v952_v51 }
 0x101   : > { %v782_v57 = vadd.f32 %v781_v53, %v709_v52 }
 0x102   : > { %1003 = vst.msk [vmem:[%s2142_s12 + $0x24] sm:$0xf] %vm993_vm2, %v977_v56 }
 0x103   : > { %v855_v58 = vadd.f32 %v854_v33, %v782_v57 }
 0x104   : > { %v2194_v60 = vpop.f32.mrf.mxu3 }
 0x105   : > { %vm903_vm12 = vcmp.ge.f32.partialorder %v855_v58, 0.0  ;;  %v928_v61 = vmul.f32 0.2, %v855_v58  ;;  %v817_v50 = vadd.f32 %v2194_v60, %v744_v46 }
 0x106   : > { %v710_v62 = vpop.f32.mrf.mxu0  ;;  %v861_v2 = vpop.f32.mrf.mxu2 }
 0x107   : > { %v953_v63 = vsel %vm903_vm12, %v855_v58, %v928_v61  ;;  %v711_v0 = vadd.f32 %v2130_v59, %v710_v62  ;;  %v783_v1 = vpop.f32.mrf.mxu1 }
 0x108   : > { %v978_v3 = vpack.c.bf16 %v953_v63, %v953_v63 }
 0x109   : > { %v784_v4 = vadd.f32 %v783_v1, %v711_v0 }
 0x10a   : > { %1004 = vst.msk [vmem:[%s2142_s12 + $0x28] sm:$0xf] %vm993_vm2, %v978_v3 }
 0x10b   : > { %v857_v5 = vadd.f32 %v856_v43, %v784_v4 }
 0x10c   : > { %v818_v7 = vpop.f32.mrf.mxu3 }
 0x10d   : > { %vm904_vm13 = vcmp.ge.f32.partialorder %v857_v5, 0.0  ;;  %v929_v8 = vmul.f32 0.2, %v857_v5 }
 0x10e   : > { %v713_v9 = vpop.f32.mrf.mxu0  ;;  %v864_v13 = vpop.f32.mrf.mxu2 }
 0x10f   : > { %v954_v10 = vsel %vm904_vm13, %v857_v5, %v929_v8  ;;  %v714_v11 = vadd.f32 %v2130_v59, %v713_v9  ;;  %v786_v12 = vpop.f32.mrf.mxu1 }
 0x110   : > { %v979_v14 = vpack.c.bf16 %v954_v10, %v954_v10 }
 0x111   : > { %v787_v17 = vadd.f32 %v786_v12, %v714_v11 }
 0x112   : > { %1005 = vst.msk [vmem:[%s2142_s12 + $0x2c] sm:$0xf] %vm993_vm2, %v979_v14 }
 0x113   : > { %v860_v19 = vadd.f32 %v859_v54, %v787_v17 }
 0x114   : > { %v884_v20 = vpop.f32.mrf.mxu3 }
 0x115   : > { %vm905_vm14 = vcmp.ge.f32.partialorder %v860_v19, 0.0  ;;  %v930_v21 = vmul.f32 0.2, %v860_v19  ;;  %v885_v22 = vadd.f32 %v884_v20, %v812_v18 }
 0x116   : > { %v715_v24 = vpop.f32.mrf.mxu0  ;;  %v866_v29 = vpop.f32.mrf.mxu2 }
 0x117   : > { %v955_v6 = vsel %vm905_vm14, %v860_v19, %v930_v21  ;;  %vm915_vm15 = vcmp.ge.f32.partialorder %v885_v22, 0.0  ;;  %v940_v25 = vmul.f32 0.2, %v885_v22  ;;  %v716_v26 = vadd.f32 %v2130_v59, %v715_v24  ;;  %v788_v27 = vpop.f32.mrf.mxu1 }
 0x118   : > { %v980_v35 = vpack.c.bf16 %v955_v6, %v955_v6 }
 0x119   : > { %v965_v31 = vsel %vm915_vm15, %v885_v22, %v940_v25  ;;  %v789_v32 = vadd.f32 %v788_v27, %v716_v26 }
 0x11a   : > { %1006 = vst.msk [vmem:[%s2142_s12 + $0x30] sm:$0xf] %vm993_vm2, %v980_v35  ;;  %v990_v33 = vpack.c.bf16 %v965_v31, %v965_v31 }
 0x11b   : > { %v862_v36 = vadd.f32 %v861_v2, %v789_v32 }
 0x11c   : > { %1016 = vst.msk [vmem:[%s2142_s12 + $0x58] sm:$0xf] %vm993_vm2, %v990_v33  ;;  %v886_v37 = vpop.f32.mrf.mxu3 }
 0x11d   : > { %vm906_vm0 = vcmp.ge.f32.partialorder %v862_v36, 0.0  ;;  %v931_v38 = vmul.f32 0.2, %v862_v36  ;;  %v887_v23 = vadd.f32 %v886_v37, %v814_v34 }
 0x11e   : > { %v718_v39 = vpop.f32.mrf.mxu0  ;;  %v869_v43 = vpop.f32.mrf.mxu2 }
 0x11f   : > { %v956_v40 = vsel %vm906_vm0, %v862_v36, %v931_v38  ;;  %vm916_vm1 = vcmp.ge.f32.partialorder %v887_v23, 0.0  ;;  %v941_v41 = vmul.f32 0.2, %v887_v23  ;;  %v719_v45 = vadd.f32 %v2130_v59, %v718_v39  ;;  %v791_v42 = vpop.f32.mrf.mxu1 }
 0x120   : > { %v981_v44 = vpack.c.bf16 %v956_v40, %v956_v40 }
 0x121   : > { %v966_v47 = vsel %vm916_vm1, %v887_v23, %v941_v41  ;;  %v792_v48 = vadd.f32 %v791_v42, %v719_v45 }
 0x122   : > { %1007 = vst.msk [vmem:[%s2142_s12 + $0x34] sm:$0xf] %vm993_vm2, %v981_v44  ;;  %v991_v49 = vpack.c.bf16 %v966_v47, %v966_v47 }
 0x123   : > { %v865_v51 = vadd.f32 %v864_v13, %v792_v48 }
 0x124   : > { %1017 = vst.msk [vmem:[%s2142_s12 + $0x5c] sm:$0xf] %vm993_vm2, %v991_v49  ;;  %v889_v52 = vpop.f32.mrf.mxu3 }
 0x125   : > { %vm907_vm3 = vcmp.ge.f32.partialorder %v865_v51, 0.0  ;;  %v932_v53 = vmul.f32 0.2, %v865_v51  ;;  %v890_v54 = vadd.f32 %v889_v52, %v817_v50 }
 0x126   : > { %v720_v56 = vpop.f32.mrf.mxu0  ;;  %v871_v62 = vpop.f32.mrf.mxu2 }
 0x127   : > { %v957_v57 = vsel %vm907_vm3, %v865_v51, %v932_v53  ;;  %vm917_vm4 = vcmp.ge.f32.partialorder %v890_v54, 0.0  ;;  %v942_v55 = vmul.f32 0.2, %v890_v54  ;;  %v721_v58 = vadd.f32 %v2130_v59, %v720_v56  ;;  %v793_v61 = vpop.f32.mrf.mxu1 }
 0x128   : > { %v982_v63 = vpack.c.bf16 %v957_v57, %v957_v57 }
 0x129   : > { %v967_v0 = vsel %vm917_vm4, %v890_v54, %v942_v55  ;;  %v794_v60 = vadd.f32 %v793_v61, %v721_v58 }
 0x12a   : > { %1008 = vst.msk [vmem:[%s2142_s12 + $0x38] sm:$0xf] %vm993_vm2, %v982_v63  ;;  %v992_v1 = vpack.c.bf16 %v967_v0, %v967_v0 }
 0x12b   : > { %v867_v2 = vadd.f32 %v866_v29, %v794_v60 }
 0x12c   : > { %1018 = vst.msk [vmem:[%s2142_s12 + $0x60] sm:$0xf] %vm993_vm2, %v992_v1  ;;  %v891_v3 = vpop.f32.mrf.mxu3 }
 0x12d   : > { %vm908_vm5 = vcmp.ge.f32.partialorder %v867_v2, 0.0  ;;  %v933_v4 = vmul.f32 0.2, %v867_v2 }
 0x12e   : > { %v723_v5 = vpop.f32.mrf.mxu0  ;;  %v874_v10 = vpop.f32.mrf.mxu2 }
 0x12f   : > { %v958_v7 = vsel %vm908_vm5, %v867_v2, %v933_v4  ;;  %v724_v8 = vadd.f32 %v2130_v59, %v723_v5  ;;  %v796_v9 = vpop.f32.mrf.mxu1 }
 0x130   : > { %v983_v11 = vpack.c.bf16 %v958_v7, %v958_v7 }
 0x131   : > { %v797_v12 = vadd.f32 %v796_v9, %v724_v8 }
 0x132   : > { %1009 = vst.msk [vmem:[%s2142_s12 + $0x3c] sm:$0xf] %vm993_vm2, %v983_v11 }
 0x133   : > { %v870_v13 = vadd.f32 %v869_v43, %v797_v12 }
 0x135   : > { %vm909_vm6 = vcmp.ge.f32.partialorder %v870_v13, 0.0  ;;  %v934_v14 = vmul.f32 0.2, %v870_v13 }
 0x136   : > { %v725_v15 = vpop.f32.mrf.mxu0  ;;  %v876_v20 = vpop.f32.mrf.mxu2 }
 0x137   : > { %v959_v17 = vsel %vm909_vm6, %v870_v13, %v934_v14  ;;  %v726_v18 = vadd.f32 %v2130_v59, %v725_v15  ;;  %v798_v19 = vpop.f32.mrf.mxu1 }
 0x138   : > { %v984_v21 = vpack.c.bf16 %v959_v17, %v959_v17 }
 0x139   : > { %v799_v22 = vadd.f32 %v798_v19, %v726_v18 }
 0x13a   : > { %1010 = vst.msk [vmem:[%s2142_s12 + $0x40] sm:$0xf] %vm993_vm2, %v984_v21 }
 0x13b   : > { %v872_v24 = vadd.f32 %v871_v62, %v799_v22 }
 0x13d   : > { %vm910_vm7 = vcmp.ge.f32.partialorder %v872_v24, 0.0  ;;  %v935_v6 = vmul.f32 0.2, %v872_v24 }
 0x13e   : > { %v728_v25 = vpop.f32.mrf.mxu0  ;;  %v879_v35 = vpop.f32.mrf.mxu2 }
 0x13f   : > { %v960_v26 = vsel %vm910_vm7, %v872_v24, %v935_v6  ;;  %v729_v27 = vadd.f32 %v2130_v59, %v728_v25  ;;  %v801_v29 = vpop.f32.mrf.mxu1  ;;  %v880_v31 = vadd.f32 %v879_v35, %v2176_v16 }
 0x140   : > { %v985_v30 = vpack.c.bf16 %v960_v26, %v960_v26 }
 0x141   : > { %v802_v32 = vadd.f32 %v801_v29, %v729_v27  ;;  %vm913_vm8 = vcmp.ge.f32.partialorder %v880_v31, 0.0  ;;  %v938_v33 = vmul.f32 0.2, %v880_v31 }
 0x142   : > { %1011 = vst.msk [vmem:[%s2142_s12 + $0x44] sm:$0xf] %vm993_vm2, %v985_v30 }
 0x143   : > { %v875_v34 = vadd.f32 %v874_v10, %v802_v32  ;;  %v963_v36 = vsel %vm913_vm8, %v880_v31, %v938_v33 }
 0x144   : > { %v988_v38 = vpack.c.bf16 %v963_v36, %v963_v36 }
 0x145   : > { %vm911_vm9 = vcmp.ge.f32.partialorder %v875_v34, 0.0  ;;  %v936_v37 = vmul.f32 0.2, %v875_v34 }
 0x146   : > { %v730_v23 = vpop.f32.mrf.mxu0  ;;  %1014 = vst.msk [vmem:[%s2142_s12 + $0x50] sm:$0xf] %vm993_vm2, %v988_v38  ;;  %v881_v41 = vpop.f32.mrf.mxu2 }
 0x147   : > { %v961_v39 = vsel %vm911_vm9, %v875_v34, %v936_v37  ;;  %v731_v40 = vadd.f32 %v2130_v59, %v730_v23  ;;  %v803_v45 = vpop.f32.mrf.mxu1  ;;  %v882_v42 = vadd.f32 %v881_v41, %v2183_v28 }
 0x148   : > { %v986_v16 = vpack.c.bf16 %v961_v39, %v961_v39 }
 0x149   : > { %v804_v43 = vadd.f32 %v803_v45, %v731_v40  ;;  %vm914_vm10 = vcmp.ge.f32.partialorder %v882_v42, 0.0  ;;  %v939_v44 = vmul.f32 0.2, %v882_v42 }
 0x14a   : > { %1012 = vst.msk [vmem:[%s2142_s12 + $0x48] sm:$0xf] %vm993_vm2, %v986_v16 }
 0x14b   : > { %v877_v46 = vadd.f32 %v876_v20, %v804_v43  ;;  %v964_v47 = vsel %vm914_vm10, %v882_v42, %v939_v44 }
 0x14c   : > { %v989_v49 = vpack.c.bf16 %v964_v47, %v964_v47 }
 0x14d   : > { %vm912_vm11 = vcmp.ge.f32.partialorder %v877_v46, 0.0  ;;  %v937_v48 = vmul.f32 0.2, %v877_v46 }
 0x14e   : > { %1015 = vst.msk [vmem:[%s2142_s12 + $0x54] sm:$0xf] %vm993_vm2, %v989_v49  ;;  %1025 = sbr.rel (!%p1963_p3) target bundleno = 411 (0x19b), region = 36 }
 0x14f   : > { %v962_v50 = vsel %vm912_vm11, %v877_v46, %v937_v48 }
 0x150   : > { %v987_v59 = vpack.c.bf16 %v962_v50, %v962_v50 }
 0x152   : > { %1013 = vst.msk [vmem:[%s2142_s12 + $0x4c] sm:$0xf] %vm993_vm2, %v987_v59 }
 0x153   : > { %s2390_s25 = smov (!%p1028_p9, %s1027_s25), 25 }
 0x154   : > { %s1608_s11 = sshll.u32 %s2390_s25, 2 }
 0x155   : > { %p1611_p10 = scmp.eq.s32.totalorder %s1608_s11, 0 }
 0x156   : > { %1801 = sdivrem.u32 (!%p1611_p10), %s2390_s25, 25 }
 0x157   : > { %1037 = sbr.rel (%p1611_p10) target bundleno = 411 (0x19b), region = 40 }
 0x15f   : > { %s2257_s20 = spop.drf %1801 }
 0x160   : > { %s1803_s17 = spop.drf %1801  ;;  %p1612_p11 = scmp.le.s32.totalorder %s2257_s20, 0 }
 0x161   : > { %s2378_s14 = smov (!%p1612_p11), %s2251_s10  ;;  %s2379_s29 = smov (!%p1612_p11), %s2142_s12 }
 0x162   : > { %1301 = sbr.rel (%p1612_p11) target bundleno = 385 (0x181), region = 118  ;;  %s2266_s19 = smov (!%p1612_p11), 0  }
 0x163   : > { %s2268_s21 = smov (!%p1612_p11), 0  }
 0x167 LB: >> { %v1055_v28 = vld [vmem:[%s1885_s29] sm:$0xf]  ;;  %v1057_v51 = vld [vmem:[%s1885_s29 + $0x4] sm:$0xf]  ;;  %v1059_v52 = vld [vmem:[%s1885_s29 + $0x8] sm:$0xf]  ;;  %s1893_s21 = sphi %s2268_s21, %s1049_s21   ;;  %s1889_s19 = sphi %s2266_s19, %s2382_s19   ;;  %s1885_s29 = sphi %s2379_s29, %s2381_s29   ;;  %s1881_s14 = sphi %s2378_s14, %s2380_s14  }
 0x168   : >> { %1056 = vst [vmem:[%s1881_s14] sm:$0xf] %v1055_v28  ;;  %v1061_v53 = vld [vmem:[%s1885_s29 + $0xc] sm:$0xf]  ;;  %v1063_v54 = vld [vmem:[%s1885_s29 + $0x10] sm:$0xf]  ;;  %s1105_s23 = sadd.s32 1, %s1889_s19 }
 0x169   : >> { %1058 = vst [vmem:[%s1881_s14 + $0x4] sm:$0xf] %v1057_v51  ;;  %v1065_v56 = vld [vmem:[%s1885_s29 + $0x14] sm:$0xf]  ;;  %v1067_v57 = vld [vmem:[%s1885_s29 + $0x18] sm:$0xf]  ;;  %p1106_p12 = scmp.ge.s32.totalorder %s1105_s23, %s2257_s20 }
 0x16a   : >> { %1060 = vst [vmem:[%s1881_s14 + $0x8] sm:$0xf] %v1059_v52  ;;  %v1069_v55 = vld [vmem:[%s1885_s29 + $0x1c] sm:$0xf]  ;;  %v1071_v58 = vld [vmem:[%s1885_s29 + $0x20] sm:$0xf] }
 0x16b   : >> { %1062 = vst [vmem:[%s1881_s14 + $0xc] sm:$0xf] %v1061_v53  ;;  %v1073_v61 = vld [vmem:[%s1885_s29 + $0x24] sm:$0xf]  ;;  %v1075_v62 = vld [vmem:[%s1885_s29 + $0x28] sm:$0xf] }
 0x16c   : >> { %1064 = vst [vmem:[%s1881_s14 + $0x10] sm:$0xf] %v1063_v54  ;;  %v1077_v63 = vld [vmem:[%s1885_s29 + $0x2c] sm:$0xf]  ;;  %v1079_v0 = vld [vmem:[%s1885_s29 + $0x30] sm:$0xf] }
 0x16d   : >> { %1066 = vst [vmem:[%s1881_s14 + $0x14] sm:$0xf] %v1065_v56  ;;  %v1081_v60 = vld [vmem:[%s1885_s29 + $0x34] sm:$0xf]  ;;  %v1083_v1 = vld [vmem:[%s1885_s29 + $0x38] sm:$0xf] }
 0x16e   : >> { %1068 = vst [vmem:[%s1881_s14 + $0x18] sm:$0xf] %v1067_v57  ;;  %s2392_s23 = smov (%p1106_p12, %s1105_s23), 0  ;;  %v1085_v2 = vld [vmem:[%s1885_s29 + $0x3c] sm:$0xf]  ;;  %s1049_s21 = sadd.s32 1, %s1893_s21  }
 0x16f   : >> { %1070 = vst [vmem:[%s1881_s14 + $0x1c] sm:$0xf] %v1069_v55  ;;  %v1087_v3 = vld [vmem:[%s1885_s29 + $0x40] sm:$0xf]  ;;  %s1108_s24 = smul.u32 100, %s2392_s23  ;;  %p1048_p13 = scmp.ge.s32.totalorder %s1049_s21, %s2257_s20 }
 0x170   : >> { %1072 = vst [vmem:[%s1881_s14 + $0x20] sm:$0xf] %v1071_v58  ;;  %v1089_v4 = vld [vmem:[%s1885_s29 + $0x44] sm:$0xf]  ;;  %v1091_v5 = vld [vmem:[%s1885_s29 + $0x48] sm:$0xf]  ;;  %s2382_s19 = smov %s2392_s23 }
 0x171   : >> { %1074 = vst [vmem:[%s1881_s14 + $0x24] sm:$0xf] %v1073_v61  ;;  %s1110_s26 = scalar_lea.vmem %s2142_s12, %s1108_s24 [#allocation2]   ;;  %s1111_s27 = scalar_lea.vmem %s2251_s10, %s1108_s24   ;;  %v1093_v7 = vld [vmem:[%s1885_s29 + $0x4c] sm:$0xf]  ;;  %v1095_v8 = vld [vmem:[%s1885_s29 + $0x50] sm:$0xf] }
 0x172   : >> { %1076 = vst [vmem:[%s1881_s14 + $0x28] sm:$0xf] %v1075_v62  ;;  %v1097_v9 = vld [vmem:[%s1885_s29 + $0x54] sm:$0xf]  ;;  %v1099_v10 = vld [vmem:[%s1885_s29 + $0x58] sm:$0xf] }
 0x173   : >> { %1078 = vst [vmem:[%s1881_s14 + $0x2c] sm:$0xf] %v1077_v63  ;;  %v1101_v11 = vld [vmem:[%s1885_s29 + $0x5c] sm:$0xf]  ;;  %v1103_v12 = vld [vmem:[%s1885_s29 + $0x60] sm:$0xf]  ;;  %s2381_s29 = smov %s1110_s26 }
 0x174   : >> { %1080 = vst [vmem:[%s1881_s14 + $0x30] sm:$0xf] %v1079_v0 }
 0x175   : >> { %1082 = vst [vmem:[%s1881_s14 + $0x34] sm:$0xf] %v1081_v60 }
 0x176   : >> { %1084 = vst [vmem:[%s1881_s14 + $0x38] sm:$0xf] %v1083_v1 }
 0x177   : >> { %1086 = vst [vmem:[%s1881_s14 + $0x3c] sm:$0xf] %v1085_v2 }
 0x178   : >> { %1088 = vst [vmem:[%s1881_s14 + $0x40] sm:$0xf] %v1087_v3 }
 0x179   : >> { %1090 = vst [vmem:[%s1881_s14 + $0x44] sm:$0xf] %v1089_v4 }
 0x17a   : >> { %1092 = vst [vmem:[%s1881_s14 + $0x48] sm:$0xf] %v1091_v5 }
 0x17b   : >> { %1094 = vst [vmem:[%s1881_s14 + $0x4c] sm:$0xf] %v1093_v7 }
 0x17c   : >> { %1096 = vst [vmem:[%s1881_s14 + $0x50] sm:$0xf] %v1095_v8  ;;  %1051 = sbr.rel (!%p1048_p13) target bundleno = 359 (0x167), region = 124 }
 0x17d   : >> { %1098 = vst [vmem:[%s1881_s14 + $0x54] sm:$0xf] %v1097_v9 }
 0x17e   : >> { %1100 = vst [vmem:[%s1881_s14 + $0x58] sm:$0xf] %v1099_v10 }
 0x17f   : >> { %1102 = vst [vmem:[%s1881_s14 + $0x5c] sm:$0xf] %v1101_v11 }
 0x180   : >> { %1104 = vst [vmem:[%s1881_s14 + $0x60] sm:$0xf] %v1103_v12  ;;  %s2380_s14 = smov %s1111_s27 }
 0x181 PF: > { %1804 = sdivrem.u32 %s2390_s25, 25 }
 0x182   : > { %s1613_s28 = smul.u32 100, %s2257_s20 }
 0x184   : > { %s2353_s30 = scalar_lea.vmem %s2142_s12, %s1613_s28 [#allocation2]   ;;  %s1118_s4 = scalar_lea.vmem %s2251_s10, %s1613_s28  }
 0x18a   : > { %s1805_s5 = spop.drf %1804 }
 0x18b   : > { %s1806_s6 = spop.drf %1804 }
 0x18c   : > { %p1615_p0 = scmp.le.s32.totalorder %s1806_s6, 0 }
 0x18d   : > { %s1895_s7 = smov (!%p1615_p0), %s1118_s4   ;;  %s1899_s8 = smov (!%p1615_p0), %s2353_s30  }
 0x18e   : > { %1315 = sbr.rel (%p1615_p0) target bundleno = 411 (0x19b), region = 129  ;;  %s1903_s9 = smov (!%p1615_p0), 0  }
 0x18f   : > { %s1907_s11 = smov (!%p1615_p0), 0  }
 0x193 LB: >> { %v1128_v13 = vld [vmem:[%s1901_s8] sm:$0xf]  ;;  %s1130_s12 = sadd.s32 1, %s1905_s9  ;;  %s1122_s11 = sadd.s32 1, %s1909_s11   ;;  %s1909_s11 = sphi %s1907_s11, %s1122_s11   ;;  %s1905_s9 = sphi %s1903_s9, %s1904_s9   ;;  %s1901_s8 = sphi %s1899_s8, %s1135_s8   ;;  %s1897_s7 = sphi %s1895_s7, %s1136_s7  }
 0x194   : >> { %1129 = vst [vmem:[%s1897_s7] sm:$0xf] %v1128_v13  ;;  %p1131_p1 = scmp.ge.s32.totalorder %s1130_s12, %s1806_s6  ;;  %p1121_p2 = scmp.ge.s32.totalorder %s1122_s11, %s1806_s6 }
 0x196   : >> { %s2394_s12 = smov (%p1131_p1, %s1130_s12), 0  ;;  %1124 = sbr.rel (!%p1121_p2) target bundleno = 403 (0x193), region = 135 }
 0x197   : >> { %s1616_s25 = sshll.u32 %s2394_s12, 2  ;;  %s1904_s9 = smov %s2394_s12  }
 0x198   : >> { %s1135_s8 = scalar_lea.vmem %s2353_s30, %s1616_s25 [#allocation2]   ;;  %s1136_s7 = scalar_lea.vmem %s1118_s4, %s1616_s25  }
 0x19b PF: > { %s13_s16 = sadd.s32 1, %s1877_s16   ;;  %s2383_s12 = smov %s1865_s13 }
 0x19c   : > { %p10_p3 = scmp.ge.s32.totalorder %s13_s16, 4   ;;  %s2384_s13 = smov %s1972_s22 }
 0x19d   : > { %s2385_s14 = smov %s1873_s15  ;;  %s2386_s15 = smov %s2388_s18 }
 0x19e   :  { %12 = sbr.rel (!%p10_p3) target bundleno = 3 (0x3), region = 146 }

// kernel: discriminator_forward.9
= control target key start
LH: loop header
LB: loop body
LE: loop exit
PB: predicated region body
PF: predicated region fallthrough
CT: control target
= control target key end

     0   :  { %s2659_s12 = smov 0   ;;  %s2661_s13 = smov 0   ;;  %s3216_s0 = inlined_call_operand.vmem [shape: bf16[392,576], index: 0, kind: input, shape index: {}]   ;;  %s3217_s1 = inlined_call_operand.vmem [shape: bf16[576,128], index: 1, kind: input, shape index: {}]   ;;  %s3218_s2 = inlined_call_operand.vmem [shape: f32[1,128], index: 2, kind: input, shape index: {}]   ;;  %s3219_s3 = inlined_call_operand.vmem [shape: bf16[392,128], index: 3, kind: output, shape index: {}]  }
   0x1   :  { %s2663_s14 = smov 0   ;;  %s2665_s15 = smov 0  }
   0x2   :  { %s2667_s16 = smov 0  }
   0x3 LB: > { %s1812_s17 = sadd.s32 4294967295, %s2605_s16   ;;  %s25_s18 = sadd.s32 1, %s2601_s15  ;;  %s2605_s16 = sphi %s2667_s16, %s13_s16   ;;  %s2601_s15 = sphi %s2665_s15, %s3229_s15   ;;  %s2597_s14 = sphi %s2663_s14, %s3228_s14   ;;  %s2593_s13 = sphi %s2661_s13, %s3227_s13   ;;  %s2589_s12 = sphi %s2659_s12, %s3226_s12  }
   0x4   : > { %p27_p0 = scmp.ge.s32.totalorder %s25_s18, 2  ;;  %s112_s19 = sadd.s32 1, %s2593_s13 }
   0x5   : > { %p122_p1 = scmp.ne.s32.totalorder %s2593_s13, %s2589_s12  ;;  %p123_p2 = scmp.eq.s32.totalorder %s1812_s17, 1 }
   0x6   : > { %s3231_s18 = smov (%p27_p0, %s25_s18), 0  ;;  %p1818_p4 = scmp.ge.s32.totalorder %s2605_s16, 1 }
   0x7   : > { %p2691_p3 = por %p123_p2, %p122_p1  ;;  %s107_s21 = ssub.s32 %s2601_s15, %s3231_s18 }
   0x8   : > { %p180_p5 = scmp.lt.s32.totalorder %s2605_s16, 3  ;;  %p110_p6 = scmp.eq.s32.totalorder %s107_s21, 0 }
   0xa   : > { %p181_p7 = pnand %p1818_p4, %p180_p5 }
   0xb   : > { %s2700_s22 = scalar_select %p110_p6, %s2593_s13, %s112_s19  }
   0xc   : > { %184 = sbr.rel (%p181_p7) target bundleno = 517 (0x205), region = 32 }
   0xd   : > { %s2712_s29 = smul.u32 (!%p181_p7), 25, %s2597_s14 }
   0xf   : > { %p222_p8 = scmp.lt.s32.totalorder (!%p181_p7), %s2712_s29, 48 }
  0x11   : > { %v2296_v0 = vld [vmem:[%s3217_s1 + $0x38] sm:$0xff]  ;;  %v2295_v1 = vld [vmem:[%s3217_s1 + $0x30] sm:$0xff]  ;;  %v2294_v2 = vld [vmem:[%s3217_s1 + $0x28] sm:$0xff]  ;;  %s223_s7 = scalar_select %p222_p8, %s2712_s29, 48  ;;  %vm930_vm0 = vcmask 523264  }
  0x12   : > { %970 = vmatpush.bf16.msra.mxu0 %v2296_v0  ;;  %2397 = vmatpush.bf16.msra.mxu1 %v2296_v0  ;;  %v2293_v3 = vld [vmem:[%s3217_s1 + $0x20] sm:$0xff]  ;;  %v2292_v4 = vld [vmem:[%s3217_s1 + $0x18] sm:$0xff]  ;;  %v2291_v5 = vld [vmem:[%s3217_s1 + $0x10] sm:$0xff]  ;;  %s2325_s9 = smul.u32 (%p2691_p3), 100, %s2597_s14 }
  0x13   : > { %2399 = vmatpush.bf16.msra.mxu3 %v2296_v0  ;;  %2398 = vmatpush.bf16.msra.mxu2 %v2296_v0  ;;  %s2422_s10 = smul.u32 20, %s223_s7  ;;  %v2290_v6 = vld [vmem:[%s3217_s1 + $0x8] sm:$0xff]  ;;  %v2289_v7 = vld [vmem:[%s3217_s1] sm:$0xff]  ;;  %v2304_v12 = vld [vmem:[%s3217_s1 + $0x78] sm:$0xff]  ;;  %s213_s7 = sand.u32 1, %s2589_s12  }
  0x14   : > { %v2324_v15 = vld [vmem:[%s3217_s1 + $0x118] sm:$0xff]  ;;  %v2303_v22 = vld [vmem:[%s3217_s1 + $0x70] sm:$0xff]  ;;  %v2302_v27 = vld [vmem:[%s3217_s1 + $0x68] sm:$0xff]  ;;  %s2421_s8 = smul.u32 100, %s213_s7  ;;  %s3094_s17 = scalar_lea.vmem (%p2691_p3), %s3219_s3, %s2325_s9  }
  0x15   : > { %s2731_s23 = scalar_lea.vmem %s3216_s0, %s2422_s10  ;;  %v2320_v16 = vld [vmem:[%s3217_s1 + $0xf8] sm:$0xff]  ;;  %v2319_v24 = vld [vmem:[%s3217_s1 + $0xf0] sm:$0xff]  ;;  %v2318_v29 = vld [vmem:[%s3217_s1 + $0xe8] sm:$0xff] }
  0x16   : > { %971 = vmatpush.bf16.msra.mxu0 %v2295_v1  ;;  %2400 = vmatpush.bf16.msra.mxu1 %v2295_v1  ;;  %v1822_v8 = vld [vmem:[%s2731_s23] sm:$0xf]  ;;  %v2231_v9 = vld [vmem:[%s2731_s23 + $0x10] sm:$0xf0]  ;;  %v2022_v13 = vld [vmem:[%s2731_s23 + $0x190] sm:$0xf] }
  0x17   : > { %2402 = vmatpush.bf16.msra.mxu3 %v2295_v1  ;;  %2401 = vmatpush.bf16.msra.mxu2 %v2295_v1  ;;  %v1902_v10 = vld [vmem:[%s2731_s23 + $0xa0] sm:$0xf]  ;;  %v2251_v11 = vld [vmem:[%s2731_s23 + $0xb0] sm:$0xf0]  ;;  %v2281_v14 = vld [vmem:[%s2731_s23 + $0x1a0] sm:$0xf0]  ;;  %v1823_v17 = vor.u32 %v2231_v9, %v1822_v8 }
  0x18   : > { %v1903_v18 = vor.u32 %v2251_v11, %v1902_v10  ;;  %v2023_v19 = vor.u32 %v2281_v14, %v2022_v13  ;;  %v1982_v20 = vld [vmem:[%s2731_s23 + $0x140] sm:$0xf]  ;;  %v2271_v21 = vld [vmem:[%s2731_s23 + $0x150] sm:$0xf0]  ;;  %v2312_v23 = vld [vmem:[%s3217_s1 + $0xb8] sm:$0xff]  ;;  %s3025_s12 = scalar_lea.vmem [#allocation2], %s2421_s8  }
  0x19   : > { %v2323_v25 = vld [vmem:[%s3217_s1 + $0x110] sm:$0xff]  ;;  %v1983_v26 = vor.u32 %v2271_v21, %v1982_v20  ;;  %v2322_v30 = vld [vmem:[%s3217_s1 + $0x108] sm:$0xff]  ;;  %v2301_v31 = vld [vmem:[%s3217_s1 + $0x60] sm:$0xff] }
  0x1a   : > { %972 = vmatpush.bf16.msra.mxu0 %v2294_v2  ;;  %2403 = vmatpush.bf16.msra.mxu1 %v2294_v2  ;;  %v2311_v28 = vld [vmem:[%s3217_s1 + $0xb0] sm:$0xff]  ;;  %v2310_v32 = vld [vmem:[%s3217_s1 + $0xa8] sm:$0xff]  ;;  %v2317_v33 = vld [vmem:[%s3217_s1 + $0xe0] sm:$0xff] }
  0x1b   : > { %2405 = vmatpush.bf16.msra.mxu3 %v2294_v2  ;;  %2404 = vmatpush.bf16.msra.mxu2 %v2294_v2  ;;  %v1842_v34 = vld [vmem:[%s2731_s23 + $0x28] sm:$0xf]  ;;  %v2236_v35 = vld [vmem:[%s2731_s23 + $0x38] sm:$0xf0]  ;;  %v2042_v38 = vld [vmem:[%s2731_s23 + $0x1b8] sm:$0xf] }
  0x1c   : > { %v1922_v36 = vld [vmem:[%s2731_s23 + $0xc8] sm:$0xf]  ;;  %v2256_v37 = vld [vmem:[%s2731_s23 + $0xd8] sm:$0xf0]  ;;  %v2286_v39 = vld [vmem:[%s2731_s23 + $0x1c8] sm:$0xf0]  ;;  %v1843_v43 = vor.u32 %v2236_v35, %v1842_v34 }
  0x1d   : > { %v2300_v40 = vld [vmem:[%s3217_s1 + $0x58] sm:$0xff]  ;;  %v2309_v41 = vld [vmem:[%s3217_s1 + $0xa0] sm:$0xff]  ;;  %v1923_v44 = vor.u32 %v2256_v37, %v1922_v36  ;;  %v2043_v45 = vor.u32 %v2286_v39, %v2042_v38  ;;  %v2002_v46 = vld [vmem:[%s2731_s23 + $0x168] sm:$0xf] }
  0x1e   : > { %973 = vmatpush.bf16.msra.mxu0 %v2293_v3  ;;  %2406 = vmatpush.bf16.msra.mxu1 %v2293_v3  ;;  %v2316_v42 = vld [vmem:[%s3217_s1 + $0xd8] sm:$0xff]  ;;  %v2299_v49 = vld [vmem:[%s3217_s1 + $0x50] sm:$0xff]  ;;  %v2298_v53 = vld [vmem:[%s3217_s1 + $0x48] sm:$0xff] }
  0x1f   : > { %2408 = vmatpush.bf16.msra.mxu3 %v2293_v3  ;;  %2407 = vmatpush.bf16.msra.mxu2 %v2293_v3  ;;  %v2276_v47 = vld [vmem:[%s2731_s23 + $0x178] sm:$0xf0]  ;;  %v2315_v50 = vld [vmem:[%s3217_s1 + $0xd0] sm:$0xff]  ;;  %v2321_v54 = vld [vmem:[%s3217_s1 + $0x100] sm:$0xff] }
  0x20   : > { %v2308_v48 = vld [vmem:[%s3217_s1 + $0x98] sm:$0xff]  ;;  %v2003_v51 = vor.u32 %v2276_v47, %v2002_v46  ;;  %v2307_v52 = vld [vmem:[%s3217_s1 + $0x90] sm:$0xff]  ;;  %v2314_v55 = vld [vmem:[%s3217_s1 + $0xc8] sm:$0xff] }
  0x21   : > { %v2825_v56 = vld [vmem:[%s2731_s23 + $0x1e0] sm:$0xff]  ;;  %v2306_v57 = vld [vmem:[%s3217_s1 + $0x88] sm:$0xff]  ;;  %v1862_v60 = vld [vmem:[%s2731_s23 + $0x50] sm:$0xf] }
  0x22   : > { %974 = vmatpush.bf16.msra.mxu0 %v2292_v4  ;;  %2409 = vmatpush.bf16.msra.mxu1 %v2292_v4  ;;  %v2297_v58 = vld [vmem:[%s3217_s1 + $0x40] sm:$0xff]  ;;  %v1942_v62 = vld [vmem:[%s2731_s23 + $0xf0] sm:$0xf]  ;;  %v592_v0 = vunpack.c.l.b16 %v2825_v56  ;;  %v1882_v8 = vld [vmem:[%s2731_s23 + $0x78] sm:$0xf] }
  0x23   : > { %2411 = vmatpush.bf16.msra.mxu3 %v2292_v4  ;;  %2410 = vmatpush.bf16.msra.mxu2 %v2292_v4  ;;  %v2313_v59 = vld [vmem:[%s3217_s1 + $0xc0] sm:$0xff]  ;;  %v2246_v9 = vld [vmem:[%s2731_s23 + $0x88] sm:$0xf0]  ;;  %v1962_v10 = vld [vmem:[%s2731_s23 + $0x118] sm:$0xf] }
  0x24   : > { %v2241_v61 = vld [vmem:[%s2731_s23 + $0x60] sm:$0xf0]  ;;  %v657_v4 = vpack.c.b16 %v592_v0, %v592_v0  ;;  %v2266_v11 = vld [vmem:[%s2731_s23 + $0x128] sm:$0xf0]  ;;  %v1832_v13 = vld [vmem:[%s2731_s23 + $0x1c] sm:$0xf0]  ;;  %v1883_v14 = vor.u32 %v2246_v9, %v1882_v8 }
  0x25   : > { %v2261_v63 = vld [vmem:[%s2731_s23 + $0x100] sm:$0xf0]  ;;  %v1863_v2 = vor.u32 %v2241_v61, %v1862_v60  ;;  %v1824_v21 = vld [vmem:[%s2731_s23 + $0x14] sm:$0xf0]  ;;  %v2238_v35 = vld [vmem:[%s2731_s23 + $0x48] sm:$0xf0] }
  0x26   : > { %975 = vmatpush.bf16.msra.mxu0 %v2291_v5  ;;  %2412 = vmatpush.bf16.msra.mxu1 %v2291_v5  ;;  %v2305_v1 = vld [vmem:[%s3217_s1 + $0x80] sm:$0xff]  ;;  %v1943_v3 = vor.u32 %v2261_v63, %v1942_v62  ;;  %v1858_v34 = vld [vmem:[%s2731_s23 + $0x38] sm:$0xf]  ;;  %v2240_v36 = vld [vmem:[%s2731_s23 + $0x5c] sm:$0xf] }
  0x27   : > { %2414 = vmatpush.bf16.msra.mxu3 %v2291_v5  ;;  %2413 = vmatpush.bf16.msra.mxu2 %v2291_v5  ;;  %v1830_v5 = vld [vmem:[%s2731_s23 + $0x8] sm:$0xf]  ;;  %v2229_v20 = vld [vmem:[%s2731_s23 + $0x4] sm:$0xf]  ;;  %v1872_v37 = vld [vmem:[%s2731_s23 + $0x6c] sm:$0xf0]  ;;  %v1859_v39 = vor.u32 %v2238_v35, %v1858_v34 }
  0x28   : > { %v1878_v46 = vld [vmem:[%s2731_s23 + $0x60] sm:$0xf]  ;;  %v2243_v47 = vld [vmem:[%s2731_s23 + $0x70] sm:$0xf0]  ;;  %v2248_v60 = vld [vmem:[%s2731_s23 + $0x98] sm:$0xf0] }
  0x29   : > { %v2250_v61 = vld [vmem:[%s2731_s23 + $0xac] sm:$0xf]  ;;  %v1912_v62 = vld [vmem:[%s2731_s23 + $0xbc] sm:$0xf0]  ;;  %v2253_v8 = vld [vmem:[%s2731_s23 + $0xc0] sm:$0xf0] }
  0x2a   : > { %976 = vmatpush.bf16.msra.mxu0 %v2290_v6  ;;  %2415 = vmatpush.bf16.msra.mxu1 %v2290_v6  ;;  %v2897_v9 = vld [vmem:[%s3218_s2] ss:$0 sm:$0xff] }
  0x2b   : > { %2417 = vmatpush.bf16.msra.mxu3 %v2290_v6  ;;  %2416 = vmatpush.bf16.msra.mxu2 %v2290_v6  ;;  %v2232_v6 = vld [vmem:[%s2731_s23 + $0x18] sm:$0xf0] }
  0x2e   : > { %977 = vmatpush.bf16.msra.mxu0 %v2289_v7  ;;  %2418 = vmatpush.bf16.msra.mxu1 %v2289_v7 }
  0x2f   : > { %2420 = vmatpush.bf16.msra.mxu3 %v2289_v7  ;;  %2419 = vmatpush.bf16.msra.mxu2 %v2289_v7  ;;  %v1831_v7 = vor.u32 %v2232_v6, %v1830_v5  ;;  %v2249_v5 = vld [vmem:[%s2731_s23 + $0xa4] sm:$0xf]  ;;  %v1904_v6 = vld [vmem:[%s2731_s23 + $0xb4] sm:$0xf0] }
  0x31   : > { %978 = vmatmul.bf16.vlgmr.msra.gmra.mxu0 %v1823_v17  ;;  %998 = vmatmul.bf16.vlgmr.msra.gmra.mxu1 %v1903_v18  ;;  %v1850_v17 = vld [vmem:[%s2731_s23 + $0x30] sm:$0xf]  ;;  %v2237_v18 = vld [vmem:[%s2731_s23 + $0x40] sm:$0xf0] }
  0x32   : > { %1043 = vmatpush.bf16.msrb.mxu1 %v2304_v12  ;;  %1266 = vmatpush.bf16.msrb.mxu0 %v2324_v15  ;;  %v2230_v12 = vld [vmem:[%s2731_s23 + $0xc] sm:$0xf]  ;;  %v1963_v15 = vor.u32 %v2266_v11, %v1962_v10  ;;  %v2255_v10 = vld [vmem:[%s2731_s23 + $0xd4] sm:$0xf]  ;;  %v1932_v11 = vld [vmem:[%s2731_s23 + $0xe4] sm:$0xf0] }
  0x33   : > { %1189 = vmatpush.bf16.msrb.mxu3 %v2320_v16  ;;  %1116 = vmatpush.bf16.msrb.mxu2 %v2312_v23  ;;  %v1835_v16 = vor.u32 %v2230_v12, %v1832_v13  ;;  %v2233_v23 = vld [vmem:[%s2731_s23 + $0x20] sm:$0xf0]  ;;  %v1907_v12 = vor.u32 %v2249_v5, %v1904_v6  ;;  %v2272_v5 = vld [vmem:[%s2731_s23 + $0x158] sm:$0xf0] }
  0x34   : > { %1028 = vmatmul.bf16.vlgmr.msra.gmra.mxu3 %v2023_v19  ;;  %1018 = vmatmul.bf16.vlgmr.msra.gmra.mxu2 %v1983_v26  ;;  %v1851_v19 = vor.u32 %v2237_v18, %v1850_v17  ;;  %v1827_v26 = vor.u32 %v2229_v20, %v1824_v21  ;;  %v1950_v17 = vld [vmem:[%s2731_s23 + $0xf8] sm:$0xf]  ;;  %v2262_v18 = vld [vmem:[%s2731_s23 + $0x108] sm:$0xf0] }
  0x35   : > { %v1951_v20 = vor.u32 %v2262_v18, %v1950_v17  ;;  %v2264_v18 = vld [vmem:[%s2731_s23 + $0x11c] sm:$0xf] }
  0x36   : > { %1044 = vmatpush.bf16.msrb.mxu1 %v2303_v22  ;;  %1267 = vmatpush.bf16.msrb.mxu0 %v2323_v25  ;;  %v1838_v22 = vld [vmem:[%s2731_s23 + $0x10] sm:$0xf]  ;;  %v1852_v25 = vld [vmem:[%s2731_s23 + $0x44] sm:$0xf0] }
  0x37   : > { %1190 = vmatpush.bf16.msrb.mxu3 %v2319_v24  ;;  %1117 = vmatpush.bf16.msrb.mxu2 %v2311_v28  ;;  %v2235_v24 = vld [vmem:[%s2731_s23 + $0x34] sm:$0xf] }
  0x38   : > { %v1855_v28 = vor.u32 %v2235_v24, %v1852_v25 }
  0x3a   : > { %1045 = vmatpush.bf16.msrb.mxu1 %v2302_v27  ;;  %1268 = vmatpush.bf16.msrb.mxu0 %v2322_v30  ;;  %v1839_v27 = vor.u32 %v2233_v23, %v1838_v22  ;;  %v2242_v30 = vld [vmem:[%s2731_s23 + $0x68] sm:$0xf0] }
  0x3b   : > { %1191 = vmatpush.bf16.msrb.mxu3 %v2318_v29  ;;  %1118 = vmatpush.bf16.msrb.mxu2 %v2310_v32  ;;  %v1870_v29 = vld [vmem:[%s2731_s23 + $0x58] sm:$0xf]  ;;  %v2234_v32 = vld [vmem:[%s2731_s23 + $0x2c] sm:$0xf] }
  0x3e   : > { %1046 = vmatpush.bf16.msrb.mxu1 %v2301_v31  ;;  %1269 = vmatpush.bf16.msrb.mxu0 %v2321_v54  ;;  %v1871_v31 = vor.u32 %v2242_v30, %v1870_v29  ;;  %v2252_v54 = vld [vmem:[%s2731_s23 + $0xb8] sm:$0xf0]  ;;  %v1924_v29 = vld [vmem:[%s2731_s23 + $0xdc] sm:$0xf0]  ;;  %v1938_v30 = vld [vmem:[%s2731_s23 + $0xd8] sm:$0xf] }
  0x3f   : > { %1192 = vmatpush.bf16.msrb.mxu3 %v2317_v33  ;;  %1119 = vmatpush.bf16.msrb.mxu2 %v2309_v41  ;;  %v1844_v33 = vld [vmem:[%s2731_s23 + $0x3c] sm:$0xf0] }
  0x40   : > { %v1847_v38 = vor.u32 %v2234_v32, %v1844_v33  ;;  %v1890_v41 = vld [vmem:[%s2731_s23 + $0x80] sm:$0xf]  ;;  %v2260_v32 = vld [vmem:[%s2731_s23 + $0xfc] sm:$0xf]  ;;  %v1952_v33 = vld [vmem:[%s2731_s23 + $0x10c] sm:$0xf0] }
  0x41   : > { %983 = vmatmul.bf16.gmra.mxu0 %v1843_v43  ;;  %1003 = vmatmul.bf16.gmra.mxu1 %v1923_v44  ;;  %v2239_v44 = vld [vmem:[%s2731_s23 + $0x54] sm:$0xf] }
  0x42   : > { %1047 = vmatpush.bf16.msrb.mxu1 %v2300_v40  ;;  %v1875_v40 = vor.u32 %v2240_v36, %v1872_v37 }
  0x43   : > { %1193 = vmatpush.bf16.msrb.mxu3 %v2316_v42  ;;  %1120 = vmatpush.bf16.msrb.mxu2 %v2308_v48  ;;  %v2247_v42 = vld [vmem:[%s2731_s23 + $0x90] sm:$0xf0]  ;;  %v2245_v48 = vld [vmem:[%s2731_s23 + $0x84] sm:$0xf] }
  0x44   : > { %1033 = vmatmul.bf16.gmra.mxu3 %v2043_v45  ;;  %1023 = vmatmul.bf16.gmra.mxu2 %v2003_v51  ;;  %v1891_v43 = vor.u32 %v2247_v42, %v1890_v41  ;;  %v1864_v45 = vld [vmem:[%s2731_s23 + $0x64] sm:$0xf0]  ;;  %v1879_v51 = vor.u32 %v2243_v47, %v1878_v46  ;;  %v1970_v41 = vld [vmem:[%s2731_s23 + $0x120] sm:$0xf]  ;;  %v2267_v42 = vld [vmem:[%s2731_s23 + $0x130] sm:$0xf0] }
  0x45   : > { %v1971_v46 = vor.u32 %v2267_v42, %v1970_v41 }
  0x46   : > { %1048 = vmatpush.bf16.msrb.mxu1 %v2299_v49  ;;  %v1892_v49 = vld [vmem:[%s2731_s23 + $0x94] sm:$0xf0] }
  0x47   : > { %1194 = vmatpush.bf16.msrb.mxu3 %v2315_v50  ;;  %1121 = vmatpush.bf16.msrb.mxu2 %v2307_v52  ;;  %v1867_v50 = vor.u32 %v2239_v44, %v1864_v45  ;;  %v1895_v52 = vor.u32 %v2245_v48, %v1892_v49 }
  0x4a   : > { %1049 = vmatpush.bf16.msrb.mxu1 %v2298_v53  ;;  %v1910_v53 = vld [vmem:[%s2731_s23 + $0xa8] sm:$0xf] }
  0x4b   : > { %1195 = vmatpush.bf16.msrb.mxu3 %v2314_v55  ;;  %1122 = vmatpush.bf16.msrb.mxu2 %v2306_v57  ;;  %v1911_v55 = vor.u32 %v2252_v54, %v1910_v53  ;;  %v2244_v57 = vld [vmem:[%s2731_s23 + $0x7c] sm:$0xf]  ;;  %v2259_v53 = vld [vmem:[%s2731_s23 + $0xf4] sm:$0xf] }
  0x4e   : > { %1050 = vmatpush.bf16.msrb.mxu1 %v2297_v58  ;;  %v1884_v58 = vld [vmem:[%s2731_s23 + $0x8c] sm:$0xf0] }
  0x4f   : > { %1196 = vmatpush.bf16.msrb.mxu3 %v2313_v59  ;;  %1123 = vmatpush.bf16.msrb.mxu2 %v2305_v1  ;;  %v1898_v59 = vld [vmem:[%s2731_s23 + $0x88] sm:$0xf]  ;;  %v1887_v63 = vor.u32 %v2244_v57, %v1884_v58  ;;  %v1915_v1 = vor.u32 %v2250_v61, %v1912_v62  ;;  %v1958_v57 = vld [vmem:[%s2731_s23 + $0x100] sm:$0xf]  ;;  %v2263_v58 = vld [vmem:[%s2731_s23 + $0x110] sm:$0xf0] }
  0x50   : > { %v1899_v0 = vor.u32 %v2248_v60, %v1898_v59  ;;  %v2265_v59 = vld [vmem:[%s2731_s23 + $0x124] sm:$0xf]  ;;  %v1972_v60 = vld [vmem:[%s2731_s23 + $0x134] sm:$0xf0]  ;;  %v1959_v62 = vor.u32 %v2263_v58, %v1958_v57  ;;  %v2275_v58 = vld [vmem:[%s2731_s23 + $0x174] sm:$0xf] }
  0x51   : > { %988 = vmatmul.bf16.gmra.mxu0 %v1863_v2  ;;  %1008 = vmatmul.bf16.gmra.mxu1 %v1943_v3  ;;  %v1930_v2 = vld [vmem:[%s2731_s23 + $0xd0] sm:$0xf]  ;;  %v2257_v3 = vld [vmem:[%s2731_s23 + $0xe0] sm:$0xf0] }
  0x52   : > { %v2273_v57 = vld [vmem:[%s2731_s23 + $0x160] sm:$0xf0] }
  0x54   : > { %1038 = vmatmul.bf16.gmra.mxu3 %v657_v4  ;;  %1124 = vmatmul.bf16.vlgmr.msrb.gmra.mxu2 %v1831_v7  ;;  %v1931_v4 = vor.u32 %v2257_v3, %v1930_v2  ;;  %v1918_v7 = vld [vmem:[%s2731_s23 + $0xb0] sm:$0xf]  ;;  %v1975_v3 = vor.u32 %v2265_v59, %v1972_v60  ;;  %v2012_v59 = vld [vmem:[%s2731_s23 + $0x184] sm:$0xf0] }
  0x55   : > { %v1919_v13 = vor.u32 %v2253_v8, %v1918_v7 }
  0x61   : > { %993 = vmatmul.bf16.gmra.mxu0 %v1883_v14  ;;  %1013 = vmatmul.bf16.gmra.mxu1 %v1963_v15 }
  0x64   : > { %1197 = vmatmul.bf16.vlgmr.msrb.gmra.mxu3 %v1835_v16  ;;  %1129 = vmatmul.bf16.gmra.mxu2 %v1851_v19  ;;  %v1935_v16 = vor.u32 %v2255_v10, %v1932_v11 }
  0x71   : > { %1051 = vmatmul.bf16.vlgmr.msrb.gmra.mxu1 %v1827_v26  ;;  %2204 = vmatmul.msk.bf16.vlgmr.msrb.gmra.mxu0 %vm930_vm0, %v1839_v27  ;;  %v2254_v27 = vld [vmem:[%s2731_s23 + $0xcc] sm:$0xf] }
  0x72   : > { %v1927_v34 = vor.u32 %v2254_v27, %v1924_v29  ;;  %v1992_v27 = vld [vmem:[%s2731_s23 + $0x15c] sm:$0xf0] }
  0x74   : > { %1202 = vmatmul.bf16.gmra.mxu3 %v1855_v28  ;;  %1134 = vmatmul.bf16.gmra.mxu2 %v1871_v31  ;;  %v2258_v31 = vld [vmem:[%s2731_s23 + $0xe8] sm:$0xf0] }
  0x75   : > { %v1939_v35 = vor.u32 %v2258_v31, %v1938_v30 }
  0x81   : > { %1056 = vmatmul.bf16.gmra.mxu1 %v1847_v38  ;;  %2205 = vmatmul.msk.bf16.gmra.mxu0 %vm930_vm0, %v1859_v39 }
  0x84   : > { %1207 = vmatmul.bf16.gmra.mxu3 %v1875_v40  ;;  %1139 = vmatmul.bf16.gmra.mxu2 %v1891_v43  ;;  %v1955_v40 = vor.u32 %v2260_v32, %v1952_v33 }
  0x91   : > { %1061 = vmatmul.bf16.gmra.mxu1 %v1867_v50  ;;  %2206 = vmatmul.msk.bf16.gmra.mxu0 %vm930_vm0, %v1879_v51 }
  0x94   : > { %1212 = vmatmul.bf16.gmra.mxu3 %v1895_v52  ;;  %1144 = vmatmul.bf16.gmra.mxu2 %v1911_v55  ;;  %v1944_v55 = vld [vmem:[%s2731_s23 + $0x104] sm:$0xf0] }
  0x95   : > { %v1947_v61 = vor.u32 %v2259_v53, %v1944_v55  ;;  %v1984_v53 = vld [vmem:[%s2731_s23 + $0x154] sm:$0xf0]  ;;  %v1998_v55 = vld [vmem:[%s2731_s23 + $0x150] sm:$0xf] }
  0xa1   : > { %1066 = vmatmul.bf16.gmra.mxu1 %v1887_v63  ;;  %2207 = vmatmul.msk.bf16.gmra.mxu0 %vm930_vm0, %v1899_v0 }
  0xa4   : > { %1217 = vmatmul.bf16.gmra.mxu3 %v1915_v1  ;;  %1149 = vmatmul.bf16.gmra.mxu2 %v1931_v4  ;;  %v1990_v4 = vld [vmem:[%s2731_s23 + $0x148] sm:$0xf] }
  0xa5   : > { %v1991_v10 = vor.u32 %v2272_v5, %v1990_v4  ;;  %v2015_v4 = vor.u32 %v2275_v58, %v2012_v59  ;;  %v2030_v5 = vld [vmem:[%s2731_s23 + $0x198] sm:$0xf]  ;;  %v2287_v58 = vld [vmem:[%s2731_s23 + $0x1d0] sm:$0xf0] }
  0xae   : > { %v2901_v14 = vpop.f32.mrf.mxu0  ;;  %v999_v15 = vpop.f32.mrf.mxu1 }
  0xaf   : > { %v2906_v19 = vadd.f32 %v2897_v9, %v999_v15  ;;  %v980_v60 = vadd.f32 %v2897_v9, %v2901_v14 }
  0xb1   : > { %1071 = vmatmul.bf16.gmra.mxu1 %v1907_v12  ;;  %2208 = vmatmul.msk.bf16.gmra.mxu0 %vm930_vm0, %v1919_v13 }
  0xb4   : > { %1222 = vmatmul.bf16.gmra.mxu3 %v1935_v16  ;;  %1154 = vmatmul.bf16.gmra.mxu2 %v1951_v20  ;;  %v1964_v20 = vld [vmem:[%s2731_s23 + $0x12c] sm:$0xf0] }
  0xb5   : > { %v1967_v29 = vor.u32 %v2264_v18, %v1964_v20 }
  0xb6   : > { %v2909_v22 = vpop.f32.mrf.mxu0  ;;  %v1001_v23 = vpop.f32.mrf.mxu1 }
  0xb7   : > { %v1029_v21 = vpop.f32.mrf.mxu3  ;;  %v2915_v25 = vadd.f32 %v2897_v9, %v1001_v23  ;;  %v1019_v26 = vpop.f32.mrf.mxu2  ;;  %v2268_v23 = vld [vmem:[%s2731_s23 + $0x138] sm:$0xf0]  ;;  %v982_v14 = vadd.f32 %v2897_v9, %v2909_v22 }
  0xb8   : > { %v2912_v24 = vadd.f32 %v2897_v9, %v1029_v21  ;;  %v2919_v28 = vadd.f32 %v2897_v9, %v1019_v26  ;;  %v1978_v21 = vld [vmem:[%s2731_s23 + $0x128] sm:$0xf]  ;;  %v2270_v26 = vld [vmem:[%s2731_s23 + $0x14c] sm:$0xf] }
  0xb9   : > { %v1979_v30 = vor.u32 %v2268_v23, %v1978_v21 }
  0xbe   : > { %v2926_v37 = vpop.f32.mrf.mxu0  ;;  %v1004_v38 = vpop.f32.mrf.mxu1 }
  0xbf   : > { %v1031_v36 = vpop.f32.mrf.mxu3  ;;  %v2934_v43 = vadd.f32 %v2897_v9, %v1004_v38  ;;  %v1021_v44 = vpop.f32.mrf.mxu2 }
  0xc0   : > { %v2929_v39 = vadd.f32 %v2897_v9, %v1031_v36  ;;  %v2938_v45 = vadd.f32 %v2897_v9, %v1021_v44  ;;  %v2277_v36 = vld [vmem:[%s2731_s23 + $0x180] sm:$0xf0] }
  0xc1   : > { %1076 = vmatmul.bf16.gmra.mxu1 %v1927_v34  ;;  %2209 = vmatmul.msk.bf16.gmra.mxu0 %vm930_vm0, %v1939_v35  ;;  %v1995_v34 = vor.u32 %v2270_v26, %v1992_v27  ;;  %v2010_v35 = vld [vmem:[%s2731_s23 + $0x170] sm:$0xf] }
  0xc2   : > { %v2011_v41 = vor.u32 %v2277_v36, %v2010_v35  ;;  %v2278_v35 = vld [vmem:[%s2731_s23 + $0x188] sm:$0xf0]  ;;  %v2280_v36 = vld [vmem:[%s2731_s23 + $0x19c] sm:$0xf] }
  0xc4   : > { %1227 = vmatmul.bf16.gmra.mxu3 %v1955_v40  ;;  %1159 = vmatmul.bf16.gmra.mxu2 %v1971_v46 }
  0xc6   : > { %v2940_v48 = vpop.f32.mrf.mxu0  ;;  %v1006_v49 = vpop.f32.mrf.mxu1 }
  0xc7   : > { %v1034_v47 = vpop.f32.mrf.mxu3  ;;  %v2946_v51 = vadd.f32 %v2897_v9, %v1006_v49  ;;  %v1024_v52 = vpop.f32.mrf.mxu2 }
  0xc8   : > { %v2943_v50 = vadd.f32 %v2897_v9, %v1034_v47  ;;  %v2950_v54 = vadd.f32 %v2897_v9, %v1024_v52  ;;  %v2269_v52 = vld [vmem:[%s2731_s23 + $0x144] sm:$0xf] }
  0xce   : > { %v2957_v0 = vpop.f32.mrf.mxu0  ;;  %v1009_v1 = vpop.f32.mrf.mxu1 }
  0xcf   : > { %v1036_v63 = vpop.f32.mrf.mxu3  ;;  %v2965_v6 = vadd.f32 %v2897_v9, %v1009_v1  ;;  %v1026_v7 = vpop.f32.mrf.mxu2 }
  0xd0   : > { %v2960_v2 = vadd.f32 %v2897_v9, %v1036_v63  ;;  %v2969_v8 = vadd.f32 %v2897_v9, %v1026_v7  ;;  %v2282_v7 = vld [vmem:[%s2731_s23 + $0x1a8] sm:$0xf0] }
  0xd1   : > { %1081 = vmatmul.bf16.gmra.mxu1 %v1947_v61  ;;  %2210 = vmatmul.msk.bf16.gmra.mxu0 %vm930_vm0, %v1959_v62  ;;  %v1987_v61 = vor.u32 %v2269_v52, %v1984_v53  ;;  %v1999_v62 = vor.u32 %v2273_v57, %v1998_v55  ;;  %v2031_v18 = vor.u32 %v2282_v7, %v2030_v5 }
  0xd4   : > { %1232 = vmatmul.bf16.gmra.mxu3 %v1975_v3  ;;  %1164 = vmatmul.bf16.gmra.mxu2 %v1991_v10 }
  0xd6   : > { %v2971_v12 = vpop.f32.mrf.mxu0  ;;  %v1011_v13 = vpop.f32.mrf.mxu1 }
  0xd7   : > { %v1039_v11 = vpop.f32.mrf.mxu3  ;;  %v2977_v16 = vadd.f32 %v2897_v9, %v1011_v13  ;;  %v1125_v17 = vpop.f32.mrf.mxu2 }
  0xd8   : > { %v2974_v15 = vadd.f32 %v2897_v9, %v1039_v11 }
  0xde   : > { %v2985_v32 = vpop.f32.mrf.mxu0  ;;  %v1014_v33 = vpop.f32.mrf.mxu1 }
  0xdf   : > { %v1041_v31 = vpop.f32.mrf.mxu3  ;;  %v2990_v38 = vadd.f32 %v2897_v9, %v1014_v33  ;;  %v1127_v40 = vpop.f32.mrf.mxu2  ;;  %v2004_v33 = vld [vmem:[%s2731_s23 + $0x17c] sm:$0xf0] }
  0xe0   : > { %v2274_v31 = vld [vmem:[%s2731_s23 + $0x16c] sm:$0xf] }
  0xe1   : > { %1086 = vmatmul.bf16.gmra.mxu1 %v1967_v29  ;;  %2211 = vmatmul.msk.bf16.gmra.mxu0 %vm930_vm0, %v1979_v30  ;;  %v2007_v53 = vor.u32 %v2274_v31, %v2004_v33  ;;  %v2024_v31 = vld [vmem:[%s2731_s23 + $0x1a4] sm:$0xf0]  ;;  %v2038_v33 = vld [vmem:[%s2731_s23 + $0x1a0] sm:$0xf] }
  0xe4   : > { %1237 = vmatmul.bf16.gmra.mxu3 %v1995_v34  ;;  %1169 = vmatmul.bf16.gmra.mxu2 %v2011_v41  ;;  %v2018_v34 = vld [vmem:[%s2731_s23 + $0x178] sm:$0xf]  ;;  %v2032_v41 = vld [vmem:[%s2731_s23 + $0x1ac] sm:$0xf0] }
  0xe5   : > { %v2019_v55 = vor.u32 %v2278_v35, %v2018_v34  ;;  %v2283_v34 = vld [vmem:[%s2731_s23 + $0x1b0] sm:$0xf0] }
  0xe6   : > { %v2993_v44 = vpop.f32.mrf.mxu0  ;;  %v1016_v46 = vpop.f32.mrf.mxu1 }
  0xe7   : > { %v1198_v42 = vpop.f32.mrf.mxu3  ;;  %v2996_v47 = vadd.f32 %v2897_v9, %v1016_v46  ;;  %v1130_v49 = vpop.f32.mrf.mxu2 }
  0xee   : > { %v1052_v1 = vpop.f32.mrf.mxu1  ;;  %v1271_v3 = vpop.f32.mrf.mxu0 }
  0xef   : > { %v1200_v63 = vpop.f32.mrf.mxu3  ;;  %v1053_v10 = vadd.f32 %v1052_v1, %v980_v60  ;;  %v1132_v11 = vpop.f32.mrf.mxu2 }
  0xf1   : > { %v1126_v13 = vadd.f32 %v1125_v17, %v1053_v10  ;;  %1091 = vmatmul.bf16.gmra.mxu1 %v1987_v61  ;;  %2212 = vmatmul.msk.bf16.gmra.mxu0 %vm930_vm0, %v1999_v62  ;;  %v2035_v61 = vor.u32 %v2280_v36, %v2032_v41  ;;  %v987_v10 = vadd.f32 %v2897_v9, %v2940_v48  ;;  %v2052_v48 = vld [vmem:[%s2731_s23 + $0x1d4] sm:$0xf0] }
  0xf3   : > { %v1199_v20 = vadd.f32 %v1198_v42, %v1126_v13  ;;  %v985_v42 = vadd.f32 %v2897_v9, %v2926_v37 }
  0xf4   : > { %1242 = vmatmul.bf16.gmra.mxu3 %v2015_v4  ;;  %1174 = vmatmul.bf16.gmra.mxu2 %v2031_v18 }
  0xf5   : > { %v1272_v29 = vadd.f32 %v1271_v3, %v1199_v20 }
  0xf6   : > { %v1054_v23 = vpop.f32.mrf.mxu1  ;;  %v1273_v26 = vpop.f32.mrf.mxu0 }
  0xf7   : > { %v1203_v21 = vpop.f32.mrf.mxu3  ;;  %v1055_v17 = vadd.f32 %v1054_v23, %v982_v14  ;;  %v3011_v27 = vpop.f32.mrf.mxu2  ;;  %v1360_v46 = vmul.f32 0.2, %v1272_v29  ;;  %vm1335_vm1 = vcmp.ge.f32.partialorder %v1272_v29, 0.0 }
  0xf9   : > { %v1128_v30 = vadd.f32 %v1127_v40, %v1055_v17  ;;  %v2050_v40 = vld [vmem:[%s2731_s23 + $0x1c0] sm:$0xf]  ;;  %v1385_v4 = vsel %vm1335_vm1, %v1272_v29, %v1360_v46  ;;  %v2279_v29 = vld [vmem:[%s2731_s23 + $0x194] sm:$0xf] }
  0xfa   : > { %v2051_v3 = vor.u32 %v2287_v58, %v2050_v40  ;;  %v2027_v46 = vor.u32 %v2279_v29, %v2024_v31 }
  0xfb   : > { %v1201_v22 = vadd.f32 %v1200_v63, %v1128_v30  ;;  %v319_v30 = vld [vmem:[%s2731_s23 + $0x1e8] sm:$0xff] }
  0xfc   : > { %v594_v36 = vunpack.c.l.b16 %v319_v30  ;;  %v595_v29 = vunpack.c.h.b16 %v319_v30 }
  0xfd   : > { %v1274_v52 = vadd.f32 %v1273_v26, %v1201_v22  ;;  %v2285_v22 = vld [vmem:[%s2731_s23 + $0x1c4] sm:$0xf] }
  0xfe   : > { %v1057_v59 = vpop.f32.mrf.mxu1  ;;  %v1276_v60 = vpop.f32.mrf.mxu0  ;;  %v2055_v40 = vor.u32 %v2285_v22, %v2052_v48 }
  0xff   : > { %v1205_v57 = vpop.f32.mrf.mxu3  ;;  %vm1336_vm2 = vcmp.ge.f32.partialorder %v1274_v52, 0.0  ;;  %v1361_v62 = vmul.f32 0.2, %v1274_v52  ;;  %v1058_v63 = vadd.f32 %v1057_v59, %v985_v42  ;;  %v1137_v1 = vpop.f32.mrf.mxu2 }
 0x101   : > { %v1386_v5 = vsel %vm1336_vm2, %v1274_v52, %v1361_v62  ;;  %v1131_v37 = vadd.f32 %v1130_v49, %v1058_v63  ;;  %1096 = vmatmul.bf16.gmra.mxu1 %v2007_v53  ;;  %2213 = vmatmul.msk.bf16.gmra.mxu0 %vm930_vm0, %v2019_v55  ;;  %v2039_v52 = vor.u32 %v2283_v34, %v2038_v33 }
 0x102   : > { %v2329_v7 = vpack.c.bf16 %v1386_v5, %v1385_v4  ;;  %v995_v33 = vadd.f32 %v2897_v9, %v2985_v32 }
 0x103   : > { %v1204_v13 = vadd.f32 %v1203_v21, %v1131_v37  ;;  %v990_v21 = vadd.f32 %v2897_v9, %v2957_v0 }
 0x104   : > { %1247 = vmatmul.bf16.gmra.mxu3 %v2035_v61  ;;  %2330 = vst [vmem:[%s3025_s12] sm:$0xff] %v2329_v7   ;;  %1179 = vmatmul.bf16.gmra.mxu2 %v2051_v3  ;;  %v992_v3 = vadd.f32 %v2897_v9, %v2971_v12 }
 0x105   : > { %v1277_v26 = vadd.f32 %v1276_v60, %v1204_v13  ;;  %v659_v60 = vpack.c.b16 %v594_v36, %v594_v36  ;;  %v660_v36 = vpack.c.b16 %v595_v29, %v595_v29 }
 0x106   : > { %v1059_v18 = vpop.f32.mrf.mxu1  ;;  %v1278_v14 = vpop.f32.mrf.mxu0 }
 0x107   : > { %v1208_v49 = vpop.f32.mrf.mxu3  ;;  %v1060_v20 = vadd.f32 %v1059_v18, %v987_v10  ;;  %v3030_v23 = vpop.f32.mrf.mxu2  ;;  %v1362_v41 = vmul.f32 0.2, %v1277_v26  ;;  %vm1337_vm3 = vcmp.ge.f32.partialorder %v1277_v26, 0.0 }
 0x109   : > { %v1133_v17 = vadd.f32 %v1132_v11, %v1060_v20  ;;  %v1387_v61 = vsel %vm1337_vm3, %v1277_v26, %v1362_v41  ;;  %v2044_v20 = vld [vmem:[%s2731_s23 + $0x1cc] sm:$0xf0]  ;;  %v2058_v26 = vld [vmem:[%s2731_s23 + $0x1c8] sm:$0xf] }
 0x10b   : > { %v1206_v35 = vadd.f32 %v1205_v57, %v1133_v17  ;;  %v2288_v17 = vld [vmem:[%s2731_s23 + $0x1d8] sm:$0xf0] }
 0x10d   : > { %v1279_v42 = vadd.f32 %v1278_v14, %v1206_v35  ;;  %v2284_v14 = vld [vmem:[%s2731_s23 + $0x1bc] sm:$0xf]  ;;  %v2059_v35 = vor.u32 %v2288_v17, %v2058_v26 }
 0x10e   : > { %v1062_v11 = vpop.f32.mrf.mxu1  ;;  %v1281_v55 = vpop.f32.mrf.mxu0 }
 0x10f   : > { %v1210_v53 = vpop.f32.mrf.mxu3  ;;  %vm1338_vm4 = vcmp.ge.f32.partialorder %v1279_v42, 0.0  ;;  %v1363_v58 = vmul.f32 0.2, %v1279_v42  ;;  %v1063_v59 = vadd.f32 %v1062_v11, %v990_v21  ;;  %v1142_v57 = vpop.f32.mrf.mxu2 }
 0x111   : > { %v1388_v62 = vsel %vm1338_vm4, %v1279_v42, %v1363_v58  ;;  %v1136_v0 = vadd.f32 %v3011_v27, %v1063_v59  ;;  %1101 = vmatmul.bf16.gmra.mxu1 %v2027_v46  ;;  %2214 = vmatmul.msk.bf16.gmra.mxu0 %vm930_vm0, %v2039_v52  ;;  %v320_v59 = vld [vmem:[%s2731_s23 + $0x1f0] sm:$0xf]  ;;  %s1468_s23 = ssub.s32 (%p2691_p3), 49, %s2712_s29 }
 0x112   : > { %v2334_v63 = vpack.c.bf16 %v1388_v62, %v1387_v61  ;;  %v593_v62 = vunpack.c.h.b16 %v2825_v56  ;;  %p1469_p9 = scmp.lt.s32.totalorder (%p2691_p3), %s1468_s23, 25 }
 0x113   : > { %v1209_v4 = vadd.f32 %v1208_v49, %v1136_v0  ;;  %v2047_v49 = vor.u32 %v2284_v14, %v2044_v20 }
 0x114   : > { %1252 = vmatmul.bf16.gmra.mxu3 %v2055_v40  ;;  %2386 = vst [vmem:[%s3025_s12 + $0x8] sm:$0xff] %v2334_v63   ;;  %1184 = vmatmul.bf16.gmra.mxu2 %v659_v60  ;;  %v596_v63 = vunpack.c.l.b16 %v320_v59 }
 0x115   : > { %v1282_v13 = vadd.f32 %v1281_v55, %v1209_v4 }
 0x116   : > { %v1064_v37 = vpop.f32.mrf.mxu1  ;;  %v1283_v7 = vpop.f32.mrf.mxu0 }
 0x117   : > { %v1213_v5 = vpop.f32.mrf.mxu3  ;;  %v1065_v10 = vadd.f32 %v1064_v37, %v992_v3  ;;  %v1145_v27 = vpop.f32.mrf.mxu2  ;;  %v1364_v34 = vmul.f32 0.2, %v1282_v13  ;;  %vm1339_vm5 = vcmp.ge.f32.partialorder %v1282_v13, 0.0 }
 0x119   : > { %v1138_v18 = vadd.f32 %v1137_v1, %v1065_v10  ;;  %v1389_v30 = vsel %vm1339_vm5, %v1282_v13, %v1364_v34  ;;  %v661_v10 = vpack.c.b16 %v596_v63, %v596_v63 }
 0x11b   : > { %v1211_v31 = vadd.f32 %v1210_v53, %v1138_v18  ;;  %v997_v53 = vadd.f32 %v2897_v9, %v2993_v44 }
 0x11d   : > { %v1284_v12 = vadd.f32 %v1283_v7, %v1211_v31  ;;  %v658_v7 = vpack.c.b16 %v593_v62, %v593_v62 }
 0x11e   : > { %v1067_v48 = vpop.f32.mrf.mxu1  ;;  %v1286_v21 = vpop.f32.mrf.mxu0 }
 0x11f   : > { %v1215_v22 = vpop.f32.mrf.mxu3  ;;  %vm1340_vm6 = vcmp.ge.f32.partialorder %v1284_v12, 0.0  ;;  %v1365_v1 = vmul.f32 0.2, %v1284_v12  ;;  %v1068_v41 = vadd.f32 %v1067_v48, %v995_v33  ;;  %v1147_v42 = vpop.f32.mrf.mxu2 }
 0x121   : > { %v1390_v46 = vsel %vm1340_vm6, %v1284_v12, %v1365_v1  ;;  %v1141_v52 = vadd.f32 %v3030_v23, %v1068_v41  ;;  %1106 = vmatmul.bf16.gmra.mxu1 %v2047_v49  ;;  %2215 = vmatmul.msk.bf16.gmra.mxu0 %vm930_vm0, %v2059_v35 }
 0x122   : > { %v2339_v32 = vpack.c.bf16 %v1390_v46, %v1389_v30 }
 0x123   : > { %v1214_v11 = vadd.f32 %v1213_v5, %v1141_v52 }
 0x124   : > { %1257 = vmatmul.bf16.gmra.mxu3 %v660_v36  ;;  %2387 = vst [vmem:[%s3025_s12 + $0x10] sm:$0xff] %v2339_v32  }
 0x125   : > { %v1287_v0 = vadd.f32 %v1286_v21, %v1214_v11 }
 0x126   : > { %v1069_v40 = vpop.f32.mrf.mxu1  ;;  %v1288_v58 = vpop.f32.mrf.mxu0 }
 0x127   : > { %v1218_v55 = vpop.f32.mrf.mxu3  ;;  %v1070_v60 = vadd.f32 %v1069_v40, %v997_v53  ;;  %v1150_v61 = vpop.f32.mrf.mxu2  ;;  %v1366_v4 = vmul.f32 0.2, %v1287_v0  ;;  %vm1341_vm7 = vcmp.ge.f32.partialorder %v1287_v0, 0.0 }
 0x129   : > { %v1143_v23 = vadd.f32 %v1142_v57, %v1070_v60  ;;  %v1391_v20 = vsel %vm1341_vm7, %v1287_v0, %v1366_v4 }
 0x12b   : > { %v1216_v3 = vadd.f32 %v1215_v22, %v1143_v23 }
 0x12d   : > { %v1289_v37 = vadd.f32 %v1288_v58, %v1216_v3 }
 0x12e   : > { %v1072_v9 = vpop.f32.mrf.mxu1  ;;  %v1291_v44 = vpop.f32.mrf.mxu0 }
 0x12f   : > { %v1220_v13 = vpop.f32.mrf.mxu3  ;;  %vm1342_vm8 = vcmp.ge.f32.partialorder %v1289_v37, 0.0  ;;  %v1367_v5 = vmul.f32 0.2, %v1289_v37  ;;  %v1073_v18 = vadd.f32 %v1072_v9, %v2906_v19  ;;  %v1152_v14 = vpop.f32.mrf.mxu2 }
 0x131   : > { %v1392_v56 = vsel %vm1342_vm8, %v1289_v37, %v1367_v5  ;;  %v1146_v26 = vadd.f32 %v1145_v27, %v1073_v18  ;;  %1111 = vmatmul.bf16.gmra.mxu1 %v658_v7  ;;  %2216 = vmatmul.msk.bf16.gmra.mxu0 %vm930_vm0, %v661_v10 }
 0x132   : > { %v2344_v57 = vpack.c.bf16 %v1392_v56, %v1391_v20 }
 0x133   : > { %v1219_v17 = vadd.f32 %v1218_v55, %v1146_v26 }
 0x134   : > { %2388 = vst [vmem:[%s3025_s12 + $0x18] sm:$0xff] %v2344_v57  }
 0x135   : > { %v1292_v49 = vadd.f32 %v1291_v44, %v1219_v17 }
 0x136   : > { %v1074_v31 = vpop.f32.mrf.mxu1  ;;  %v1293_v33 = vpop.f32.mrf.mxu0 }
 0x137   : > { %v1223_v29 = vpop.f32.mrf.mxu3  ;;  %v1075_v34 = vadd.f32 %v1074_v31, %v2915_v25  ;;  %v1155_v12 = vpop.f32.mrf.mxu2  ;;  %v1368_v22 = vmul.f32 0.2, %v1292_v49  ;;  %vm1343_vm9 = vcmp.ge.f32.partialorder %v1292_v49, 0.0 }
 0x139   : > { %v1148_v35 = vadd.f32 %v1147_v42, %v1075_v34  ;;  %v1393_v46 = vsel %vm1343_vm9, %v1292_v49, %v1368_v22 }
 0x13b   : > { %v1221_v19 = vadd.f32 %v1220_v13, %v1148_v35 }
 0x13d   : > { %v1294_v48 = vadd.f32 %v1293_v33, %v1221_v19 }
 0x13e   : > { %v1077_v27 = vpop.f32.mrf.mxu1  ;;  %v1296_v36 = vpop.f32.mrf.mxu0 }
 0x13f   : > { %v1225_v21 = vpop.f32.mrf.mxu3  ;;  %vm1344_vm10 = vcmp.ge.f32.partialorder %v1294_v48, 0.0  ;;  %v1369_v1 = vmul.f32 0.2, %v1294_v48  ;;  %v1078_v41 = vadd.f32 %v1077_v27, %v2934_v43  ;;  %v1157_v30 = vpop.f32.mrf.mxu2 }
 0x141   : > { %v1394_v52 = vsel %vm1344_vm10, %v1294_v48, %v1369_v1  ;;  %v1151_v32 = vadd.f32 %v1150_v61, %v1078_v41 }
 0x142   : > { %v2349_v25 = vpack.c.bf16 %v1394_v52, %v1393_v46 }
 0x143   : > { %v1224_v53 = vadd.f32 %v1223_v29, %v1151_v32 }
 0x144   : > { %2389 = vst [vmem:[%s3025_s12 + $0x20] sm:$0xff] %v2349_v25  }
 0x145   : > { %v1297_v59 = vadd.f32 %v1296_v36, %v1224_v53 }
 0x146   : > { %v1079_v11 = vpop.f32.mrf.mxu1  ;;  %v1298_v55 = vpop.f32.mrf.mxu0 }
 0x147   : > { %v1228_v42 = vpop.f32.mrf.mxu3  ;;  %v1080_v40 = vadd.f32 %v1079_v11, %v2946_v51  ;;  %v1160_v58 = vpop.f32.mrf.mxu2  ;;  %v1370_v0 = vmul.f32 0.2, %v1297_v59  ;;  %vm1345_vm11 = vcmp.ge.f32.partialorder %v1297_v59, 0.0 }
 0x149   : > { %v1153_v60 = vadd.f32 %v1152_v14, %v1080_v40  ;;  %v1395_v7 = vsel %vm1345_vm11, %v1297_v59, %v1370_v0 }
 0x14b   : > { %v1226_v62 = vadd.f32 %v1225_v21, %v1153_v60 }
 0x14d   : > { %v1299_v23 = vadd.f32 %v1298_v55, %v1226_v62 }
 0x14e   : > { %v1082_v63 = vpop.f32.mrf.mxu1  ;;  %v1301_v3 = vpop.f32.mrf.mxu0 }
 0x14f   : > { %v1230_v43 = vpop.f32.mrf.mxu3  ;;  %vm1346_vm12 = vcmp.ge.f32.partialorder %v1299_v23, 0.0  ;;  %v1371_v61 = vmul.f32 0.2, %v1299_v23  ;;  %v1083_v4 = vadd.f32 %v1082_v63, %v2965_v6  ;;  %v1162_v37 = vpop.f32.mrf.mxu2 }
 0x151   : > { %v1396_v10 = vsel %vm1346_vm12, %v1299_v23, %v1371_v61  ;;  %v1156_v13 = vadd.f32 %v1155_v12, %v1083_v4 }
 0x152   : > { %v2354_v51 = vpack.c.bf16 %v1396_v10, %v1395_v7 }
 0x153   : > { %v1229_v9 = vadd.f32 %v1228_v42, %v1156_v13 }
 0x154   : > { %2390 = vst [vmem:[%s3025_s12 + $0x28] sm:$0xff] %v2354_v51  }
 0x155   : > { %v1302_v56 = vadd.f32 %v1301_v3, %v1229_v9 }
 0x156   : > { %v1084_v5 = vpop.f32.mrf.mxu1  ;;  %v1303_v18 = vpop.f32.mrf.mxu0 }
 0x157   : > { %v1233_v44 = vpop.f32.mrf.mxu3  ;;  %v1085_v14 = vadd.f32 %v1084_v5, %v2977_v16  ;;  %v1165_v20 = vpop.f32.mrf.mxu2  ;;  %v1372_v17 = vmul.f32 0.2, %v1302_v56  ;;  %vm1347_vm13 = vcmp.ge.f32.partialorder %v1302_v56, 0.0 }
 0x159   : > { %v1158_v26 = vadd.f32 %v1157_v30, %v1085_v14  ;;  %v1397_v35 = vsel %vm1347_vm13, %v1302_v56, %v1372_v17 }
 0x15b   : > { %v1231_v57 = vadd.f32 %v1230_v43, %v1158_v26 }
 0x15d   : > { %v1304_v29 = vadd.f32 %v1303_v18, %v1231_v57 }
 0x15e   : > { %v1087_v31 = vpop.f32.mrf.mxu1  ;;  %v1306_v33 = vpop.f32.mrf.mxu0 }
 0x15f   : > { %v1235_v6 = vpop.f32.mrf.mxu3  ;;  %vm1348_vm14 = vcmp.ge.f32.partialorder %v1304_v29, 0.0  ;;  %v1373_v34 = vmul.f32 0.2, %v1304_v29  ;;  %v1088_v12 = vadd.f32 %v1087_v31, %v2990_v38  ;;  %v1167_v49 = vpop.f32.mrf.mxu2 }
 0x161   : > { %v1398_v19 = vsel %vm1348_vm14, %v1304_v29, %v1373_v34  ;;  %v1161_v22 = vadd.f32 %v1160_v58, %v1088_v12 }
 0x162   : > { %v2359_v16 = vpack.c.bf16 %v1398_v19, %v1397_v35 }
 0x163   : > { %v1234_v48 = vadd.f32 %v1233_v44, %v1161_v22 }
 0x164   : > { %2391 = vst [vmem:[%s3025_s12 + $0x30] sm:$0xff] %v2359_v16  }
 0x165   : > { %v1307_v30 = vadd.f32 %v1306_v33, %v1234_v48 }
 0x166   : > { %v1089_v27 = vpop.f32.mrf.mxu1  ;;  %v1308_v36 = vpop.f32.mrf.mxu0 }
 0x167   : > { %v1238_v21 = vpop.f32.mrf.mxu3  ;;  %v1090_v1 = vadd.f32 %v1089_v27, %v2996_v47  ;;  %v1170_v41 = vpop.f32.mrf.mxu2  ;;  %v1374_v32 = vmul.f32 0.2, %v1307_v30  ;;  %vm1349_vm15 = vcmp.ge.f32.partialorder %v1307_v30, 0.0 }
 0x169   : > { %v1163_v46 = vadd.f32 %v1162_v37, %v1090_v1  ;;  %v1399_v58 = vsel %vm1349_vm15, %v1307_v30, %v1374_v32 }
 0x16b   : > { %v1236_v52 = vadd.f32 %v1235_v6, %v1163_v46 }
 0x16d   : > { %v1309_v25 = vadd.f32 %v1308_v36, %v1236_v52 }
 0x16e   : > { %v1092_v53 = vpop.f32.mrf.mxu1  ;;  %v1311_v42 = vpop.f32.mrf.mxu0 }
 0x16f   : > { %v1240_v38 = vpop.f32.mrf.mxu3  ;;  %vm1350_vm0 = vcmp.ge.f32.partialorder %v1309_v25, 0.0  ;;  %v1375_v11 = vmul.f32 0.2, %v1309_v25  ;;  %v1093_v55 = vadd.f32 %v1092_v53, %v2919_v28  ;;  %v1172_v40 = vpop.f32.mrf.mxu2 }
 0x171   : > { %v1400_v59 = vsel %vm1350_vm0, %v1309_v25, %v1375_v11  ;;  %v1166_v60 = vadd.f32 %v1165_v20, %v1093_v55 }
 0x172   : > { %v2364_v47 = vpack.c.bf16 %v1400_v59, %v1399_v58 }
 0x173   : > { %v1239_v62 = vadd.f32 %v1238_v21, %v1166_v60 }
 0x174   : > { %2392 = vst [vmem:[%s3025_s12 + $0x38] sm:$0xff] %v2364_v47  }
 0x175   : > { %v1312_v61 = vadd.f32 %v1311_v42, %v1239_v62 }
 0x176   : > { %v1094_v23 = vpop.f32.mrf.mxu1  ;;  %v1313_v43 = vpop.f32.mrf.mxu0 }
 0x177   : > { %v1243_v0 = vpop.f32.mrf.mxu3  ;;  %v1095_v63 = vadd.f32 %v1094_v23, %v2938_v45  ;;  %v1175_v3 = vpop.f32.mrf.mxu2  ;;  %v1376_v7 = vmul.f32 0.2, %v1312_v61  ;;  %vm1351_vm1 = vcmp.ge.f32.partialorder %v1312_v61, 0.0 }
 0x179   : > { %v1168_v4 = vadd.f32 %v1167_v49, %v1095_v63  ;;  %v1401_v18 = vsel %vm1351_vm1, %v1312_v61, %v1376_v7 }
 0x17b   : > { %v1241_v37 = vadd.f32 %v1240_v38, %v1168_v4 }
 0x17d   : > { %v1314_v10 = vadd.f32 %v1313_v43, %v1241_v37 }
 0x17e   : > { %v1097_v13 = vpop.f32.mrf.mxu1  ;;  %v1316_v51 = vpop.f32.mrf.mxu0 }
 0x17f   : > { %v1245_v28 = vpop.f32.mrf.mxu3  ;;  %vm1352_vm2 = vcmp.ge.f32.partialorder %v1314_v10, 0.0  ;;  %v1377_v9 = vmul.f32 0.2, %v1314_v10  ;;  %v1098_v44 = vadd.f32 %v1097_v13, %v2950_v54  ;;  %v1177_v5 = vpop.f32.mrf.mxu2 }
 0x181   : > { %v1402_v14 = vsel %vm1352_vm2, %v1314_v10, %v1377_v9  ;;  %v1171_v20 = vadd.f32 %v1170_v41, %v1098_v44 }
 0x182   : > { %v2369_v45 = vpack.c.bf16 %v1402_v14, %v1401_v18 }
 0x183   : > { %v1244_v56 = vadd.f32 %v1243_v0, %v1171_v20 }
 0x184   : > { %2393 = vst [vmem:[%s3025_s12 + $0x40] sm:$0xff] %v2369_v45  }
 0x185   : > { %v1317_v31 = vadd.f32 %v1316_v51, %v1244_v56 }
 0x186   : > { %v1099_v57 = vpop.f32.mrf.mxu1  ;;  %v1318_v17 = vpop.f32.mrf.mxu0 }
 0x187   : > { %v1248_v26 = vpop.f32.mrf.mxu3  ;;  %v1100_v29 = vadd.f32 %v1099_v57, %v2969_v8  ;;  %v1180_v6 = vpop.f32.mrf.mxu2  ;;  %v1378_v12 = vmul.f32 0.2, %v1317_v31  ;;  %vm1353_vm3 = vcmp.ge.f32.partialorder %v1317_v31, 0.0 }
 0x189   : > { %v1173_v33 = vadd.f32 %v1172_v40, %v1100_v29  ;;  %v1403_v21 = vsel %vm1353_vm3, %v1317_v31, %v1378_v12 }
 0x18b   : > { %v1246_v34 = vadd.f32 %v1245_v28, %v1173_v33 }
 0x18d   : > { %v1319_v49 = vadd.f32 %v1318_v17, %v1246_v34 }
 0x18e   : > { %v1102_v35 = vpop.f32.mrf.mxu1  ;;  %v1321_v19 = vpop.f32.mrf.mxu0 }
 0x18f   : > { %v1250_v54 = vpop.f32.mrf.mxu3  ;;  %vm1354_vm4 = vcmp.ge.f32.partialorder %v1319_v49, 0.0  ;;  %v1379_v22 = vmul.f32 0.2, %v1319_v49  ;;  %v1103_v16 = vadd.f32 %v1102_v35, %v2912_v24  ;;  %v1182_v48 = vpop.f32.mrf.mxu2 }
 0x191   : > { %v1404_v27 = vsel %vm1354_vm4, %v1319_v49, %v1379_v22  ;;  %v1176_v36 = vadd.f32 %v1175_v3, %v1103_v16 }
 0x192   : > { %v2374_v8 = vpack.c.bf16 %v1404_v27, %v1403_v21 }
 0x193   : > { %v1249_v1 = vadd.f32 %v1248_v26, %v1176_v36 }
 0x194   : > { %2394 = vst [vmem:[%s3025_s12 + $0x48] sm:$0xff] %v2374_v8  }
 0x195   : > { %v1322_v25 = vadd.f32 %v1321_v19, %v1249_v1 }
 0x196   : > { %v1104_v30 = vpop.f32.mrf.mxu1  ;;  %v1323_v46 = vpop.f32.mrf.mxu0 }
 0x197   : > { %v1253_v41 = vpop.f32.mrf.mxu3  ;;  %v1105_v52 = vadd.f32 %v1104_v30, %v2929_v39  ;;  %v1185_v32 = vpop.f32.mrf.mxu2  ;;  %v1380_v42 = vmul.f32 0.2, %v1322_v25  ;;  %vm1355_vm5 = vcmp.ge.f32.partialorder %v1322_v25, 0.0 }
 0x199   : > { %v1178_v38 = vadd.f32 %v1177_v5, %v1105_v52  ;;  %v1405_v47 = vsel %vm1355_vm5, %v1322_v25, %v1380_v42 }
 0x19b   : > { %v1251_v53 = vadd.f32 %v1250_v54, %v1178_v38 }
 0x19d   : > { %v1324_v11 = vadd.f32 %v1323_v46, %v1251_v53 }
 0x19e   : > { %v1107_v55 = vpop.f32.mrf.mxu1  ;;  %v1326_v40 = vpop.f32.mrf.mxu0 }
 0x19f   : > { %v1255_v24 = vpop.f32.mrf.mxu3  ;;  %vm1356_vm6 = vcmp.ge.f32.partialorder %v1324_v11, 0.0  ;;  %v1381_v58 = vmul.f32 0.2, %v1324_v11  ;;  %v1108_v59 = vadd.f32 %v1107_v55, %v2943_v50  ;;  %v1187_v60 = vpop.f32.mrf.mxu2 }
 0x1a1   : > { %v1406_v62 = vsel %vm1356_vm6, %v1324_v11, %v1381_v58  ;;  %v1181_v0 = vadd.f32 %v1180_v6, %v1108_v59 }
 0x1a2   : > { %v2379_v39 = vpack.c.bf16 %v1406_v62, %v1405_v47 }
 0x1a3   : > { %v1254_v23 = vadd.f32 %v1253_v41, %v1181_v0 }
 0x1a4   : > { %2395 = vst [vmem:[%s3025_s12 + $0x50] sm:$0xff] %v2379_v39  }
 0x1a5   : > { %v1327_v4 = vadd.f32 %v1326_v40, %v1254_v23 }
 0x1a6   : > { %v1109_v63 = vpop.f32.mrf.mxu1  ;;  %v1328_v3 = vpop.f32.mrf.mxu0 }
 0x1a7   : > { %v1258_v43 = vpop.f32.mrf.mxu3  ;;  %v1110_v61 = vadd.f32 %v1109_v63, %v2960_v2  ;;  %v1382_v10 = vmul.f32 0.2, %v1327_v4  ;;  %vm1357_vm7 = vcmp.ge.f32.partialorder %v1327_v4, 0.0 }
 0x1a9   : > { %v1183_v37 = vadd.f32 %v1182_v48, %v1110_v61  ;;  %v1407_v5 = vsel %vm1357_vm7, %v1327_v4, %v1382_v10 }
 0x1ab   : > { %v1256_v7 = vadd.f32 %v1255_v24, %v1183_v37 }
 0x1ad   : > { %v1329_v28 = vadd.f32 %v1328_v3, %v1256_v7 }
 0x1ae   : > { %v1112_v50 = vpop.f32.mrf.mxu1  ;;  %v1331_v51 = vpop.f32.mrf.mxu0 }
 0x1af   : > { %v1260_v13 = vpop.f32.mrf.mxu3  ;;  %vm1358_vm8 = vcmp.ge.f32.partialorder %v1329_v28, 0.0  ;;  %v1383_v9 = vmul.f32 0.2, %v1329_v28  ;;  %v1113_v44 = vadd.f32 %v1112_v50, %v2974_v15 }
 0x1b1   : > { %v1408_v18 = vsel %vm1358_vm8, %v1329_v28, %v1383_v9  ;;  %v1186_v14 = vadd.f32 %v1185_v32, %v1113_v44 }
 0x1b2   : > { %v2384_v20 = vpack.c.bf16 %v1408_v18, %v1407_v5 }
 0x1b3   : > { %v1259_v2 = vadd.f32 %v1258_v43, %v1186_v14 }
 0x1b4   : > { %2396 = vst [vmem:[%s3025_s12 + $0x58] sm:$0xff] %v2384_v20  }
 0x1b5   : > { %v1332_v45 = vadd.f32 %v1331_v51, %v1259_v2 }
 0x1b6   : > { %v1114_v56 = vpop.f32.mrf.mxu1  ;;  %v1333_v26 = vpop.f32.mrf.mxu0 }
 0x1b7   : > { %vm1359_vm9 = vcmp.ge.f32.partialorder %v1332_v45, 0.0  ;;  %v1384_v57 = vmul.f32 0.2, %v1332_v45 }
 0x1b8   : > { %1466 = sbr.rel (!%p2691_p3) target bundleno = 517 (0x205), region = 36 }
 0x1b9   : > { %v1409_v17 = vsel %vm1359_vm9, %v1332_v45, %v1384_v57 }
 0x1ba   : > { %v1434_v29 = vpack.c.bf16 %v1409_v17, %v1409_v17 }
 0x1bc   : > { %1459 = vst [vmem:[%s3025_s12 + $0x60] sm:$0xf] %v1434_v29 }
 0x1bd   : > { %s3233_s23 = smov (!%p1469_p9, %s1468_s23), 25 }
 0x1be   : > { %s2217_s19 = sshll.u32 %s3233_s23, 2 }
 0x1bf   : > { %p2220_p10 = scmp.eq.s32.totalorder %s2217_s19, 0 }
 0x1c0   : > { %2529 = sdivrem.u32 (!%p2220_p10), %s3233_s23, 25 }
 0x1c1   : > { %1478 = sbr.rel (%p2220_p10) target bundleno = 517 (0x205), region = 40 }
 0x1c9   : > { %s3100_s20 = spop.drf %2529 }
 0x1ca   : > { %s2531_s21 = spop.drf %2529  ;;  %p2221_p11 = scmp.le.s32.totalorder %s3100_s20, 0 }
 0x1cb   : > { %s3221_s14 = smov (!%p2221_p11), %s3094_s17  ;;  %s3222_s29 = smov (!%p2221_p11), %s3025_s12 }
 0x1cc   : > { %1742 = sbr.rel (%p2221_p11) target bundleno = 491 (0x1eb), region = 118  ;;  %s3109_s24 = smov (!%p2221_p11), 0  }
 0x1cd   : > { %s3111_s25 = smov (!%p2221_p11), 0  }
 0x1d1 LB: >> { %v1496_v15 = vld [vmem:[%s2613_s29] sm:$0xf]  ;;  %v1498_v6 = vld [vmem:[%s2613_s29 + $0x4] sm:$0xf]  ;;  %v1500_v31 = vld [vmem:[%s2613_s29 + $0x8] sm:$0xf]  ;;  %s2621_s25 = sphi %s3111_s25, %s1490_s25   ;;  %s2617_s24 = sphi %s3109_s24, %s3225_s24   ;;  %s2613_s29 = sphi %s3222_s29, %s3224_s29   ;;  %s2609_s14 = sphi %s3221_s14, %s3223_s14  }
 0x1d2   : >> { %1497 = vst [vmem:[%s2609_s14] sm:$0xf] %v1496_v15  ;;  %v1502_v33 = vld [vmem:[%s2613_s29 + $0xc] sm:$0xf]  ;;  %v1504_v34 = vld [vmem:[%s2613_s29 + $0x10] sm:$0xf]  ;;  %s1546_s26 = sadd.s32 1, %s2617_s24 }
 0x1d3   : >> { %1499 = vst [vmem:[%s2609_s14 + $0x4] sm:$0xf] %v1498_v6  ;;  %v1506_v12 = vld [vmem:[%s2613_s29 + $0x14] sm:$0xf]  ;;  %v1508_v49 = vld [vmem:[%s2613_s29 + $0x18] sm:$0xf]  ;;  %p1547_p12 = scmp.ge.s32.totalorder %s1546_s26, %s3100_s20 }
 0x1d4   : >> { %1501 = vst [vmem:[%s2609_s14 + $0x8] sm:$0xf] %v1500_v31  ;;  %v1510_v54 = vld [vmem:[%s2613_s29 + $0x1c] sm:$0xf]  ;;  %v1512_v35 = vld [vmem:[%s2613_s29 + $0x20] sm:$0xf] }
 0x1d5   : >> { %1503 = vst [vmem:[%s2609_s14 + $0xc] sm:$0xf] %v1502_v33  ;;  %v1514_v19 = vld [vmem:[%s2613_s29 + $0x24] sm:$0xf]  ;;  %v1516_v22 = vld [vmem:[%s2613_s29 + $0x28] sm:$0xf] }
 0x1d6   : >> { %1505 = vst [vmem:[%s2609_s14 + $0x10] sm:$0xf] %v1504_v34  ;;  %v1518_v16 = vld [vmem:[%s2613_s29 + $0x2c] sm:$0xf]  ;;  %v1520_v48 = vld [vmem:[%s2613_s29 + $0x30] sm:$0xf] }
 0x1d7   : >> { %1507 = vst [vmem:[%s2609_s14 + $0x14] sm:$0xf] %v1506_v12  ;;  %v1522_v21 = vld [vmem:[%s2613_s29 + $0x34] sm:$0xf]  ;;  %v1524_v27 = vld [vmem:[%s2613_s29 + $0x38] sm:$0xf] }
 0x1d8   : >> { %1509 = vst [vmem:[%s2609_s14 + $0x18] sm:$0xf] %v1508_v49  ;;  %s3235_s26 = smov (%p1547_p12, %s1546_s26), 0  ;;  %v1526_v36 = vld [vmem:[%s2613_s29 + $0x3c] sm:$0xf]  ;;  %s1490_s25 = sadd.s32 1, %s2621_s25  }
 0x1d9   : >> { %1511 = vst [vmem:[%s2609_s14 + $0x1c] sm:$0xf] %v1510_v54  ;;  %v1528_v8 = vld [vmem:[%s2613_s29 + $0x40] sm:$0xf]  ;;  %s1549_s27 = smul.u32 100, %s3235_s26  ;;  %p1489_p13 = scmp.ge.s32.totalorder %s1490_s25, %s3100_s20 }
 0x1da   : >> { %1513 = vst [vmem:[%s2609_s14 + $0x20] sm:$0xf] %v1512_v35  ;;  %v1530_v1 = vld [vmem:[%s2613_s29 + $0x44] sm:$0xf]  ;;  %v1532_v41 = vld [vmem:[%s2613_s29 + $0x48] sm:$0xf]  ;;  %s3225_s24 = smov %s3235_s26 }
 0x1db   : >> { %1515 = vst [vmem:[%s2609_s14 + $0x24] sm:$0xf] %v1514_v19  ;;  %s1551_s28 = scalar_lea.vmem %s3025_s12, %s1549_s27 [#allocation2]   ;;  %s1552_s30 = scalar_lea.vmem %s3094_s17, %s1549_s27   ;;  %v1534_v30 = vld [vmem:[%s2613_s29 + $0x4c] sm:$0xf]  ;;  %v1536_v46 = vld [vmem:[%s2613_s29 + $0x50] sm:$0xf] }
 0x1dc   : >> { %1517 = vst [vmem:[%s2609_s14 + $0x28] sm:$0xf] %v1516_v22  ;;  %v1538_v52 = vld [vmem:[%s2613_s29 + $0x54] sm:$0xf]  ;;  %v1540_v32 = vld [vmem:[%s2613_s29 + $0x58] sm:$0xf] }
 0x1dd   : >> { %1519 = vst [vmem:[%s2609_s14 + $0x2c] sm:$0xf] %v1518_v16  ;;  %v1542_v25 = vld [vmem:[%s2613_s29 + $0x5c] sm:$0xf]  ;;  %v1544_v38 = vld [vmem:[%s2613_s29 + $0x60] sm:$0xf]  ;;  %s3224_s29 = smov %s1551_s28 }
 0x1de   : >> { %1521 = vst [vmem:[%s2609_s14 + $0x30] sm:$0xf] %v1520_v48 }
 0x1df   : >> { %1523 = vst [vmem:[%s2609_s14 + $0x34] sm:$0xf] %v1522_v21 }
 0x1e0   : >> { %1525 = vst [vmem:[%s2609_s14 + $0x38] sm:$0xf] %v1524_v27 }
 0x1e1   : >> { %1527 = vst [vmem:[%s2609_s14 + $0x3c] sm:$0xf] %v1526_v36 }
 0x1e2   : >> { %1529 = vst [vmem:[%s2609_s14 + $0x40] sm:$0xf] %v1528_v8 }
 0x1e3   : >> { %1531 = vst [vmem:[%s2609_s14 + $0x44] sm:$0xf] %v1530_v1 }
 0x1e4   : >> { %1533 = vst [vmem:[%s2609_s14 + $0x48] sm:$0xf] %v1532_v41 }
 0x1e5   : >> { %1535 = vst [vmem:[%s2609_s14 + $0x4c] sm:$0xf] %v1534_v30 }
 0x1e6   : >> { %1537 = vst [vmem:[%s2609_s14 + $0x50] sm:$0xf] %v1536_v46  ;;  %1492 = sbr.rel (!%p1489_p13) target bundleno = 465 (0x1d1), region = 124 }
 0x1e7   : >> { %1539 = vst [vmem:[%s2609_s14 + $0x54] sm:$0xf] %v1538_v52 }
 0x1e8   : >> { %1541 = vst [vmem:[%s2609_s14 + $0x58] sm:$0xf] %v1540_v32 }
 0x1e9   : >> { %1543 = vst [vmem:[%s2609_s14 + $0x5c] sm:$0xf] %v1542_v25 }
 0x1ea   : >> { %1545 = vst [vmem:[%s2609_s14 + $0x60] sm:$0xf] %v1544_v38  ;;  %s3223_s14 = smov %s1552_s30 }
 0x1eb PF: > { %2532 = sdivrem.u32 %s3233_s23, 25 }
 0x1ec   : > { %s2222_s4 = smul.u32 100, %s3100_s20 }
 0x1ee   : > { %s3196_s5 = scalar_lea.vmem %s3025_s12, %s2222_s4 [#allocation2]   ;;  %s1559_s6 = scalar_lea.vmem %s3094_s17, %s2222_s4  }
 0x1f4   : > { %s2533_s7 = spop.drf %2532 }
 0x1f5   : > { %s2534_s8 = spop.drf %2532 }
 0x1f6   : > { %p2224_p0 = scmp.le.s32.totalorder %s2534_s8, 0 }
 0x1f7   : > { %s2623_s9 = smov (!%p2224_p0), %s1559_s6   ;;  %s2627_s10 = smov (!%p2224_p0), %s3196_s5  }
 0x1f8   : > { %1756 = sbr.rel (%p2224_p0) target bundleno = 517 (0x205), region = 129  ;;  %s2631_s11 = smov (!%p2224_p0), 0  }
 0x1f9   : > { %s2635_s19 = smov (!%p2224_p0), 0  }
 0x1fd LB: >> { %v1569_v53 = vld [vmem:[%s2629_s10] sm:$0xf]  ;;  %s1571_s12 = sadd.s32 1, %s2633_s11  ;;  %s1563_s19 = sadd.s32 1, %s2637_s19   ;;  %s2637_s19 = sphi %s2635_s19, %s1563_s19   ;;  %s2633_s11 = sphi %s2631_s11, %s2632_s11   ;;  %s2629_s10 = sphi %s2627_s10, %s1576_s10   ;;  %s2625_s9 = sphi %s2623_s9, %s1577_s9  }
 0x1fe   : >> { %1570 = vst [vmem:[%s2625_s9] sm:$0xf] %v1569_v53  ;;  %p1572_p1 = scmp.ge.s32.totalorder %s1571_s12, %s2534_s8  ;;  %p1562_p2 = scmp.ge.s32.totalorder %s1563_s19, %s2534_s8 }
 0x200   : >> { %s3237_s12 = smov (%p1572_p1, %s1571_s12), 0  ;;  %1565 = sbr.rel (!%p1562_p2) target bundleno = 509 (0x1fd), region = 135 }
 0x201   : >> { %s2225_s23 = sshll.u32 %s3237_s12, 2  ;;  %s2632_s11 = smov %s3237_s12  }
 0x202   : >> { %s1576_s10 = scalar_lea.vmem %s3196_s5, %s2225_s23 [#allocation2]   ;;  %s1577_s9 = scalar_lea.vmem %s1559_s6, %s2225_s23  }
 0x205 PF: > { %s13_s16 = sadd.s32 1, %s2605_s16   ;;  %s3226_s12 = smov %s2593_s13 }
 0x206   : > { %p10_p3 = scmp.ge.s32.totalorder %s13_s16, 4   ;;  %s3227_s13 = smov %s2700_s22 }
 0x207   : > { %s3228_s14 = smov %s2601_s15  ;;  %s3229_s15 = smov %s3231_s18 }
 0x208   :  { %12 = sbr.rel (!%p10_p3) target bundleno = 3 (0x3), region = 146 }

// kernel: discriminator_forward.11
= control target key start
LH: loop header
LB: loop body
LE: loop exit
PB: predicated region body
PF: predicated region fallthrough
CT: control target
= control target key end

     0   :  { %vm131_vm0 = vcmask 1041408   ;;  %vm247_vm7 = vcmask 1041409   ;;  %vm250_vm9 = vcmask 1024   ;;  %s435_s0 = inlined_call_operand.vmem [shape: bf16[2,98,128], index: 0, kind: input, shape index: {}]   ;;  %s436_s1 = inlined_call_operand.vmem [shape: f32[98,128], index: 1, kind: input, shape index: {}]   ;;  %s437_s2 = inlined_call_operand.<no memory space> [shape: f32[1,1], index: 2, kind: input, shape index: {}]   ;;  %s438_s3 = inlined_call_operand.vmem [shape: f32[2,1], index: 3, kind: output, shape index: {}]  }
   0x1   :  { %v29_v0 = vld [vmem:[%s435_s0 + $0x34] sm:$0xf]  ;;  %v68_v1 = vld [vmem:[%s436_s1] sm:$0xff]  ;;  %v307_v5 = vld [vmem:[%s435_s0 + $0x38] sm:$0xff]  }
   0x2   :  { %v259_v2 = vld [vmem:[%s435_s0] sm:$0xff]   ;;  %v55_v3 = vunpack.c.l.bf16 %v29_v0  ;;  %v70_v6 = vld [vmem:[%s436_s1 + $0x10] sm:$0xff]  ;;  %v285_v7 = vunpack.c.h.bf16 %v307_v5  ;;  %v302_v10 = vld [vmem:[%s435_s0 + $0x8] sm:$0xff]   ;;  %v284_v12 = vunpack.c.l.bf16 %v307_v5 }
   0x3   :  { %v260_v4 = vunpack.c.l.bf16 %v259_v2  ;;  %v261_v13 = vunpack.c.h.bf16 %v259_v2  ;;  %v69_v14 = vld [vmem:[%s436_s1 + $0x8] sm:$0xff]  ;;  %v264_v15 = vunpack.c.l.bf16 %v302_v10  ;;  %v308_v19 = vld [vmem:[%s435_s0 + $0x40] sm:$0xff]   ;;  %v265_v21 = vunpack.c.h.bf16 %v302_v10  ;;  %v71_v22 = vld [vmem:[%s436_s1 + $0x18] sm:$0xff] }
   0x4   :  { %v94_v8 = vmul.f32 %v68_v1, %v55_v3  ;;  %v96_v11 = vmul.f32 %v285_v7, %v70_v6  ;;  %v95_v16 = vmul.f32 %v284_v12, %v69_v14  ;;  %v288_v20 = vunpack.c.l.bf16 %v308_v19  ;;  %v72_v24 = vld [vmem:[%s436_s1 + $0x20] sm:$0xff]  ;;  %v303_v28 = vld [vmem:[%s435_s0 + $0x10] sm:$0xff]   ;;  %v309_v29 = vld [vmem:[%s435_s0 + $0x48] sm:$0xff]  }
   0x5   :  { %v81_v9 = vmul.f32 %v260_v4, %v68_v1  ;;  %v82_v17 = vmul.f32 %v261_v13, %v69_v14  ;;  %v83_v18 = vmul.f32 %v264_v15, %v70_v6  ;;  %v289_v23 = vunpack.c.h.bf16 %v308_v19  ;;  %v73_v32 = vld [vmem:[%s436_s1 + $0x28] sm:$0xff]  ;;  %v304_v37 = vld [vmem:[%s435_s0 + $0x18] sm:$0xff]   ;;  %v310_v38 = vld [vmem:[%s435_s0 + $0x50] sm:$0xff]  }
   0x6   :  { %135 = vadd.xlane.f32.xlu0 %v94_v8  ;;  %139 = vadd.xlane.f32.xlu2 %v96_v11  ;;  %v97_v25 = vmul.f32 %v288_v20, %v71_v22  ;;  %v84_v26 = vmul.f32 %v265_v21, %v71_v22  ;;  %v268_v30 = vunpack.c.l.bf16 %v303_v28  ;;  %v292_v31 = vunpack.c.l.bf16 %v309_v29  ;;  %v74_v41 = vld [vmem:[%s436_s1 + $0x30] sm:$0xff]  ;;  %v75_v43 = vld [vmem:[%s436_s1 + $0x38] sm:$0xff]  ;;  %v305_v47 = vld [vmem:[%s435_s0 + $0x20] sm:$0xff]  }
   0x7   :  { %107 = vadd.xlane.f32.xlu1 %v81_v9  ;;  %v98_v27 = vmul.f32 %v289_v23, %v72_v24  ;;  %v269_v33 = vunpack.c.h.bf16 %v303_v28  ;;  %v293_v39 = vunpack.c.h.bf16 %v309_v29  ;;  %v272_v40 = vunpack.c.l.bf16 %v304_v37  ;;  %v76_v50 = vld [vmem:[%s436_s1 + $0x40] sm:$0xff]  ;;  %v311_v55 = vld [vmem:[%s435_s0 + $0x58] sm:$0xff]   ;;  %v77_v58 = vld [vmem:[%s436_s1 + $0x48] sm:$0xff] }
   0x8   :  { %v85_v34 = vmul.f32 %v268_v30, %v72_v24  ;;  %v99_v35 = vmul.f32 %v292_v31, %v73_v32  ;;  %v296_v42 = vunpack.c.l.bf16 %v310_v38  ;;  %v273_v48 = vunpack.c.h.bf16 %v304_v37  ;;  %v78_v60 = vld [vmem:[%s436_s1 + $0x50] sm:$0xff]  ;;  %v41_v61 = vld [vmem:[%s435_s0 + $0x64] sm:$0x1]  ;;  %v306_v1 = vld [vmem:[%s435_s0 + $0x28] sm:$0xff]  }
   0x9   :  { %v86_v36 = vmul.f32 %v269_v33, %v73_v32  ;;  %v100_v44 = vmul.f32 %v293_v39, %v74_v41  ;;  %v87_v45 = vmul.f32 %v272_v40, %v74_v41  ;;  %v297_v49 = vunpack.c.h.bf16 %v310_v38  ;;  %v40_v2 = vld [vmem:[%s435_s0 + $0x60] sm:$0xf]  ;;  %v79_v7 = vld [vmem:[%s436_s1 + $0x58] sm:$0xff]  ;;  %v28_v9 = vld [vmem:[%s435_s0 + $0x30] sm:$0x1] }
   0xa   :  { %v101_v46 = vmul.f32 %v296_v42, %v75_v43  ;;  %v276_v51 = vunpack.c.l.bf16 %v305_v47  ;;  %v88_v52 = vmul.f32 %v273_v48, %v75_v43  ;;  %v300_v56 = vunpack.c.l.bf16 %v311_v55  ;;  %v80_v4 = vld [vmem:[%s436_s1 + $0x60] sm:$0x3] }
   0xb   :  { %v102_v53 = vmul.f32 %v297_v49, %v76_v50  ;;  %v277_v57 = vunpack.c.h.bf16 %v305_v47  ;;  %v301_v59 = vunpack.c.h.bf16 %v311_v55  ;;  %v67_v3 = vunpack.c.l.bf16 %v41_v61 }
   0xc   :  { %v89_v54 = vmul.f32 %v276_v51, %v76_v50  ;;  %v103_v62 = vmul.f32 %v300_v56, %v77_v58  ;;  %v280_v5 = vunpack.c.l.bf16 %v306_v1  ;;  %v66_v6 = vunpack.c.l.bf16 %v40_v2 }
   0xd   :  { %v90_v63 = vmul.f32 %v277_v57, %v77_v58  ;;  %v104_v0 = vmul.f32 %v301_v59, %v78_v60  ;;  %v106_v8 = vmul.f32 %v80_v4, %v67_v3  ;;  %v54_v12 = vunpack.c.l.bf16 %v28_v9 }
   0xe   :  { %137 = vadd.xlane.f32.xlu0 %v95_v16  ;;  %111 = vadd.xlane.f32.xlu2 %v83_v18  ;;  %v91_v10 = vmul.f32 %v280_v5, %v78_v60  ;;  %v105_v11 = vmul.f32 %v79_v7, %v66_v6  ;;  %v281_v14 = vunpack.c.h.bf16 %v306_v1  ;;  %v8_v30 = vstv %s437_s2 }
   0xf   :  { %109 = vadd.xlane.f32.xlu1 %v82_v17  ;;  %v159_v13 = vsel %vm131_vm0, %v106_v8, 0.0  ;;  %v93_v15 = vmul.f32 %v80_v4, %v54_v12  ;;  %9 = vst [vmem:[#allocation2] sm:$0x1] %v8_v30 }
  0x10   :  { %v92_v16 = vmul.f32 %v281_v14, %v79_v7 }
  0x11   :  { %v132_v17 = vsel %vm131_vm0, %v93_v15, 0.0 }
  0x16   :  { %141 = vadd.xlane.f32.xlu0 %v97_v25  ;;  %143 = vadd.xlane.f32.xlu2 %v98_v27 }
  0x17   :  { %113 = vadd.xlane.f32.xlu1 %v84_v26 }
  0x1e   :  { %115 = vadd.xlane.f32.xlu0 %v85_v34  ;;  %117 = vadd.xlane.f32.xlu2 %v86_v36 }
  0x1f   :  { %145 = vadd.xlane.f32.xlu1 %v99_v35 }
  0x26   :  { %147 = vadd.xlane.f32.xlu0 %v100_v44  ;;  %149 = vadd.xlane.f32.xlu2 %v101_v46 }
  0x27   :  { %119 = vadd.xlane.f32.xlu1 %v87_v45 }
  0x2e   :  { %121 = vadd.xlane.f32.xlu0 %v88_v52  ;;  %123 = vadd.xlane.f32.xlu2 %v89_v54 }
  0x2f   :  { %151 = vadd.xlane.f32.xlu1 %v102_v53 }
  0x36   :  { %153 = vadd.xlane.f32.xlu0 %v103_v62  ;;  %155 = vadd.xlane.f32.xlu2 %v104_v0 }
  0x37   :  { %125 = vadd.xlane.f32.xlu1 %v90_v63 }
  0x3e   :  { %127 = vadd.xlane.f32.xlu0 %v91_v10  ;;  %160 = vadd.xlane.f32.xlu2 %v159_v13 }
  0x3f   :  { %157 = vadd.xlane.f32.xlu1 %v105_v11  ;;  %v312_v11 = vld [vmem:[#allocation2] ss:$0 sm:$0xff] }
  0x46   :  { %129 = vadd.xlane.f32.xlu0 %v92_v16 }
  0x47   :  { %133 = vadd.xlane.f32.xlu1 %v132_v17 }
  0x79   :  { %v136_v18 = vpop.xlane.xlu0 %135  ;;  %v140_v20 = vpop.xlane.xlu2 %139 }
  0x7a   :  { %v108_v19 = vpop.xlane.xlu1 %107 }
  0x81   :  { %v138_v21 = vpop.xlane.xlu0 %137  ;;  %v112_v23 = vpop.xlane.xlu2 %111 }
  0x82   :  { %v110_v22 = vpop.xlane.xlu1 %109  ;;  %v181_v31 = vadd.f32 %v138_v21, %v136_v18 }
  0x83   :  { %v162_v37 = vadd.f32 %v110_v22, %v108_v19 }
  0x84   :  { %v182_v34 = vadd.f32 %v181_v31, %v140_v20 }
  0x85   :  { %v163_v43 = vadd.f32 %v162_v37, %v112_v23 }
  0x89   :  { %v142_v24 = vpop.xlane.xlu0 %141  ;;  %v144_v26 = vpop.xlane.xlu2 %143 }
  0x8a   :  { %v114_v25 = vpop.xlane.xlu1 %113  ;;  %v183_v36 = vadd.f32 %v182_v34, %v142_v24 }
  0x8b   :  { %v164_v45 = vadd.f32 %v163_v43, %v114_v25 }
  0x8c   :  { %v184_v38 = vadd.f32 %v183_v36, %v144_v26 }
  0x91   :  { %v116_v27 = vpop.xlane.xlu0 %115  ;;  %v118_v29 = vpop.xlane.xlu2 %117 }
  0x92   :  { %v146_v28 = vpop.xlane.xlu1 %145  ;;  %v165_v46 = vadd.f32 %v164_v45, %v116_v27 }
  0x93   :  { %v185_v41 = vadd.f32 %v184_v38, %v146_v28 }
  0x94   :  { %v166_v52 = vadd.f32 %v165_v46, %v118_v29 }
  0x99   :  { %v148_v32 = vpop.xlane.xlu0 %147  ;;  %v150_v35 = vpop.xlane.xlu2 %149 }
  0x9a   :  { %v120_v33 = vpop.xlane.xlu1 %119  ;;  %v186_v44 = vadd.f32 %v185_v41, %v148_v32 }
  0x9b   :  { %v167_v54 = vadd.f32 %v166_v52, %v120_v33 }
  0x9c   :  { %v187_v47 = vadd.f32 %v186_v44, %v150_v35 }
  0xa1   :  { %v122_v39 = vpop.xlane.xlu0 %121  ;;  %v124_v42 = vpop.xlane.xlu2 %123 }
  0xa2   :  { %v152_v40 = vpop.xlane.xlu1 %151  ;;  %v168_v55 = vadd.f32 %v167_v54, %v122_v39 }
  0xa3   :  { %v188_v50 = vadd.f32 %v187_v47, %v152_v40 }
  0xa4   :  { %v169_v62 = vadd.f32 %v168_v55, %v124_v42 }
  0xa9   :  { %v154_v48 = vpop.xlane.xlu0 %153  ;;  %v156_v51 = vpop.xlane.xlu2 %155 }
  0xaa   :  { %v126_v49 = vpop.xlane.xlu1 %125  ;;  %v189_v53 = vadd.f32 %v188_v50, %v154_v48 }
  0xab   :  { %v170_v0 = vadd.f32 %v169_v62, %v126_v49 }
  0xac   :  { %v190_v56 = vadd.f32 %v189_v53, %v156_v51 }
  0xb1   :  { %v128_v57 = vpop.xlane.xlu0 %127  ;;  %v161_v60 = vpop.xlane.xlu2 %160 }
  0xb2   :  { %v158_v58 = vpop.xlane.xlu1 %157  ;;  %v192_v61 = vsel %vm131_vm0, %v161_v60, 0.0  ;;  %v171_v2 = vadd.f32 %v170_v0, %v128_v57 }
  0xb3   :  { %v191_v59 = vadd.f32 %v190_v56, %v158_v58 }
  0xb5   :  { %v193_v63 = vadd.f32 %v192_v61, %v191_v59 }
  0xb7   :  { %v194_v1 = vrot.slane %v193_v63, 4 }
  0xb9   :  { %v195_v3 = vadd.f32 %v194_v1, %v193_v63  ;;  %v130_v4 = vpop.xlane.xlu0 %129 }
  0xba   :  { %v134_v5 = vpop.xlane.xlu1 %133  ;;  %v172_v7 = vadd.f32 %v171_v2, %v130_v4 }
  0xbb   :  { %v196_v6 = vrot.slane %v195_v3, 2  ;;  %v173_v8 = vsel %vm131_vm0, %v134_v5, 0.0 }
  0xbc   :  { %v174_v10 = vadd.f32 %v173_v8, %v172_v7 }
  0xbd   :  { %v197_v9 = vadd.f32 %v196_v6, %v195_v3 }
  0xbe   :  { %v175_v13 = vrot.slane %v174_v10, 4 }
  0xbf   :  { %v198_v12 = vrot.slane %v197_v9, 1 }
  0xc0   :  { %v176_v15 = vadd.f32 %v175_v13, %v174_v10 }
  0xc1   :  { %v199_v14 = vadd.f32 %v198_v12, %v197_v9 }
  0xc2   :  { %v177_v17 = vrot.slane %v176_v15, 2 }
  0xc3   :  { %v205_v16 = vadd.f32 %v312_v11, %v199_v14 }
  0xc4   :  { %v178_v19 = vadd.f32 %v177_v17, %v176_v15 }
  0xc5   :  { %v257_v18 = vmul.f32 -1.442695, %v205_v16 }
  0xc6   :  { %v179_v20 = vrot.slane %v178_v19, 1 }
  0xc7   :  { %313 = vpow2.f32 %v257_v18 }
  0xc8   :  { %v180_v21 = vadd.f32 %v179_v20, %v178_v19 }
  0xca   :  { %v204_v22 = vadd.f32 %v312_v11, %v180_v21 }
  0xcc   :  { %v256_v24 = vmul.f32 -1.442695, %v204_v22 }
  0xcd   :  { %v314_v23 = vpop.eup %313 }
  0xce   :  { %v213_v25 = vadd.f32 1.0, %v314_v23  ;;  %315 = vpow2.f32 %v256_v24 }
  0xd0   :  { %317 = vrcp.f32 %v213_v25  ;;  %v240_v34 = vand.u32 2147483648, %v213_v25  ;;  %vm234_vm2 = vweird.f32 %v213_v25  ;;  %v238_v35 = vand.u32 2147483647, %v213_v25 }
  0xd2   :  { %v241_v39 = vor.u32 1.1754944e-38, %v240_v34  ;;  %vm239_vm4 = vcmp.eq.f32.partialorder %v238_v35, 8.507059e+37 }
  0xd4   :  { %v316_v26 = vpop.eup %315 }
  0xd5   :  { %v212_v28 = vadd.f32 1.0, %v316_v26 }
  0xd6   :  { %v318_v27 = vpop.eup %317 }
  0xd7   :  { %v230_v29 = vmul.f32 %v318_v27, %v213_v25  ;;  %319 = vrcp.f32 %v212_v28  ;;  %vm235_vm1 = vweird.f32 %v318_v27  ;;  %v225_v40 = vand.u32 2147483648, %v212_v28 }
  0xd8   :  { %vm236_vm3 = vmor %vm234_vm2, %vm235_vm1  ;;  %v223_v42 = vand.u32 2147483647, %v212_v28  ;;  %vm219_vm6 = vweird.f32 %v212_v28 }
  0xd9   :  { %v231_v30 = vsub.f32 1.0, %v230_v29  ;;  %v226_v45 = vor.u32 1.1754944e-38, %v225_v40 }
  0xda   :  { %vm224_vm10 = vcmp.eq.f32.partialorder %v223_v42, 8.507059e+37 }
  0xdb   :  { %v232_v31 = vmul.f32 %v318_v27, %v231_v30 }
  0xdd   :  { %v233_v32 = vadd.f32 %v318_v27, %v232_v31  ;;  %v320_v33 = vpop.eup %319 }
  0xde   :  { %v215_v36 = vmul.f32 %v320_v33, %v212_v28  ;;  %vm220_vm5 = vweird.f32 %v320_v33 }
  0xdf   :  { %v237_v37 = vsel %vm236_vm3, %v318_v27, %v233_v32  ;;  %vm221_vm8 = vmor %vm219_vm6, %vm220_vm5 }
  0xe0   :  { %v216_v38 = vsub.f32 1.0, %v215_v36  ;;  %v242_v43 = vsel %vm239_vm4, %v241_v39, %v237_v37 }
  0xe1   :  { %v246_v46 = vrot.slane %v242_v43, 7 }
  0xe2   :  { %v217_v41 = vmul.f32 %v320_v33, %v216_v38 }
  0xe4   :  { %v218_v44 = vadd.f32 %v320_v33, %v217_v41 }
  0xe6   :  { %v222_v47 = vsel %vm221_vm8, %v320_v33, %v218_v44 }
  0xe7   :  { %v227_v48 = vsel %vm224_vm10, %v226_v45, %v222_v47 }
  0xe8   :  { %v248_v49 = vsel %vm247_vm7, %v246_v46, %v227_v48 }
  0xe9   :  { %251 = vst.msk [vmem:[%s438_s3] sm:$0x3] %vm250_vm9, %v248_v49 }

// kernel: discriminator_forward.10
= control target key start
LH: loop header
LB: loop body
LE: loop exit
PB: predicated region body
PF: predicated region fallthrough
CT: control target
= control target key end

     0   :  { %s3234_s12 = smov 0   ;;  %s3236_s13 = smov 0   ;;  %s4139_s0 = inlined_call_operand.vmem [shape: bf16[98,1152], index: 0, kind: input, shape index: {}]   ;;  %s4140_s1 = inlined_call_operand.vmem [shape: bf16[1152,256], index: 1, kind: input, shape index: {}]   ;;  %s4141_s2 = inlined_call_operand.vmem [shape: f32[1,256], index: 2, kind: input, shape index: {}]   ;;  %s4142_s3 = inlined_call_operand.vmem [shape: bf16[98,256], index: 3, kind: output, shape index: {}]  }
   0x1   :  { %s3238_s14 = smov 0   ;;  %s3240_s15 = smov 0  }
   0x2   :  { %s3242_s16 = smov 0  }
   0x3 LB: > { %s22_s17 = sadd.s32 1, %s3208_s15  ;;  %s2431_s18 = sadd.s32 4294967295, %s3212_s16   ;;  %s3212_s16 = sphi %s3242_s16, %s13_s16   ;;  %s3208_s15 = sphi %s3240_s15, %s4147_s15   ;;  %s3204_s14 = sphi %s3238_s14, %s4146_s14   ;;  %s3200_s13 = sphi %s3236_s13, %s4145_s13   ;;  %s3196_s12 = sphi %s3234_s12, %s4144_s12  }
   0x4   : > { %p23_p0 = scmp.ge.s32.totalorder %s22_s17, 2  ;;  %p65_p1 = scmp.ne.s32.totalorder %s3200_s13, %s3196_s12 }
   0x5   : > { %p66_p2 = scmp.eq.s32.totalorder %s3212_s16, 0  ;;  %p123_p4 = scmp.eq.s32.totalorder %s2431_s18, 1 }
   0x6   : > { %s4149_s17 = smov (%p23_p0, %s22_s17), 0  ;;  %s58_s20 = sadd.s32 1, %s3200_s13 }
   0x7   : > { %p67_p3 = por %p66_p2, %p65_p1  ;;  %s55_s19 = ssub.s32 %s3208_s15, %s4149_s17 }
   0x8   : > { %p56_p5 = scmp.eq.s32.totalorder %s55_s19, 0  ;;  %p3269_p6 = por %p123_p4, %p65_p1 }
   0x9   : > { %p2435_p7 = scmp.ge.s32.totalorder %s3212_s16, 2 }
   0xa   : > { %s3274_s22 = scalar_select %p56_p5, %s3200_s13, %s58_s20  }
   0xb   : > { %155 = sbr.rel (%p2435_p7) target bundleno = 165 (0xa5), region = 20 }
  0x10   : > { %158 = sbr.rel (!%p67_p3) target bundleno = 165 (0xa5), region = 24  ;;  %s160_s23 = sand.u32 (%p67_p3), 1, %s3200_s13  }
  0x11   : > { %s2436_s24 = sshll.u32 (%p67_p3), %s3208_s15, 2  ;;  %s3130_s25 = smul.u32 (%p67_p3), 576, %s160_s23 }
  0x12   : > { %s3282_s28 = scalar_lea.vmem (%p67_p3), %s4140_s1, %s2436_s24 }
  0x13   : > { %v181_v0 = vld [vmem:[%s3282_s28] sm:$0xf] (%p67_p3)  ;;  %v183_v1 = vld [vmem:[%s3282_s28 + $0x8] sm:$0xf] (%p67_p3)  ;;  %v185_v2 = vld [vmem:[%s3282_s28 + $0x10] sm:$0xf] (%p67_p3) }
  0x14   : > { %s3287_s29 = scalar_lea.vmem (%p67_p3), [#allocation2], %s3130_s25  ;;  %v187_v3 = vld [vmem:[%s3282_s28 + $0x18] sm:$0xf] (%p67_p3)  ;;  %v189_v4 = vld [vmem:[%s3282_s28 + $0x20] sm:$0xf] (%p67_p3) }
  0x15   : > { %182 = vst [vmem:[%s3287_s29] sm:$0xf] %v181_v0  ;;  %v191_v5 = vld [vmem:[%s3282_s28 + $0x28] sm:$0xf]  ;;  %v193_v6 = vld [vmem:[%s3282_s28 + $0x30] sm:$0xf] }
  0x16   : > { %184 = vst [vmem:[%s3287_s29 + $0x4] sm:$0xf] %v183_v1  ;;  %v195_v7 = vld [vmem:[%s3282_s28 + $0x38] sm:$0xf]  ;;  %v197_v8 = vld [vmem:[%s3282_s28 + $0x40] sm:$0xf] }
  0x17   : > { %186 = vst [vmem:[%s3287_s29 + $0x8] sm:$0xf] %v185_v2  ;;  %v199_v9 = vld [vmem:[%s3282_s28 + $0x48] sm:$0xf]  ;;  %v201_v10 = vld [vmem:[%s3282_s28 + $0x50] sm:$0xf] }
  0x18   : > { %188 = vst [vmem:[%s3287_s29 + $0xc] sm:$0xf] %v187_v3  ;;  %v203_v11 = vld [vmem:[%s3282_s28 + $0x58] sm:$0xf]  ;;  %v205_v12 = vld [vmem:[%s3282_s28 + $0x60] sm:$0xf] }
  0x19   : > { %190 = vst [vmem:[%s3287_s29 + $0x10] sm:$0xf] %v189_v4  ;;  %v207_v13 = vld [vmem:[%s3282_s28 + $0x68] sm:$0xf]  ;;  %v209_v14 = vld [vmem:[%s3282_s28 + $0x70] sm:$0xf] }
  0x1a   : > { %192 = vst [vmem:[%s3287_s29 + $0x14] sm:$0xf] %v191_v5  ;;  %v211_v15 = vld [vmem:[%s3282_s28 + $0x78] sm:$0xf]  ;;  %v213_v16 = vld [vmem:[%s3282_s28 + $0x80] sm:$0xf] }
  0x1b   : > { %194 = vst [vmem:[%s3287_s29 + $0x18] sm:$0xf] %v193_v6  ;;  %v215_v17 = vld [vmem:[%s3282_s28 + $0x88] sm:$0xf]  ;;  %v217_v18 = vld [vmem:[%s3282_s28 + $0x90] sm:$0xf] }
  0x1c   : > { %196 = vst [vmem:[%s3287_s29 + $0x1c] sm:$0xf] %v195_v7  ;;  %v219_v19 = vld [vmem:[%s3282_s28 + $0x98] sm:$0xf]  ;;  %v221_v20 = vld [vmem:[%s3282_s28 + $0xa0] sm:$0xf] }
  0x1d   : > { %198 = vst [vmem:[%s3287_s29 + $0x20] sm:$0xf] %v197_v8  ;;  %v223_v21 = vld [vmem:[%s3282_s28 + $0xa8] sm:$0xf]  ;;  %v225_v22 = vld [vmem:[%s3282_s28 + $0xb0] sm:$0xf] }
  0x1e   : > { %200 = vst [vmem:[%s3287_s29 + $0x24] sm:$0xf] %v199_v9  ;;  %v227_v23 = vld [vmem:[%s3282_s28 + $0xb8] sm:$0xf]  ;;  %v229_v24 = vld [vmem:[%s3282_s28 + $0xc0] sm:$0xf] }
  0x1f   : > { %202 = vst [vmem:[%s3287_s29 + $0x28] sm:$0xf] %v201_v10  ;;  %v231_v25 = vld [vmem:[%s3282_s28 + $0xc8] sm:$0xf]  ;;  %v233_v26 = vld [vmem:[%s3282_s28 + $0xd0] sm:$0xf] }
  0x20   : > { %204 = vst [vmem:[%s3287_s29 + $0x2c] sm:$0xf] %v203_v11  ;;  %v235_v27 = vld [vmem:[%s3282_s28 + $0xd8] sm:$0xf]  ;;  %v237_v28 = vld [vmem:[%s3282_s28 + $0xe0] sm:$0xf] }
  0x21   : > { %206 = vst [vmem:[%s3287_s29 + $0x30] sm:$0xf] %v205_v12  ;;  %v239_v29 = vld [vmem:[%s3282_s28 + $0xe8] sm:$0xf]  ;;  %v241_v30 = vld [vmem:[%s3282_s28 + $0xf0] sm:$0xf] }
  0x22   : > { %208 = vst [vmem:[%s3287_s29 + $0x34] sm:$0xf] %v207_v13  ;;  %v243_v31 = vld [vmem:[%s3282_s28 + $0xf8] sm:$0xf]  ;;  %v245_v32 = vld [vmem:[%s3282_s28 + $0x100] sm:$0xf] }
  0x23   : > { %210 = vst [vmem:[%s3287_s29 + $0x38] sm:$0xf] %v209_v14  ;;  %v247_v33 = vld [vmem:[%s3282_s28 + $0x108] sm:$0xf]  ;;  %v249_v34 = vld [vmem:[%s3282_s28 + $0x110] sm:$0xf] }
  0x24   : > { %212 = vst [vmem:[%s3287_s29 + $0x3c] sm:$0xf] %v211_v15  ;;  %v251_v35 = vld [vmem:[%s3282_s28 + $0x118] sm:$0xf]  ;;  %v253_v36 = vld [vmem:[%s3282_s28 + $0x120] sm:$0xf] }
  0x25   : > { %214 = vst [vmem:[%s3287_s29 + $0x40] sm:$0xf] %v213_v16  ;;  %v255_v37 = vld [vmem:[%s3282_s28 + $0x128] sm:$0xf]  ;;  %v257_v38 = vld [vmem:[%s3282_s28 + $0x130] sm:$0xf] }
  0x26   : > { %216 = vst [vmem:[%s3287_s29 + $0x44] sm:$0xf] %v215_v17  ;;  %v259_v39 = vld [vmem:[%s3282_s28 + $0x138] sm:$0xf]  ;;  %v261_v40 = vld [vmem:[%s3282_s28 + $0x140] sm:$0xf] }
  0x27   : > { %218 = vst [vmem:[%s3287_s29 + $0x48] sm:$0xf] %v217_v18  ;;  %v263_v41 = vld [vmem:[%s3282_s28 + $0x148] sm:$0xf]  ;;  %v265_v42 = vld [vmem:[%s3282_s28 + $0x150] sm:$0xf] }
  0x28   : > { %220 = vst [vmem:[%s3287_s29 + $0x4c] sm:$0xf] %v219_v19  ;;  %v267_v43 = vld [vmem:[%s3282_s28 + $0x158] sm:$0xf]  ;;  %v269_v44 = vld [vmem:[%s3282_s28 + $0x160] sm:$0xf] }
  0x29   : > { %222 = vst [vmem:[%s3287_s29 + $0x50] sm:$0xf] %v221_v20  ;;  %v271_v45 = vld [vmem:[%s3282_s28 + $0x168] sm:$0xf]  ;;  %v273_v46 = vld [vmem:[%s3282_s28 + $0x170] sm:$0xf] }
  0x2a   : > { %224 = vst [vmem:[%s3287_s29 + $0x54] sm:$0xf] %v223_v21  ;;  %v275_v47 = vld [vmem:[%s3282_s28 + $0x178] sm:$0xf]  ;;  %v277_v48 = vld [vmem:[%s3282_s28 + $0x180] sm:$0xf] }
  0x2b   : > { %226 = vst [vmem:[%s3287_s29 + $0x58] sm:$0xf] %v225_v22  ;;  %v279_v49 = vld [vmem:[%s3282_s28 + $0x188] sm:$0xf]  ;;  %v281_v50 = vld [vmem:[%s3282_s28 + $0x190] sm:$0xf] }
  0x2c   : > { %228 = vst [vmem:[%s3287_s29 + $0x5c] sm:$0xf] %v227_v23  ;;  %v283_v51 = vld [vmem:[%s3282_s28 + $0x198] sm:$0xf]  ;;  %v285_v52 = vld [vmem:[%s3282_s28 + $0x1a0] sm:$0xf] }
  0x2d   : > { %230 = vst [vmem:[%s3287_s29 + $0x60] sm:$0xf] %v229_v24  ;;  %v287_v53 = vld [vmem:[%s3282_s28 + $0x1a8] sm:$0xf]  ;;  %v289_v54 = vld [vmem:[%s3282_s28 + $0x1b0] sm:$0xf] }
  0x2e   : > { %232 = vst [vmem:[%s3287_s29 + $0x64] sm:$0xf] %v231_v25  ;;  %v291_v55 = vld [vmem:[%s3282_s28 + $0x1b8] sm:$0xf]  ;;  %v293_v56 = vld [vmem:[%s3282_s28 + $0x1c0] sm:$0xf] }
  0x2f   : > { %234 = vst [vmem:[%s3287_s29 + $0x68] sm:$0xf] %v233_v26  ;;  %v295_v57 = vld [vmem:[%s3282_s28 + $0x1c8] sm:$0xf]  ;;  %v297_v58 = vld [vmem:[%s3282_s28 + $0x1d0] sm:$0xf] }
  0x30   : > { %236 = vst [vmem:[%s3287_s29 + $0x6c] sm:$0xf] %v235_v27  ;;  %v299_v59 = vld [vmem:[%s3282_s28 + $0x1d8] sm:$0xf]  ;;  %v301_v60 = vld [vmem:[%s3282_s28 + $0x1e0] sm:$0xf] }
  0x31   : > { %238 = vst [vmem:[%s3287_s29 + $0x70] sm:$0xf] %v237_v28  ;;  %v303_v61 = vld [vmem:[%s3282_s28 + $0x1e8] sm:$0xf]  ;;  %v305_v62 = vld [vmem:[%s3282_s28 + $0x1f0] sm:$0xf] }
  0x32   : > { %240 = vst [vmem:[%s3287_s29 + $0x74] sm:$0xf] %v239_v29  ;;  %v307_v63 = vld [vmem:[%s3282_s28 + $0x1f8] sm:$0xf]  ;;  %v309_v0 = vld [vmem:[%s3282_s28 + $0x200] sm:$0xf] }
  0x33   : > { %242 = vst [vmem:[%s3287_s29 + $0x78] sm:$0xf] %v241_v30  ;;  %v311_v1 = vld [vmem:[%s3282_s28 + $0x208] sm:$0xf]  ;;  %v313_v2 = vld [vmem:[%s3282_s28 + $0x210] sm:$0xf] }
  0x34   : > { %244 = vst [vmem:[%s3287_s29 + $0x7c] sm:$0xf] %v243_v31  ;;  %v315_v3 = vld [vmem:[%s3282_s28 + $0x218] sm:$0xf]  ;;  %v317_v4 = vld [vmem:[%s3282_s28 + $0x220] sm:$0xf] }
  0x35   : > { %246 = vst [vmem:[%s3287_s29 + $0x80] sm:$0xf] %v245_v32  ;;  %v319_v5 = vld [vmem:[%s3282_s28 + $0x228] sm:$0xf]  ;;  %v321_v6 = vld [vmem:[%s3282_s28 + $0x230] sm:$0xf] }
  0x36   : > { %248 = vst [vmem:[%s3287_s29 + $0x84] sm:$0xf] %v247_v33  ;;  %v323_v7 = vld [vmem:[%s3282_s28 + $0x238] sm:$0xf]  ;;  %v325_v8 = vld [vmem:[%s3282_s28 + $0x240] sm:$0xf] }
  0x37   : > { %250 = vst [vmem:[%s3287_s29 + $0x88] sm:$0xf] %v249_v34  ;;  %v327_v9 = vld [vmem:[%s3282_s28 + $0x248] sm:$0xf]  ;;  %v329_v10 = vld [vmem:[%s3282_s28 + $0x250] sm:$0xf] }
  0x38   : > { %252 = vst [vmem:[%s3287_s29 + $0x8c] sm:$0xf] %v251_v35  ;;  %v331_v11 = vld [vmem:[%s3282_s28 + $0x258] sm:$0xf]  ;;  %v333_v12 = vld [vmem:[%s3282_s28 + $0x260] sm:$0xf] }
  0x39   : > { %254 = vst [vmem:[%s3287_s29 + $0x90] sm:$0xf] %v253_v36  ;;  %v335_v13 = vld [vmem:[%s3282_s28 + $0x268] sm:$0xf]  ;;  %v337_v14 = vld [vmem:[%s3282_s28 + $0x270] sm:$0xf] }
  0x3a   : > { %256 = vst [vmem:[%s3287_s29 + $0x94] sm:$0xf] %v255_v37  ;;  %v339_v15 = vld [vmem:[%s3282_s28 + $0x278] sm:$0xf]  ;;  %v341_v16 = vld [vmem:[%s3282_s28 + $0x280] sm:$0xf] }
  0x3b   : > { %258 = vst [vmem:[%s3287_s29 + $0x98] sm:$0xf] %v257_v38  ;;  %v343_v17 = vld [vmem:[%s3282_s28 + $0x288] sm:$0xf]  ;;  %v345_v18 = vld [vmem:[%s3282_s28 + $0x290] sm:$0xf] }
  0x3c   : > { %260 = vst [vmem:[%s3287_s29 + $0x9c] sm:$0xf] %v259_v39  ;;  %v347_v19 = vld [vmem:[%s3282_s28 + $0x298] sm:$0xf]  ;;  %v349_v20 = vld [vmem:[%s3282_s28 + $0x2a0] sm:$0xf] }
  0x3d   : > { %262 = vst [vmem:[%s3287_s29 + $0xa0] sm:$0xf] %v261_v40  ;;  %v351_v21 = vld [vmem:[%s3282_s28 + $0x2a8] sm:$0xf]  ;;  %v353_v22 = vld [vmem:[%s3282_s28 + $0x2b0] sm:$0xf] }
  0x3e   : > { %264 = vst [vmem:[%s3287_s29 + $0xa4] sm:$0xf] %v263_v41  ;;  %v355_v23 = vld [vmem:[%s3282_s28 + $0x2b8] sm:$0xf]  ;;  %v357_v24 = vld [vmem:[%s3282_s28 + $0x2c0] sm:$0xf] }
  0x3f   : > { %266 = vst [vmem:[%s3287_s29 + $0xa8] sm:$0xf] %v265_v42  ;;  %v359_v25 = vld [vmem:[%s3282_s28 + $0x2c8] sm:$0xf]  ;;  %v361_v26 = vld [vmem:[%s3282_s28 + $0x2d0] sm:$0xf] }
  0x40   : > { %268 = vst [vmem:[%s3287_s29 + $0xac] sm:$0xf] %v267_v43  ;;  %v363_v27 = vld [vmem:[%s3282_s28 + $0x2d8] sm:$0xf]  ;;  %v365_v28 = vld [vmem:[%s3282_s28 + $0x2e0] sm:$0xf] }
  0x41   : > { %270 = vst [vmem:[%s3287_s29 + $0xb0] sm:$0xf] %v269_v44  ;;  %v367_v29 = vld [vmem:[%s3282_s28 + $0x2e8] sm:$0xf]  ;;  %v369_v30 = vld [vmem:[%s3282_s28 + $0x2f0] sm:$0xf] }
  0x42   : > { %272 = vst [vmem:[%s3287_s29 + $0xb4] sm:$0xf] %v271_v45  ;;  %v371_v31 = vld [vmem:[%s3282_s28 + $0x2f8] sm:$0xf]  ;;  %v373_v32 = vld [vmem:[%s3282_s28 + $0x300] sm:$0xf] }
  0x43   : > { %274 = vst [vmem:[%s3287_s29 + $0xb8] sm:$0xf] %v273_v46  ;;  %v375_v33 = vld [vmem:[%s3282_s28 + $0x308] sm:$0xf]  ;;  %v377_v34 = vld [vmem:[%s3282_s28 + $0x310] sm:$0xf] }
  0x44   : > { %276 = vst [vmem:[%s3287_s29 + $0xbc] sm:$0xf] %v275_v47  ;;  %v379_v35 = vld [vmem:[%s3282_s28 + $0x318] sm:$0xf]  ;;  %v381_v36 = vld [vmem:[%s3282_s28 + $0x320] sm:$0xf] }
  0x45   : > { %278 = vst [vmem:[%s3287_s29 + $0xc0] sm:$0xf] %v277_v48  ;;  %v383_v37 = vld [vmem:[%s3282_s28 + $0x328] sm:$0xf]  ;;  %v385_v38 = vld [vmem:[%s3282_s28 + $0x330] sm:$0xf] }
  0x46   : > { %280 = vst [vmem:[%s3287_s29 + $0xc4] sm:$0xf] %v279_v49  ;;  %v387_v39 = vld [vmem:[%s3282_s28 + $0x338] sm:$0xf]  ;;  %v389_v40 = vld [vmem:[%s3282_s28 + $0x340] sm:$0xf] }
  0x47   : > { %282 = vst [vmem:[%s3287_s29 + $0xc8] sm:$0xf] %v281_v50  ;;  %v391_v41 = vld [vmem:[%s3282_s28 + $0x348] sm:$0xf]  ;;  %v393_v42 = vld [vmem:[%s3282_s28 + $0x350] sm:$0xf] }
  0x48   : > { %284 = vst [vmem:[%s3287_s29 + $0xcc] sm:$0xf] %v283_v51  ;;  %v395_v43 = vld [vmem:[%s3282_s28 + $0x358] sm:$0xf]  ;;  %v397_v44 = vld [vmem:[%s3282_s28 + $0x360] sm:$0xf] }
  0x49   : > { %286 = vst [vmem:[%s3287_s29 + $0xd0] sm:$0xf] %v285_v52  ;;  %v399_v45 = vld [vmem:[%s3282_s28 + $0x368] sm:$0xf]  ;;  %v401_v46 = vld [vmem:[%s3282_s28 + $0x370] sm:$0xf] }
  0x4a   : > { %288 = vst [vmem:[%s3287_s29 + $0xd4] sm:$0xf] %v287_v53  ;;  %v403_v47 = vld [vmem:[%s3282_s28 + $0x378] sm:$0xf]  ;;  %v405_v48 = vld [vmem:[%s3282_s28 + $0x380] sm:$0xf] }
  0x4b   : > { %290 = vst [vmem:[%s3287_s29 + $0xd8] sm:$0xf] %v289_v54  ;;  %v407_v49 = vld [vmem:[%s3282_s28 + $0x388] sm:$0xf]  ;;  %v409_v50 = vld [vmem:[%s3282_s28 + $0x390] sm:$0xf] }
  0x4c   : > { %292 = vst [vmem:[%s3287_s29 + $0xdc] sm:$0xf] %v291_v55  ;;  %v411_v51 = vld [vmem:[%s3282_s28 + $0x398] sm:$0xf]  ;;  %v413_v52 = vld [vmem:[%s3282_s28 + $0x3a0] sm:$0xf] }
  0x4d   : > { %294 = vst [vmem:[%s3287_s29 + $0xe0] sm:$0xf] %v293_v56  ;;  %v415_v53 = vld [vmem:[%s3282_s28 + $0x3a8] sm:$0xf]  ;;  %v417_v54 = vld [vmem:[%s3282_s28 + $0x3b0] sm:$0xf] }
  0x4e   : > { %296 = vst [vmem:[%s3287_s29 + $0xe4] sm:$0xf] %v295_v57  ;;  %v419_v55 = vld [vmem:[%s3282_s28 + $0x3b8] sm:$0xf]  ;;  %v421_v56 = vld [vmem:[%s3282_s28 + $0x3c0] sm:$0xf] }
  0x4f   : > { %298 = vst [vmem:[%s3287_s29 + $0xe8] sm:$0xf] %v297_v58  ;;  %v423_v57 = vld [vmem:[%s3282_s28 + $0x3c8] sm:$0xf]  ;;  %v425_v58 = vld [vmem:[%s3282_s28 + $0x3d0] sm:$0xf] }
  0x50   : > { %300 = vst [vmem:[%s3287_s29 + $0xec] sm:$0xf] %v299_v59  ;;  %v427_v59 = vld [vmem:[%s3282_s28 + $0x3d8] sm:$0xf] }
  0x51   : > { %302 = vst [vmem:[%s3287_s29 + $0xf0] sm:$0xf] %v301_v60  ;;  %v429_v60 = vld [vmem:[%s3282_s28 + $0x3e0] sm:$0xf] }
  0x52   : > { %304 = vst [vmem:[%s3287_s29 + $0xf4] sm:$0xf] %v303_v61  ;;  %v431_v61 = vld [vmem:[%s3282_s28 + $0x3e8] sm:$0xf] }
  0x53   : > { %306 = vst [vmem:[%s3287_s29 + $0xf8] sm:$0xf] %v305_v62  ;;  %v433_v62 = vld [vmem:[%s3282_s28 + $0x3f0] sm:$0xf] }
  0x54   : > { %308 = vst [vmem:[%s3287_s29 + $0xfc] sm:$0xf] %v307_v63  ;;  %v435_v63 = vld [vmem:[%s3282_s28 + $0x3f8] sm:$0xf] }
  0x55   : > { %310 = vst [vmem:[%s3287_s29 + $0x100] sm:$0xf] %v309_v0  ;;  %v437_v0 = vld [vmem:[%s3282_s28 + $0x400] sm:$0xf] }
  0x56   : > { %312 = vst [vmem:[%s3287_s29 + $0x104] sm:$0xf] %v311_v1  ;;  %v439_v1 = vld [vmem:[%s3282_s28 + $0x408] sm:$0xf] }
  0x57   : > { %314 = vst [vmem:[%s3287_s29 + $0x108] sm:$0xf] %v313_v2  ;;  %v441_v2 = vld [vmem:[%s3282_s28 + $0x410] sm:$0xf] }
  0x58   : > { %316 = vst [vmem:[%s3287_s29 + $0x10c] sm:$0xf] %v315_v3  ;;  %v443_v3 = vld [vmem:[%s3282_s28 + $0x418] sm:$0xf] }
  0x59   : > { %318 = vst [vmem:[%s3287_s29 + $0x110] sm:$0xf] %v317_v4  ;;  %v445_v4 = vld [vmem:[%s3282_s28 + $0x420] sm:$0xf] }
  0x5a   : > { %320 = vst [vmem:[%s3287_s29 + $0x114] sm:$0xf] %v319_v5  ;;  %v447_v5 = vld [vmem:[%s3282_s28 + $0x428] sm:$0xf] }
  0x5b   : > { %322 = vst [vmem:[%s3287_s29 + $0x118] sm:$0xf] %v321_v6  ;;  %v449_v6 = vld [vmem:[%s3282_s28 + $0x430] sm:$0xf] }
  0x5c   : > { %324 = vst [vmem:[%s3287_s29 + $0x11c] sm:$0xf] %v323_v7  ;;  %v451_v7 = vld [vmem:[%s3282_s28 + $0x438] sm:$0xf] }
  0x5d   : > { %326 = vst [vmem:[%s3287_s29 + $0x120] sm:$0xf] %v325_v8  ;;  %v453_v8 = vld [vmem:[%s3282_s28 + $0x440] sm:$0xf] }
  0x5e   : > { %328 = vst [vmem:[%s3287_s29 + $0x124] sm:$0xf] %v327_v9  ;;  %v455_v9 = vld [vmem:[%s3282_s28 + $0x448] sm:$0xf] }
  0x5f   : > { %330 = vst [vmem:[%s3287_s29 + $0x128] sm:$0xf] %v329_v10  ;;  %v457_v10 = vld [vmem:[%s3282_s28 + $0x450] sm:$0xf] }
  0x60   : > { %332 = vst [vmem:[%s3287_s29 + $0x12c] sm:$0xf] %v331_v11  ;;  %v459_v11 = vld [vmem:[%s3282_s28 + $0x458] sm:$0xf] }
  0x61   : > { %334 = vst [vmem:[%s3287_s29 + $0x130] sm:$0xf] %v333_v12  ;;  %v461_v12 = vld [vmem:[%s3282_s28 + $0x460] sm:$0xf] }
  0x62   : > { %336 = vst [vmem:[%s3287_s29 + $0x134] sm:$0xf] %v335_v13  ;;  %v463_v13 = vld [vmem:[%s3282_s28 + $0x468] sm:$0xf] }
  0x63   : > { %338 = vst [vmem:[%s3287_s29 + $0x138] sm:$0xf] %v337_v14  ;;  %v465_v14 = vld [vmem:[%s3282_s28 + $0x470] sm:$0xf] }
  0x64   : > { %340 = vst [vmem:[%s3287_s29 + $0x13c] sm:$0xf] %v339_v15  ;;  %v467_v15 = vld [vmem:[%s3282_s28 + $0x478] sm:$0xf] }
  0x65   : > { %342 = vst [vmem:[%s3287_s29 + $0x140] sm:$0xf] %v341_v16 }
  0x66   : > { %344 = vst [vmem:[%s3287_s29 + $0x144] sm:$0xf] %v343_v17 }
  0x67   : > { %346 = vst [vmem:[%s3287_s29 + $0x148] sm:$0xf] %v345_v18 }
  0x68   : > { %348 = vst [vmem:[%s3287_s29 + $0x14c] sm:$0xf] %v347_v19 }
  0x69   : > { %350 = vst [vmem:[%s3287_s29 + $0x150] sm:$0xf] %v349_v20 }
  0x6a   : > { %352 = vst [vmem:[%s3287_s29 + $0x154] sm:$0xf] %v351_v21 }
  0x6b   : > { %354 = vst [vmem:[%s3287_s29 + $0x158] sm:$0xf] %v353_v22 }
  0x6c   : > { %356 = vst [vmem:[%s3287_s29 + $0x15c] sm:$0xf] %v355_v23 }
  0x6d   : > { %358 = vst [vmem:[%s3287_s29 + $0x160] sm:$0xf] %v357_v24 }
  0x6e   : > { %360 = vst [vmem:[%s3287_s29 + $0x164] sm:$0xf] %v359_v25 }
  0x6f   : > { %362 = vst [vmem:[%s3287_s29 + $0x168] sm:$0xf] %v361_v26 }
  0x70   : > { %364 = vst [vmem:[%s3287_s29 + $0x16c] sm:$0xf] %v363_v27 }
  0x71   : > { %366 = vst [vmem:[%s3287_s29 + $0x170] sm:$0xf] %v365_v28 }
  0x72   : > { %368 = vst [vmem:[%s3287_s29 + $0x174] sm:$0xf] %v367_v29 }
  0x73   : > { %370 = vst [vmem:[%s3287_s29 + $0x178] sm:$0xf] %v369_v30 }
  0x74   : > { %372 = vst [vmem:[%s3287_s29 + $0x17c] sm:$0xf] %v371_v31 }
  0x75   : > { %374 = vst [vmem:[%s3287_s29 + $0x180] sm:$0xf] %v373_v32 }
  0x76   : > { %376 = vst [vmem:[%s3287_s29 + $0x184] sm:$0xf] %v375_v33 }
  0x77   : > { %378 = vst [vmem:[%s3287_s29 + $0x188] sm:$0xf] %v377_v34 }
  0x78   : > { %380 = vst [vmem:[%s3287_s29 + $0x18c] sm:$0xf] %v379_v35 }
  0x79   : > { %382 = vst [vmem:[%s3287_s29 + $0x190] sm:$0xf] %v381_v36 }
  0x7a   : > { %384 = vst [vmem:[%s3287_s29 + $0x194] sm:$0xf] %v383_v37 }
  0x7b   : > { %386 = vst [vmem:[%s3287_s29 + $0x198] sm:$0xf] %v385_v38 }
  0x7c   : > { %388 = vst [vmem:[%s3287_s29 + $0x19c] sm:$0xf] %v387_v39 }
  0x7d   : > { %390 = vst [vmem:[%s3287_s29 + $0x1a0] sm:$0xf] %v389_v40 }
  0x7e   : > { %392 = vst [vmem:[%s3287_s29 + $0x1a4] sm:$0xf] %v391_v41 }
  0x7f   : > { %394 = vst [vmem:[%s3287_s29 + $0x1a8] sm:$0xf] %v393_v42 }
  0x80   : > { %396 = vst [vmem:[%s3287_s29 + $0x1ac] sm:$0xf] %v395_v43 }
  0x81   : > { %398 = vst [vmem:[%s3287_s29 + $0x1b0] sm:$0xf] %v397_v44 }
  0x82   : > { %400 = vst [vmem:[%s3287_s29 + $0x1b4] sm:$0xf] %v399_v45 }
  0x83   : > { %402 = vst [vmem:[%s3287_s29 + $0x1b8] sm:$0xf] %v401_v46 }
  0x84   : > { %404 = vst [vmem:[%s3287_s29 + $0x1bc] sm:$0xf] %v403_v47 }
  0x85   : > { %406 = vst [vmem:[%s3287_s29 + $0x1c0] sm:$0xf] %v405_v48 }
  0x86   : > { %408 = vst [vmem:[%s3287_s29 + $0x1c4] sm:$0xf] %v407_v49 }
  0x87   : > { %410 = vst [vmem:[%s3287_s29 + $0x1c8] sm:$0xf] %v409_v50 }
  0x88   : > { %412 = vst [vmem:[%s3287_s29 + $0x1cc] sm:$0xf] %v411_v51 }
  0x89   : > { %414 = vst [vmem:[%s3287_s29 + $0x1d0] sm:$0xf] %v413_v52 }
  0x8a   : > { %416 = vst [vmem:[%s3287_s29 + $0x1d4] sm:$0xf] %v415_v53 }
  0x8b   : > { %418 = vst [vmem:[%s3287_s29 + $0x1d8] sm:$0xf] %v417_v54 }
  0x8c   : > { %420 = vst [vmem:[%s3287_s29 + $0x1dc] sm:$0xf] %v419_v55 }
  0x8d   : > { %422 = vst [vmem:[%s3287_s29 + $0x1e0] sm:$0xf] %v421_v56 }
  0x8e   : > { %424 = vst [vmem:[%s3287_s29 + $0x1e4] sm:$0xf] %v423_v57 }
  0x8f   : > { %426 = vst [vmem:[%s3287_s29 + $0x1e8] sm:$0xf] %v425_v58 }
  0x90   : > { %428 = vst [vmem:[%s3287_s29 + $0x1ec] sm:$0xf] %v427_v59 }
  0x91   : > { %430 = vst [vmem:[%s3287_s29 + $0x1f0] sm:$0xf] %v429_v60 }
  0x92   : > { %432 = vst [vmem:[%s3287_s29 + $0x1f4] sm:$0xf] %v431_v61 }
  0x93   : > { %434 = vst [vmem:[%s3287_s29 + $0x1f8] sm:$0xf] %v433_v62 }
  0x94   : > { %436 = vst [vmem:[%s3287_s29 + $0x1fc] sm:$0xf] %v435_v63 }
  0x95   : > { %438 = vst [vmem:[%s3287_s29 + $0x200] sm:$0xf] %v437_v0 }
  0x96   : > { %440 = vst [vmem:[%s3287_s29 + $0x204] sm:$0xf] %v439_v1 }
  0x97   : > { %442 = vst [vmem:[%s3287_s29 + $0x208] sm:$0xf] %v441_v2 }
  0x98   : > { %444 = vst [vmem:[%s3287_s29 + $0x20c] sm:$0xf] %v443_v3 }
  0x99   : > { %446 = vst [vmem:[%s3287_s29 + $0x210] sm:$0xf] %v445_v4 }
  0x9a   : > { %448 = vst [vmem:[%s3287_s29 + $0x214] sm:$0xf] %v447_v5 }
  0x9b   : > { %450 = vst [vmem:[%s3287_s29 + $0x218] sm:$0xf] %v449_v6 }
  0x9c   : > { %452 = vst [vmem:[%s3287_s29 + $0x21c] sm:$0xf] %v451_v7 }
  0x9d   : > { %454 = vst [vmem:[%s3287_s29 + $0x220] sm:$0xf] %v453_v8 }
  0x9e   : > { %456 = vst [vmem:[%s3287_s29 + $0x224] sm:$0xf] %v455_v9 }
  0x9f   : > { %458 = vst [vmem:[%s3287_s29 + $0x228] sm:$0xf] %v457_v10 }
  0xa0   : > { %460 = vst [vmem:[%s3287_s29 + $0x22c] sm:$0xf] %v459_v11 }
  0xa1   : > { %462 = vst [vmem:[%s3287_s29 + $0x230] sm:$0xf] %v461_v12 }
  0xa2   : > { %464 = vst [vmem:[%s3287_s29 + $0x234] sm:$0xf] %v463_v13 }
  0xa3   : > { %466 = vst [vmem:[%s3287_s29 + $0x238] sm:$0xf] %v465_v14 }
  0xa4   : > { %468 = vst [vmem:[%s3287_s29 + $0x23c] sm:$0xf] %v467_v15 }
  0xa5 PF: > { %p2437_p8 = scmp.ge.s32.totalorder %s3212_s16, 1  ;;  %p785_p9 = scmp.lt.s32.totalorder %s3212_s16, 3 }
  0xa7   : > { %p786_p10 = pnand %p2437_p8, %p785_p9 }
  0xa8   : > { %s792_s30 = sand.u32 (!%p786_p10), 1, %s3196_s12   ;;  %p830_p11 = scmp.lt.s32.totalorder (!%p786_p10), %s3204_s14, 1 }
  0xa9   : > { %789 = sbr.rel (%p786_p10) target bundleno = 598 (0x256), region = 69 }
  0xaa   : > { %s3131_s4 = smul.u32 (!%p786_p10), 576, %s792_s30 }
  0xab   : > { %s3132_s10 = smul.u32 (!%p786_p10), 52, %s792_s30 }
  0xac   : > { %s3579_s5 = scalar_lea.vmem (!%p786_p10), [#allocation2], %s3131_s4 }
  0xad   : > { %s4086_s11 = scalar_lea.vmem (!%p786_p10), [#allocation3], %s3132_s10 }
  0xae   : > { %v3006_v16 = vld [vmem:[%s3579_s5 + $0x38] sm:$0xff]  ;;  %v3005_v17 = vld [vmem:[%s3579_s5 + $0x30] sm:$0xff]  ;;  %v3004_v18 = vld [vmem:[%s3579_s5 + $0x28] sm:$0xff]  ;;  %s3589_s6 = scalar_select %p830_p11, %s3204_s14, 1 }
  0xaf   : > { %3106 = vmatpush.bf16.msra.mxu1 %v3006_v16  ;;  %3107 = vmatpush.bf16.msra.mxu2 %v3006_v16  ;;  %v3003_v19 = vld [vmem:[%s3579_s5 + $0x20] sm:$0xff]  ;;  %v3002_v20 = vld [vmem:[%s3579_s5 + $0x18] sm:$0xff]  ;;  %v3001_v21 = vld [vmem:[%s3579_s5 + $0x10] sm:$0xff]  ;;  %s2942_s12 = sshll.u32 (%p3269_p6), %s3204_s14, 2 }
  0xb0   : > { %3108 = vmatpush.bf16.msra.mxu3 %v3006_v16  ;;  %1787 = vmatpush.bf16.msra.mxu0 %v3006_v16  ;;  %v3000_v22 = vld [vmem:[%s3579_s5 + $0x8] sm:$0xff]  ;;  %s832_s9 = scalar_lea.vmem %s4141_s2, %s3589_s6  ;;  %v3599_v23 = vld [vmem:[%s4139_s0 + $0x1b0] sm:$0xff]  ;;  %v2999_v26 = vld [vmem:[%s3579_s5] sm:$0xff]  ;;  %s2250_s19 = scalar_lea.vmem (%p3269_p6), %s4142_s3, %s2942_s12 }
  0xb1   : > { %v2512_v24 = vld [vmem:[%s4139_s0 + $0x90] sm:$0xf]  ;;  %v2967_v25 = vld [vmem:[%s4139_s0 + $0xb0] sm:$0xf0]  ;;  %v2584_v27 = vld [vmem:[%s4139_s0 + $0x120] sm:$0xf]  ;;  %v1220_v31 = vunpack.c.l.b16 %v3599_v23 }
  0xb2   : > { %v2985_v28 = vld [vmem:[%s4139_s0 + $0x140] sm:$0xf0]  ;;  %v2440_v29 = vld [vmem:[%s4139_s0] sm:$0xf]  ;;  %v3030_v32 = vld [vmem:[%s3579_s5 + $0xf8] sm:$0xff]  ;;  %v2513_v34 = vor.u32 %v2967_v25, %v2512_v24 }
  0xb3   : > { %3109 = vmatpush.bf16.msra.mxu1 %v3005_v17  ;;  %3110 = vmatpush.bf16.msra.mxu2 %v3005_v17  ;;  %v2949_v30 = vld [vmem:[%s4139_s0 + $0x20] sm:$0xf0]  ;;  %v3022_v33 = vld [vmem:[%s3579_s5 + $0xb8] sm:$0xff]  ;;  %v2585_v35 = vor.u32 %v2985_v28, %v2584_v27  ;;  %v1283_v39 = vpack.c.b16 %v1220_v31, %v1220_v31  ;;  %v3029_v40 = vld [vmem:[%s3579_s5 + $0xf0] sm:$0xff] }
  0xb4   : > { %3111 = vmatpush.bf16.msra.mxu3 %v3005_v17  ;;  %1788 = vmatpush.bf16.msra.mxu0 %v3005_v17  ;;  %v3014_v36 = vld [vmem:[%s3579_s5 + $0x78] sm:$0xff]  ;;  %v2441_v37 = vor.u32 %v2949_v30, %v2440_v29  ;;  %v3021_v41 = vld [vmem:[%s3579_s5 + $0xb0] sm:$0xff]  ;;  %v3028_v44 = vld [vmem:[%s3579_s5 + $0xe8] sm:$0xff] }
  0xb5   : > { %v3038_v38 = vld [vmem:[%s3579_s5 + $0x138] sm:$0xff]  ;;  %v3013_v42 = vld [vmem:[%s3579_s5 + $0x70] sm:$0xff]  ;;  %v3020_v45 = vld [vmem:[%s3579_s5 + $0xa8] sm:$0xff] }
  0xb6   : > { %v3037_v43 = vld [vmem:[%s3579_s5 + $0x130] sm:$0xff]  ;;  %v3012_v46 = vld [vmem:[%s3579_s5 + $0x68] sm:$0xff]  ;;  %v3027_v48 = vld [vmem:[%s3579_s5 + $0xe0] sm:$0xff] }
  0xb7   : > { %3112 = vmatpush.bf16.msra.mxu1 %v3004_v18  ;;  %3113 = vmatpush.bf16.msra.mxu2 %v3004_v18  ;;  %v3036_v47 = vld [vmem:[%s3579_s5 + $0x128] sm:$0xff]  ;;  %v3019_v49 = vld [vmem:[%s3579_s5 + $0xa0] sm:$0xff]  ;;  %v2548_v51 = vld [vmem:[%s4139_s0 + $0xd8] sm:$0xf] }
  0xb8   : > { %3114 = vmatpush.bf16.msra.mxu3 %v3004_v18  ;;  %1789 = vmatpush.bf16.msra.mxu0 %v3004_v18  ;;  %v3011_v50 = vld [vmem:[%s3579_s5 + $0x60] sm:$0xff]  ;;  %v2976_v52 = vld [vmem:[%s4139_s0 + $0xf8] sm:$0xf0]  ;;  %v2620_v53 = vld [vmem:[%s4139_s0 + $0x168] sm:$0xf] }
  0xb9   : > { %v2994_v54 = vld [vmem:[%s4139_s0 + $0x188] sm:$0xf0]  ;;  %v3035_v55 = vld [vmem:[%s3579_s5 + $0x120] sm:$0xff]  ;;  %v2476_v56 = vld [vmem:[%s4139_s0 + $0x48] sm:$0xf]  ;;  %v2549_v60 = vor.u32 %v2976_v52, %v2548_v51 }
  0xba   : > { %v2958_v57 = vld [vmem:[%s4139_s0 + $0x68] sm:$0xf0]  ;;  %v3026_v58 = vld [vmem:[%s3579_s5 + $0xd8] sm:$0xff]  ;;  %v2621_v61 = vor.u32 %v2994_v54, %v2620_v53  ;;  %v3025_v1 = vld [vmem:[%s3579_s5 + $0xd0] sm:$0xff] }
  0xbb   : > { %3115 = vmatpush.bf16.msra.mxu1 %v3003_v19  ;;  %3116 = vmatpush.bf16.msra.mxu2 %v3003_v19  ;;  %v3018_v59 = vld [vmem:[%s3579_s5 + $0x98] sm:$0xff]  ;;  %v2477_v63 = vor.u32 %v2958_v57, %v2476_v56  ;;  %v3017_v2 = vld [vmem:[%s3579_s5 + $0x90] sm:$0xff]  ;;  %v3024_v5 = vld [vmem:[%s3579_s5 + $0xc8] sm:$0xff] }
  0xbc   : > { %3117 = vmatpush.bf16.msra.mxu3 %v3003_v19  ;;  %1790 = vmatpush.bf16.msra.mxu0 %v3003_v19  ;;  %v3010_v62 = vld [vmem:[%s3579_s5 + $0x58] sm:$0xff]  ;;  %v3009_v3 = vld [vmem:[%s3579_s5 + $0x50] sm:$0xff]  ;;  %v3016_v6 = vld [vmem:[%s3579_s5 + $0x88] sm:$0xff] }
  0xbd   : > { %v3034_v0 = vld [vmem:[%s3579_s5 + $0x118] sm:$0xff]  ;;  %v3033_v4 = vld [vmem:[%s3579_s5 + $0x110] sm:$0xff]  ;;  %v3008_v7 = vld [vmem:[%s3579_s5 + $0x48] sm:$0xff] }
  0xbe   : > { %v3023_v8 = vld [vmem:[%s3579_s5 + $0xc0] sm:$0xff]  ;;  %v3032_v9 = vld [vmem:[%s3579_s5 + $0x108] sm:$0xff]  ;;  %v2450_v13 = vld [vmem:[%s4139_s0 + $0x2c] sm:$0xf0] }
  0xbf   : > { %3118 = vmatpush.bf16.msra.mxu1 %v3002_v20  ;;  %3119 = vmatpush.bf16.msra.mxu2 %v3002_v20  ;;  %v3015_v10 = vld [vmem:[%s3579_s5 + $0x80] sm:$0xff]  ;;  %v2946_v12 = vld [vmem:[%s4139_s0 + $0xc] sm:$0xf]  ;;  %v3054_v15 = vld [vmem:[%s3579_s5 + $0x1b8] sm:$0xff] }
  0xc0   : > { %3120 = vmatpush.bf16.msra.mxu3 %v3002_v20  ;;  %1791 = vmatpush.bf16.msra.mxu0 %v3002_v20  ;;  %v3007_v11 = vld [vmem:[%s3579_s5 + $0x40] sm:$0xff]  ;;  %v3062_v16 = vld [vmem:[%s3579_s5 + $0x1f8] sm:$0xff]  ;;  %v2442_v17 = vld [vmem:[%s4139_s0 + $0x24] sm:$0xf0]  ;;  %v2453_v20 = vor.u32 %v2946_v12, %v2450_v13 }
  0xc1   : > { %v2945_v14 = vld [vmem:[%s4139_s0 + $0x4] sm:$0xf]  ;;  %v2448_v18 = vld [vmem:[%s4139_s0 + $0x8] sm:$0xf]  ;;  %v2950_v19 = vld [vmem:[%s4139_s0 + $0x28] sm:$0xf0] }
  0xc2   : > { %v2951_v24 = vld [vmem:[%s4139_s0 + $0x30] sm:$0xf0]  ;;  %v3046_v25 = vld [vmem:[%s3579_s5 + $0x178] sm:$0xff]  ;;  %v2445_v27 = vor.u32 %v2945_v14, %v2442_v17  ;;  %v2449_v28 = vor.u32 %v2950_v19, %v2448_v18  ;;  %v3043_v52 = vld [vmem:[%s3579_s5 + $0x160] sm:$0xff] }
  0xc3   : > { %3121 = vmatpush.bf16.msra.mxu1 %v3001_v21  ;;  %3122 = vmatpush.bf16.msra.mxu2 %v3001_v21  ;;  %v3053_v30 = vld [vmem:[%s3579_s5 + $0x1b0] sm:$0xff]  ;;  %v3067_v53 = vld [vmem:[%s3579_s5 + $0x220] sm:$0xff]  ;;  %v3050_v54 = vld [vmem:[%s3579_s5 + $0x198] sm:$0xff] }
  0xc4   : > { %3123 = vmatpush.bf16.msra.mxu3 %v3001_v21  ;;  %1792 = vmatpush.bf16.msra.mxu0 %v3001_v21  ;;  %v3031_v21 = vld [vmem:[%s3579_s5 + $0x100] sm:$0xff]  ;;  %v3061_v31 = vld [vmem:[%s3579_s5 + $0x1f0] sm:$0xff]  ;;  %v3042_v56 = vld [vmem:[%s3579_s5 + $0x158] sm:$0xff] }
  0xc5   : > { %v2964_v57 = vld [vmem:[%s4139_s0 + $0x9c] sm:$0xf]  ;;  %v2550_v12 = vld [vmem:[%s4139_s0 + $0xfc] sm:$0xf0]  ;;  %v2977_v14 = vld [vmem:[%s4139_s0 + $0x100] sm:$0xf0] }
  0xc6   : > { %v2556_v13 = vld [vmem:[%s4139_s0 + $0xe0] sm:$0xf]  ;;  %v2978_v17 = vld [vmem:[%s4139_s0 + $0x108] sm:$0xf0] }
  0xc7   : > { %3124 = vmatpush.bf16.msra.mxu1 %v3000_v22  ;;  %3125 = vmatpush.bf16.msra.mxu2 %v3000_v22  ;;  %v2557_v19 = vor.u32 %v2977_v14, %v2556_v13  ;;  %v2464_v13 = vld [vmem:[%s4139_s0 + $0x18] sm:$0xf]  ;;  %v2952_v14 = vld [vmem:[%s4139_s0 + $0x38] sm:$0xf0] }
  0xc8   : > { %3126 = vmatpush.bf16.msra.mxu3 %v3000_v22  ;;  %1793 = vmatpush.bf16.msra.mxu0 %v3000_v22  ;;  %v2456_v22 = vld [vmem:[%s4139_s0 + $0x10] sm:$0xf] }
  0xc9   : > { %v2457_v29 = vor.u32 %v2951_v24, %v2456_v22  ;;  %v3048_v22 = vld [vmem:[%s3579_s5 + $0x188] sm:$0xff] }
  0xca   : > { %v3056_v24 = vld [vmem:[%s3579_s5 + $0x1c8] sm:$0xff] }
  0xcb   : > { %3127 = vmatpush.bf16.msra.mxu1 %v2999_v26  ;;  %3128 = vmatpush.bf16.msra.mxu2 %v2999_v26 }
  0xcc   : > { %3129 = vmatpush.bf16.msra.mxu3 %v2999_v26  ;;  %1794 = vmatpush.bf16.msra.mxu0 %v2999_v26  ;;  %v3070_v26 = vld [vmem:[%s3579_s5 + $0x238] sm:$0xff] }
  0xce   : > { %1805 = vmatmul.bf16.vlgmr.msra.gmra.mxu1 %v2513_v34  ;;  %1815 = vmatmul.bf16.vlgmr.msra.gmra.mxu2 %v2585_v35  ;;  %v3052_v34 = vld [vmem:[%s3579_s5 + $0x1a8] sm:$0xff] }
  0xcf   : > { %1873 = vmatpush.bf16.msrb.mxu2 %v3022_v33  ;;  %1830 = vmatpush.bf16.msrb.mxu1 %v3014_v36  ;;  %v3069_v33 = vld [vmem:[%s3579_s5 + $0x230] sm:$0xff]  ;;  %v3060_v35 = vld [vmem:[%s3579_s5 + $0x1e8] sm:$0xff] }
  0xd0   : > { %1916 = vmatpush.bf16.msrb.mxu3 %v3030_v32  ;;  %1795 = vmatmul.bf16.vlgmr.msra.gmra.mxu0 %v2441_v37  ;;  %v3045_v32 = vld [vmem:[%s3579_s5 + $0x170] sm:$0xff]  ;;  %v3044_v36 = vld [vmem:[%s3579_s5 + $0x168] sm:$0xff] }
  0xd1   : > { %1959 = vmatpush.bf16.msrb.mxu0 %v3038_v38  ;;  %1825 = vmatmul.bf16.vlgmr.msra.gmra.mxu3 %v1283_v39  ;;  %v3068_v37 = vld [vmem:[%s3579_s5 + $0x228] sm:$0xff]  ;;  %v3051_v38 = vld [vmem:[%s3579_s5 + $0x1a0] sm:$0xff] }
  0xd2   : > { %v3059_v39 = vld [vmem:[%s3579_s5 + $0x1e0] sm:$0xff] }
  0xd3   : > { %1874 = vmatpush.bf16.msrb.mxu2 %v3021_v41  ;;  %1831 = vmatpush.bf16.msrb.mxu1 %v3013_v42  ;;  %v2486_v41 = vld [vmem:[%s4139_s0 + $0x74] sm:$0xf0]  ;;  %v2954_v42 = vld [vmem:[%s4139_s0 + $0x4c] sm:$0xf] }
  0xd4   : > { %1917 = vmatpush.bf16.msrb.mxu3 %v3029_v40  ;;  %v2955_v40 = vld [vmem:[%s4139_s0 + $0x54] sm:$0xf] }
  0xd5   : > { %1960 = vmatpush.bf16.msrb.mxu0 %v3037_v43  ;;  %v2478_v43 = vld [vmem:[%s4139_s0 + $0x6c] sm:$0xf0] }
  0xd7   : > { %1875 = vmatpush.bf16.msrb.mxu2 %v3020_v45  ;;  %1832 = vmatpush.bf16.msrb.mxu1 %v3012_v46  ;;  %v2959_v45 = vld [vmem:[%s4139_s0 + $0x70] sm:$0xf0]  ;;  %v2489_v46 = vor.u32 %v2955_v40, %v2486_v41  ;;  %v3055_v40 = vld [vmem:[%s3579_s5 + $0x1c0] sm:$0xff] }
  0xd8   : > { %1918 = vmatpush.bf16.msrb.mxu3 %v3028_v44  ;;  %v2484_v44 = vld [vmem:[%s4139_s0 + $0x50] sm:$0xf]  ;;  %v3039_v41 = vld [vmem:[%s3579_s5 + $0x140] sm:$0xff] }
  0xd9   : > { %1961 = vmatpush.bf16.msrb.mxu0 %v3036_v47  ;;  %v2492_v47 = vld [vmem:[%s4139_s0 + $0x58] sm:$0xf] }
  0xdb   : > { %1876 = vmatpush.bf16.msrb.mxu2 %v3019_v49  ;;  %1833 = vmatpush.bf16.msrb.mxu1 %v3011_v50  ;;  %v2481_v49 = vor.u32 %v2954_v42, %v2478_v43  ;;  %v2485_v50 = vor.u32 %v2959_v45, %v2484_v44  ;;  %v2991_v42 = vld [vmem:[%s4139_s0 + $0x174] sm:$0xf]  ;;  %v2630_v43 = vld [vmem:[%s4139_s0 + $0x194] sm:$0xf0]  ;;  %v2990_v44 = vld [vmem:[%s4139_s0 + $0x16c] sm:$0xf] }
  0xdc   : > { %1919 = vmatpush.bf16.msrb.mxu3 %v3027_v48  ;;  %v2960_v48 = vld [vmem:[%s4139_s0 + $0x78] sm:$0xf0]  ;;  %v2622_v45 = vld [vmem:[%s4139_s0 + $0x18c] sm:$0xf0] }
  0xdd   : > { %1962 = vmatpush.bf16.msrb.mxu0 %v3035_v55  ;;  %v2493_v51 = vor.u32 %v2960_v48, %v2492_v47  ;;  %v3058_v55 = vld [vmem:[%s3579_s5 + $0x1d8] sm:$0xff]  ;;  %v2995_v47 = vld [vmem:[%s4139_s0 + $0x190] sm:$0xf0]  ;;  %v2633_v48 = vor.u32 %v2991_v42, %v2630_v43 }
  0xde   : > { %1810 = vmatmul.bf16.gmra.mxu1 %v2549_v60  ;;  %1820 = vmatmul.bf16.gmra.mxu2 %v2621_v61  ;;  %v2514_v60 = vld [vmem:[%s4139_s0 + $0xb4] sm:$0xf0] }
  0xdf   : > { %1877 = vmatpush.bf16.msrb.mxu2 %v3018_v59  ;;  %1834 = vmatpush.bf16.msrb.mxu1 %v3010_v62  ;;  %v2963_v59 = vld [vmem:[%s4139_s0 + $0x94] sm:$0xf]  ;;  %v2520_v61 = vld [vmem:[%s4139_s0 + $0x98] sm:$0xf]  ;;  %v2968_v62 = vld [vmem:[%s4139_s0 + $0xb8] sm:$0xf0] }
  0xe0   : > { %1920 = vmatpush.bf16.msrb.mxu3 %v3026_v58  ;;  %1800 = vmatmul.bf16.gmra.mxu0 %v2477_v63  ;;  %v2522_v58 = vld [vmem:[%s4139_s0 + $0xbc] sm:$0xf0] }
  0xe1   : > { %1963 = vmatpush.bf16.msrb.mxu0 %v3034_v0  ;;  %v2525_v63 = vor.u32 %v2964_v57, %v2522_v58  ;;  %v2528_v0 = vld [vmem:[%s4139_s0 + $0xa0] sm:$0xf]  ;;  %v1221_v58 = vunpack.c.h.b16 %v3599_v23 }
  0xe2   : > { %v3853_v57 = vld [vmem:[%s4139_s0 + $0x1c0] sm:$0xff] }
  0xe3   : > { %1878 = vmatpush.bf16.msrb.mxu2 %v3017_v2  ;;  %1835 = vmatpush.bf16.msrb.mxu1 %v3009_v3  ;;  %v2517_v2 = vor.u32 %v2963_v59, %v2514_v60  ;;  %v2521_v3 = vor.u32 %v2968_v62, %v2520_v61  ;;  %v1224_v60 = vunpack.c.l.b16 %v3853_v57  ;;  %v1284_v62 = vpack.c.b16 %v1221_v58, %v1221_v58  ;;  %v2966_v58 = vld [vmem:[%s4139_s0 + $0xac] sm:$0xf] }
  0xe4   : > { %1921 = vmatpush.bf16.msrb.mxu3 %v3025_v1  ;;  %v2969_v1 = vld [vmem:[%s4139_s0 + $0xc0] sm:$0xf0] }
  0xe5   : > { %1964 = vmatpush.bf16.msrb.mxu0 %v3033_v4  ;;  %v2529_v4 = vor.u32 %v2969_v1, %v2528_v0  ;;  %v1287_v1 = vpack.c.b16 %v1224_v60, %v1224_v60  ;;  %v2965_v60 = vld [vmem:[%s4139_s0 + $0xa4] sm:$0xf] }
  0xe7   : > { %1879 = vmatpush.bf16.msrb.mxu2 %v3016_v6  ;;  %1836 = vmatpush.bf16.msrb.mxu1 %v3008_v7  ;;  %v3049_v6 = vld [vmem:[%s3579_s5 + $0x190] sm:$0xff] }
  0xe8   : > { %1922 = vmatpush.bf16.msrb.mxu3 %v3024_v5  ;;  %v3066_v5 = vld [vmem:[%s3579_s5 + $0x218] sm:$0xff]  ;;  %v3057_v7 = vld [vmem:[%s3579_s5 + $0x1d0] sm:$0xff] }
  0xe9   : > { %1965 = vmatpush.bf16.msrb.mxu0 %v3032_v9  ;;  %v2973_v9 = vld [vmem:[%s4139_s0 + $0xe4] sm:$0xf] }
  0xeb   : > { %1880 = vmatpush.bf16.msrb.mxu2 %v3015_v10  ;;  %1837 = vmatpush.bf16.msrb.mxu1 %v3007_v11  ;;  %v2558_v10 = vld [vmem:[%s4139_s0 + $0x104] sm:$0xf0]  ;;  %v2972_v11 = vld [vmem:[%s4139_s0 + $0xdc] sm:$0xf] }
  0xec   : > { %1923 = vmatpush.bf16.msrb.mxu3 %v3023_v8  ;;  %v3041_v8 = vld [vmem:[%s3579_s5 + $0x150] sm:$0xff]  ;;  %v2553_v18 = vor.u32 %v2972_v11, %v2550_v12  ;;  %v2458_v12 = vld [vmem:[%s4139_s0 + $0x34] sm:$0xf0] }
  0xed   : > { %1966 = vmatpush.bf16.msrb.mxu0 %v3031_v21  ;;  %v3065_v21 = vld [vmem:[%s3579_s5 + $0x210] sm:$0xff] }
  0xee   : > { %1838 = vmatmul.bf16.vlgmr.msrb.gmra.mxu1 %v2445_v27  ;;  %1881 = vmatmul.bf16.vlgmr.msrb.gmra.mxu2 %v2449_v28  ;;  %v2594_v27 = vld [vmem:[%s4139_s0 + $0x14c] sm:$0xf0]  ;;  %v2981_v28 = vld [vmem:[%s4139_s0 + $0x124] sm:$0xf]  ;;  %v2947_v11 = vld [vmem:[%s4139_s0 + $0x14] sm:$0xf] }
  0xef   : > { %2045 = vmatpush.bf16.msra.mxu2 %v3054_v15  ;;  %1924 = vmatmul.bf16.vlgmr.msrb.gmra.mxu3 %v2453_v20  ;;  %v2561_v15 = vor.u32 %v2973_v9, %v2558_v10  ;;  %v2948_v9 = vld [vmem:[%s4139_s0 + $0x1c] sm:$0xf]  ;;  %v2466_v10 = vld [vmem:[%s4139_s0 + $0x3c] sm:$0xf0] }
  0xf0   : > { %2088 = vmatpush.bf16.msra.mxu3 %v3062_v16  ;;  %2002 = vmatpush.bf16.msra.mxu1 %v3046_v25  ;;  %v2564_v16 = vld [vmem:[%s4139_s0 + $0xe8] sm:$0xf] }
  0xf1   : > { %2131 = vmatpush.bf16.msra.mxu0 %v3070_v26  ;;  %v2565_v20 = vor.u32 %v2978_v17, %v2564_v16  ;;  %v3040_v25 = vld [vmem:[%s3579_s5 + $0x148] sm:$0xff]  ;;  %v2472_v16 = vld [vmem:[%s4139_s0 + $0x20] sm:$0xf]  ;;  %v2953_v17 = vld [vmem:[%s4139_s0 + $0x40] sm:$0xf0] }
  0xf2   : > { %1967 = vmatmul.bf16.vlgmr.msrb.gmra.mxu0 %v2457_v29  ;;  %v2982_v26 = vld [vmem:[%s4139_s0 + $0x12c] sm:$0xf]  ;;  %v2586_v29 = vld [vmem:[%s4139_s0 + $0x144] sm:$0xf0] }
  0xf3   : > { %2046 = vmatpush.bf16.msra.mxu2 %v3053_v30  ;;  %v2592_v30 = vld [vmem:[%s4139_s0 + $0x128] sm:$0xf] }
  0xf4   : > { %2089 = vmatpush.bf16.msra.mxu3 %v3061_v31  ;;  %2003 = vmatpush.bf16.msra.mxu1 %v3045_v32  ;;  %v2986_v31 = vld [vmem:[%s4139_s0 + $0x148] sm:$0xf0]  ;;  %v2597_v32 = vor.u32 %v2982_v26, %v2594_v27 }
  0xf5   : > { %2132 = vmatpush.bf16.msra.mxu0 %v3069_v33  ;;  %v2600_v33 = vld [vmem:[%s4139_s0 + $0x130] sm:$0xf] }
  0xf7   : > { %2047 = vmatpush.bf16.msra.mxu2 %v3052_v34  ;;  %v2987_v34 = vld [vmem:[%s4139_s0 + $0x150] sm:$0xf0] }
  0xf8   : > { %2090 = vmatpush.bf16.msra.mxu3 %v3060_v35  ;;  %2004 = vmatpush.bf16.msra.mxu1 %v3044_v36  ;;  %v2589_v35 = vor.u32 %v2981_v28, %v2586_v29  ;;  %v2593_v36 = vor.u32 %v2986_v31, %v2592_v30  ;;  %v2957_v31 = vld [vmem:[%s4139_s0 + $0x64] sm:$0xf] }
  0xf9   : > { %2133 = vmatpush.bf16.msra.mxu0 %v3068_v37  ;;  %v2601_v37 = vor.u32 %v2987_v34, %v2600_v33  ;;  %v2956_v33 = vld [vmem:[%s4139_s0 + $0x5c] sm:$0xf]  ;;  %v2494_v34 = vld [vmem:[%s4139_s0 + $0x7c] sm:$0xf0] }
  0xfa   : > { %v2497_v43 = vor.u32 %v2956_v33, %v2494_v34  ;;  %v2975_v34 = vld [vmem:[%s4139_s0 + $0xf4] sm:$0xf] }
  0xfb   : > { %2048 = vmatpush.bf16.msra.mxu2 %v3051_v38  ;;  %v3064_v38 = vld [vmem:[%s3579_s5 + $0x208] sm:$0xff] }
  0xfc   : > { %2091 = vmatpush.bf16.msra.mxu3 %v3059_v39  ;;  %2005 = vmatpush.bf16.msra.mxu1 %v3043_v52  ;;  %v3047_v39 = vld [vmem:[%s3579_s5 + $0x180] sm:$0xff] }
  0xfd   : > { %2134 = vmatpush.bf16.msra.mxu0 %v3067_v53  ;;  %v3063_v53 = vld [vmem:[%s3579_s5 + $0x200] sm:$0xff] }
  0xfe   : > { %1843 = vmatmul.bf16.gmra.mxu1 %v2481_v49  ;;  %1886 = vmatmul.bf16.gmra.mxu2 %v2485_v50  ;;  %v2636_v49 = vld [vmem:[%s4139_s0 + $0x178] sm:$0xf]  ;;  %v2996_v50 = vld [vmem:[%s4139_s0 + $0x198] sm:$0xf0] }
  0xff   : > { %1929 = vmatmul.bf16.gmra.mxu3 %v2489_v46  ;;  %2049 = vmatpush.bf16.msra.mxu2 %v3050_v54  ;;  %v2628_v46 = vld [vmem:[%s4139_s0 + $0x170] sm:$0xf]  ;;  %v2637_v54 = vor.u32 %v2996_v50, %v2636_v49 }
 0x100   : > { %2092 = vmatpush.bf16.msra.mxu3 %v3058_v55  ;;  %2006 = vmatpush.bf16.msra.mxu1 %v3042_v56  ;;  %v2629_v52 = vor.u32 %v2995_v47, %v2628_v46  ;;  %v895_v55 = vld [vmem:[%s4139_s0 + $0x1b8] sm:$0xff] }
 0x101   : > { %2135 = vmatpush.bf16.msra.mxu0 %v3066_v5  ;;  %v1223_v56 = vunpack.c.h.b16 %v895_v55  ;;  %v1222_v59 = vunpack.c.l.b16 %v895_v55 }
 0x102   : > { %1972 = vmatmul.bf16.gmra.mxu0 %v2493_v51  ;;  %v2625_v51 = vor.u32 %v2990_v44, %v2622_v45 }
 0x103   : > { %2050 = vmatpush.bf16.msra.mxu2 %v3049_v6  ;;  %v1286_v61 = vpack.c.b16 %v1223_v56, %v1223_v56 }
 0x104   : > { %2093 = vmatpush.bf16.msra.mxu3 %v3057_v7  ;;  %2007 = vmatpush.bf16.msra.mxu1 %v3041_v8 }
 0x105   : > { %2136 = vmatpush.bf16.msra.mxu0 %v3065_v21  ;;  %v2465_v21 = vor.u32 %v2952_v14, %v2464_v13 }
 0x107   : > { %2051 = vmatpush.bf16.msra.mxu2 %v3048_v22 }
 0x108   : > { %2094 = vmatpush.bf16.msra.mxu3 %v3056_v24  ;;  %2008 = vmatpush.bf16.msra.mxu1 %v3040_v25  ;;  %v2473_v24 = vor.u32 %v2953_v17, %v2472_v16 }
 0x109   : > { %2137 = vmatpush.bf16.msra.mxu0 %v3064_v38  ;;  %v2508_v38 = vld [vmem:[%s4139_s0 + $0x68] sm:$0xf] }
 0x10b   : > { %2052 = vmatpush.bf16.msra.mxu2 %v3047_v39  ;;  %v2962_v39 = vld [vmem:[%s4139_s0 + $0x88] sm:$0xf0] }
 0x10c   : > { %2095 = vmatpush.bf16.msra.mxu3 %v3055_v40  ;;  %2009 = vmatpush.bf16.msra.mxu1 %v3039_v41  ;;  %v2509_v46 = vor.u32 %v2962_v39, %v2508_v38  ;;  %v2566_v38 = vld [vmem:[%s4139_s0 + $0x10c] sm:$0xf0] }
 0x10d   : > { %2138 = vmatpush.bf16.msra.mxu0 %v3063_v53  ;;  %v2572_v39 = vld [vmem:[%s4139_s0 + $0xf0] sm:$0xf] }
 0x10e   : > { %1848 = vmatmul.bf16.gmra.mxu1 %v2517_v2  ;;  %1891 = vmatmul.bf16.gmra.mxu2 %v2521_v3  ;;  %v3864_v3 = vld [vmem:[%s832_s9] ss:$0 sm:$0xff] }
 0x10f   : > { %1934 = vmatmul.bf16.gmra.mxu3 %v2525_v63  ;;  %v1285_v63 = vpack.c.b16 %v1222_v59, %v1222_v59  ;;  %v2538_v59 = vld [vmem:[%s4139_s0 + $0xcc] sm:$0xf0] }
 0x112   : > { %1977 = vmatmul.bf16.gmra.mxu0 %v2529_v4 }
 0x11e   : > { %1853 = vmatmul.bf16.gmra.mxu1 %v2553_v18  ;;  %1896 = vmatmul.bf16.gmra.mxu2 %v2557_v19 }
 0x11f   : > { %1939 = vmatmul.bf16.gmra.mxu3 %v2561_v15  ;;  %v2469_v15 = vor.u32 %v2948_v9, %v2466_v10 }
 0x122   : > { %1982 = vmatmul.bf16.gmra.mxu0 %v2565_v20  ;;  %v2461_v20 = vor.u32 %v2947_v11, %v2458_v12 }
 0x12e   : > { %1858 = vmatmul.bf16.gmra.mxu1 %v2589_v35  ;;  %1901 = vmatmul.bf16.gmra.mxu2 %v2593_v36  ;;  %v2500_v35 = vld [vmem:[%s4139_s0 + $0x60] sm:$0xf]  ;;  %v2961_v36 = vld [vmem:[%s4139_s0 + $0x80] sm:$0xf0] }
 0x12f   : > { %1944 = vmatmul.bf16.gmra.mxu3 %v2597_v32  ;;  %v2502_v32 = vld [vmem:[%s4139_s0 + $0x84] sm:$0xf0]  ;;  %v2501_v44 = vor.u32 %v2961_v36, %v2500_v35  ;;  %v2574_v35 = vld [vmem:[%s4139_s0 + $0x114] sm:$0xf0]  ;;  %v2974_v36 = vld [vmem:[%s4139_s0 + $0xec] sm:$0xf] }
 0x132   : > { %1987 = vmatmul.bf16.gmra.mxu0 %v2601_v37  ;;  %v2505_v37 = vor.u32 %v2957_v31, %v2502_v32 }
 0x13e   : > { %1863 = vmatmul.bf16.gmra.mxu1 %v2625_v51  ;;  %1906 = vmatmul.bf16.gmra.mxu2 %v2629_v52 }
 0x13f   : > { %1949 = vmatmul.bf16.gmra.mxu3 %v2633_v48 }
 0x142   : > { %1992 = vmatmul.bf16.gmra.mxu0 %v2637_v54 }
 0x14b   : > { %v3857_v0 = vpop.f32.mrf.mxu1 }
 0x14d   : > { %v1796_v2 = vpop.f32.mrf.mxu0 }
 0x14e   : > { %1868 = vmatmul.bf16.gmra.mxu1 %v1284_v62  ;;  %1911 = vmatmul.bf16.gmra.mxu2 %v1285_v63  ;;  %v1797_v41 = vadd.f32 %v3864_v3, %v1796_v2  ;;  %v2530_v63 = vld [vmem:[%s4139_s0 + $0xc4] sm:$0xf0]  ;;  %v2970_v2 = vld [vmem:[%s4139_s0 + $0xc8] sm:$0xf0] }
 0x14f   : > { %1954 = vmatmul.bf16.gmra.mxu3 %v1286_v61  ;;  %v2533_v12 = vor.u32 %v2965_v60, %v2530_v63 }
 0x151   : > { %v1816_v23 = vpop.f32.mrf.mxu2 }
 0x152   : > { %1997 = vmatmul.bf16.gmra.mxu0 %v1287_v1  ;;  %v3867_v4 = vadd.f32 %v3864_v3, %v1816_v23  ;;  %v2536_v1 = vld [vmem:[%s4139_s0 + $0xa8] sm:$0xf]  ;;  %v2541_v23 = vor.u32 %v2966_v58, %v2538_v59 }
 0x153   : > { %v3869_v5 = vpop.f32.mrf.mxu1  ;;  %v2537_v13 = vor.u32 %v2970_v2, %v2536_v1  ;;  %v2984_v2 = vld [vmem:[%s4139_s0 + $0x13c] sm:$0xf] }
 0x154   : > { %v1826_v6 = vpop.f32.mrf.mxu3  ;;  %v1809_v59 = vadd.f32 %v3864_v3, %v3869_v5 }
 0x155   : > { %v1798_v7 = vpop.f32.mrf.mxu0  ;;  %v3872_v8 = vadd.f32 %v3864_v3, %v1826_v6  ;;  %v2544_v6 = vld [vmem:[%s4139_s0 + $0xb0] sm:$0xf] }
 0x156   : > { %v1799_v51 = vadd.f32 %v3864_v3, %v1798_v7  ;;  %v2971_v7 = vld [vmem:[%s4139_s0 + $0xd0] sm:$0xf0] }
 0x159   : > { %v1818_v18 = vpop.f32.mrf.mxu2 }
 0x15a   : > { %v3899_v19 = vadd.f32 %v3864_v3, %v1818_v18 }
 0x15b   : > { %v3901_v22 = vpop.f32.mrf.mxu1 }
 0x15c   : > { %v1828_v25 = vpop.f32.mrf.mxu3 }
 0x15d   : > { %v1801_v26 = vpop.f32.mrf.mxu0 }
 0x15e   : > { %2010 = vmatmul.bf16.vlgmr.msra.gmra.mxu1 %v2461_v20  ;;  %2053 = vmatmul.bf16.vlgmr.msra.gmra.mxu2 %v2465_v21  ;;  %v1802_v10 = vadd.f32 %v3864_v3, %v1801_v26 }
 0x15f   : > { %2096 = vmatmul.bf16.vlgmr.msra.gmra.mxu3 %v2469_v15  ;;  %v2545_v15 = vor.u32 %v2971_v7, %v2544_v6  ;;  %v2983_v6 = vld [vmem:[%s4139_s0 + $0x134] sm:$0xf] }
 0x161   : > { %v1821_v27 = vpop.f32.mrf.mxu2 }
 0x162   : > { %2139 = vmatmul.bf16.vlgmr.msra.gmra.mxu0 %v2473_v24  ;;  %v3904_v28 = vadd.f32 %v3864_v3, %v1821_v27 }
 0x163   : > { %v3906_v29 = vpop.f32.mrf.mxu1 }
 0x165   : > { %v1803_v30 = vpop.f32.mrf.mxu0 }
 0x166   : > { %v1804_v25 = vadd.f32 %v3864_v3, %v1803_v30 }
 0x169   : > { %v1823_v40 = vpop.f32.mrf.mxu2 }
 0x16a   : > { %v3934_v42 = vadd.f32 %v3864_v3, %v1823_v40  ;;  %v2979_v40 = vld [vmem:[%s4139_s0 + $0x110] sm:$0xf0] }
 0x16b   : > { %v1839_v45 = vpop.f32.mrf.mxu1 }
 0x16c   : > { %v1840_v47 = vadd.f32 %v1839_v45, %v1797_v41  ;;  %v2577_v41 = vor.u32 %v2975_v34, %v2574_v35  ;;  %v1814_v35 = vadd.f32 %v3864_v3, %v3906_v29  ;;  %v2638_v29 = vld [vmem:[%s4139_s0 + $0x19c] sm:$0xf0] }
 0x16e   : > { %2015 = vmatmul.bf16.gmra.mxu1 %v2497_v43  ;;  %2058 = vmatmul.bf16.gmra.mxu2 %v2501_v44  ;;  %v2580_v43 = vld [vmem:[%s4139_s0 + $0xf8] sm:$0xf]  ;;  %v2980_v44 = vld [vmem:[%s4139_s0 + $0x118] sm:$0xf0] }
 0x16f   : > { %2101 = vmatmul.bf16.gmra.mxu3 %v2505_v37  ;;  %v1968_v48 = vpop.f32.mrf.mxu0 }
 0x171   : > { %v1882_v50 = vpop.f32.mrf.mxu2 }
 0x172   : > { %v1925_v49 = vpop.f32.mrf.mxu3  ;;  %2144 = vmatmul.bf16.gmra.mxu0 %v2509_v46  ;;  %v1883_v52 = vadd.f32 %v1882_v50, %v1840_v47  ;;  %v1807_v46 = vadd.f32 %v3864_v3, %v3857_v0 }
 0x173   : > { %v1841_v53 = vpop.f32.mrf.mxu1 }
 0x174   : > { %v1926_v54 = vadd.f32 %v1925_v49, %v1883_v52  ;;  %v1842_v55 = vadd.f32 %v1841_v53, %v1799_v51  ;;  %v2573_v49 = vor.u32 %v2979_v40, %v2572_v39  ;;  %v2581_v51 = vor.u32 %v2980_v44, %v2580_v43  ;;  %v2993_v40 = vld [vmem:[%s4139_s0 + $0x184] sm:$0xf]  ;;  %v2992_v43 = vld [vmem:[%s4139_s0 + $0x17c] sm:$0xf] }
 0x176   : > { %v3946_v61 = vadd.f32 %v1968_v48, %v1926_v54  ;;  %v2569_v48 = vor.u32 %v2974_v36, %v2566_v38 }
 0x177   : > { %v1970_v56 = vpop.f32.mrf.mxu0 }
 0x179   : > { %v1884_v9 = vpop.f32.mrf.mxu2 }
 0x17a   : > { %v1927_v62 = vpop.f32.mrf.mxu3  ;;  %v1885_v11 = vadd.f32 %v1884_v9, %v1842_v55  ;;  %v2602_v9 = vld [vmem:[%s4139_s0 + $0x154] sm:$0xf0] }
 0x17b   : > { %v1844_v14 = vpop.f32.mrf.mxu1 }
 0x17c   : > { %v1928_v16 = vadd.f32 %v1927_v62, %v1885_v11  ;;  %v1845_v17 = vadd.f32 %v1844_v14, %v1802_v10  ;;  %v2608_v10 = vld [vmem:[%s4139_s0 + $0x138] sm:$0xf]  ;;  %v2988_v11 = vld [vmem:[%s4139_s0 + $0x158] sm:$0xf0]  ;;  %v2989_v14 = vld [vmem:[%s4139_s0 + $0x160] sm:$0xf0] }
 0x17e   : > { %2020 = vmatmul.bf16.gmra.mxu1 %v2533_v12  ;;  %2063 = vmatmul.bf16.gmra.mxu2 %v2537_v13  ;;  %v3964_v20 = vadd.f32 %v1970_v56, %v1928_v16  ;;  %v2616_v13 = vld [vmem:[%s4139_s0 + $0x140] sm:$0xf]  ;;  %v1812_v16 = vadd.f32 %v3864_v3, %v3901_v22 }
 0x17f   : > { %2106 = vmatmul.bf16.gmra.mxu3 %v2541_v23  ;;  %v1973_v18 = vpop.f32.mrf.mxu0  ;;  %v2610_v23 = vld [vmem:[%s4139_s0 + $0x15c] sm:$0xf0] }
 0x180   : > { %v2613_v12 = vor.u32 %v2984_v2, %v2610_v23 }
 0x181   : > { %v1887_v24 = vpop.f32.mrf.mxu2 }
 0x182   : > { %v1930_v21 = vpop.f32.mrf.mxu3  ;;  %2149 = vmatmul.bf16.gmra.mxu0 %v2545_v15  ;;  %v1888_v27 = vadd.f32 %v1887_v24, %v1845_v17 }
 0x183   : > { %v1846_v26 = vpop.f32.mrf.mxu1 }
 0x184   : > { %v1931_v31 = vadd.f32 %v1930_v21, %v1888_v27  ;;  %v1847_v32 = vadd.f32 %v1846_v26, %v1804_v25  ;;  %v2609_v21 = vor.u32 %v2988_v11, %v2608_v10  ;;  %v2617_v25 = vor.u32 %v2989_v14, %v2616_v13  ;;  %v898_v10 = vld [vmem:[%s4139_s0 + $0x1d0] sm:$0xf] }
 0x185   : > { %v1225_v11 = vunpack.c.h.b16 %v3853_v57 }
 0x186   : > { %v3976_v37 = vadd.f32 %v1973_v18, %v1931_v31  ;;  %v2605_v18 = vor.u32 %v2983_v6, %v2602_v9 }
 0x187   : > { %v1975_v33 = vpop.f32.mrf.mxu0 }
 0x189   : > { %v1889_v45 = vpop.f32.mrf.mxu2 }
 0x18a   : > { %v1932_v30 = vpop.f32.mrf.mxu3  ;;  %v1890_v47 = vadd.f32 %v1889_v45, %v1847_v32  ;;  %v2644_v45 = vld [vmem:[%s4139_s0 + $0x180] sm:$0xf] }
 0x18b   : > { %v1849_v50 = vpop.f32.mrf.mxu1 }
 0x18c   : > { %v1933_v52 = vadd.f32 %v1932_v30, %v1890_v47  ;;  %v1850_v53 = vadd.f32 %v1849_v50, %v1807_v46  ;;  %v2997_v46 = vld [vmem:[%s4139_s0 + $0x1a0] sm:$0xf0] }
 0x18e   : > { %2025 = vmatmul.bf16.gmra.mxu1 %v2569_v48  ;;  %2068 = vmatmul.bf16.gmra.mxu2 %v2573_v49  ;;  %v3995_v55 = vadd.f32 %v1975_v33, %v1933_v52  ;;  %v2652_v48 = vld [vmem:[%s4139_s0 + $0x188] sm:$0xf]  ;;  %v2998_v49 = vld [vmem:[%s4139_s0 + $0x1a8] sm:$0xf0]  ;;  %v2641_v52 = vor.u32 %v2992_v43, %v2638_v29 }
 0x18f   : > { %2111 = vmatmul.bf16.gmra.mxu3 %v2577_v41  ;;  %v1978_v54 = vpop.f32.mrf.mxu0  ;;  %v2646_v41 = vld [vmem:[%s4139_s0 + $0x1a4] sm:$0xf0] }
 0x190   : > { %v2649_v47 = vor.u32 %v2993_v40, %v2646_v41 }
 0x191   : > { %v1892_v58 = vpop.f32.mrf.mxu2 }
 0x192   : > { %v1935_v56 = vpop.f32.mrf.mxu3  ;;  %2154 = vmatmul.bf16.gmra.mxu0 %v2581_v51  ;;  %v1893_v0 = vadd.f32 %v1892_v58, %v1850_v53  ;;  %v2645_v53 = vor.u32 %v2997_v46, %v2644_v45 }
 0x193   : > { %v1851_v60 = vpop.f32.mrf.mxu1 }
 0x194   : > { %v1936_v62 = vadd.f32 %v1935_v56, %v1893_v0  ;;  %v1852_v63 = vadd.f32 %v1851_v60, %v1809_v59  ;;  %v2653_v56 = vor.u32 %v2998_v49, %v2652_v48 }
 0x196   : > { %v4008_v7 = vadd.f32 %v1978_v54, %v1936_v62 }
 0x197   : > { %v1980_v1 = vpop.f32.mrf.mxu0 }
 0x199   : > { %v1894_v15 = vpop.f32.mrf.mxu2 }
 0x19a   : > { %v1937_v5 = vpop.f32.mrf.mxu3  ;;  %v1895_v17 = vadd.f32 %v1894_v15, %v1852_v63  ;;  %v1228_v15 = vunpack.c.l.b16 %v898_v10 }
 0x19b   : > { %v1854_v24 = vpop.f32.mrf.mxu1 }
 0x19c   : > { %v1938_v27 = vadd.f32 %v1937_v5, %v1895_v17  ;;  %v1855_v26 = vadd.f32 %v1854_v24, %v1812_v16 }
 0x19e   : > { %2030 = vmatmul.bf16.gmra.mxu1 %v2605_v18  ;;  %2073 = vmatmul.bf16.gmra.mxu2 %v2609_v21  ;;  %v4027_v32 = vadd.f32 %v1980_v1, %v1938_v27  ;;  %v897_v1 = vld [vmem:[%s4139_s0 + $0x1c8] sm:$0xff]  ;;  %v1288_v21 = vpack.c.b16 %v1225_v11, %v1225_v11 }
 0x19f   : > { %2116 = vmatmul.bf16.gmra.mxu3 %v2613_v12  ;;  %v1983_v31 = vpop.f32.mrf.mxu0  ;;  %v1226_v12 = vunpack.c.l.b16 %v897_v1 }
 0x1a1   : > { %v1897_v34 = vpop.f32.mrf.mxu2  ;;  %v1289_v24 = vpack.c.b16 %v1226_v12, %v1226_v12 }
 0x1a2   : > { %v1940_v33 = vpop.f32.mrf.mxu3  ;;  %2159 = vmatmul.bf16.gmra.mxu0 %v2617_v25  ;;  %v1898_v22 = vadd.f32 %v1897_v34, %v1855_v26 }
 0x1a3   : > { %v1856_v36 = vpop.f32.mrf.mxu1 }
 0x1a4   : > { %v1941_v30 = vadd.f32 %v1940_v33, %v1898_v22  ;;  %v1857_v38 = vadd.f32 %v1856_v36, %v1814_v35 }
 0x1a6   : > { %v4040_v44 = vadd.f32 %v1983_v31, %v1941_v30 }
 0x1a7   : > { %v1985_v39 = vpop.f32.mrf.mxu0 }
 0x1a9   : > { %v1899_v50 = vpop.f32.mrf.mxu2 }
 0x1aa   : > { %v1942_v3 = vpop.f32.mrf.mxu3  ;;  %v1900_v51 = vadd.f32 %v1899_v50, %v1857_v38 }
 0x1ab   : > { %v1859_v54 = vpop.f32.mrf.mxu1 }
 0x1ac   : > { %v1943_v58 = vadd.f32 %v1942_v3, %v1900_v51  ;;  %v1860_v59 = vadd.f32 %v1859_v54, %v3867_v4  ;;  %v1227_v4 = vunpack.c.h.b16 %v897_v1 }
 0x1ae   : > { %2035 = vmatmul.bf16.gmra.mxu1 %v2641_v52  ;;  %2078 = vmatmul.bf16.gmra.mxu2 %v2645_v53  ;;  %v4058_v60 = vadd.f32 %v1985_v39, %v1943_v58  ;;  %v1290_v16 = vpack.c.b16 %v1227_v4, %v1227_v4 }
 0x1af   : > { %2121 = vmatmul.bf16.gmra.mxu3 %v2649_v47  ;;  %v1988_v0 = vpop.f32.mrf.mxu0 }
 0x1b1   : > { %v1902_v63 = vpop.f32.mrf.mxu2 }
 0x1b2   : > { %v1945_v62 = vpop.f32.mrf.mxu3  ;;  %2164 = vmatmul.bf16.gmra.mxu0 %v2653_v56  ;;  %v1903_v2 = vadd.f32 %v1902_v63, %v1860_v59 }
 0x1b3   : > { %v1861_v23 = vpop.f32.mrf.mxu1 }
 0x1b4   : > { %v1946_v6 = vadd.f32 %v1945_v62, %v1903_v2  ;;  %v1862_v5 = vadd.f32 %v1861_v23, %v3899_v19  ;;  %v1291_v19 = vpack.c.b16 %v1228_v15, %v1228_v15 }
 0x1b6   : > { %v4068_v13 = vadd.f32 %v1988_v0, %v1946_v6 }
 0x1b7   : > { %v1990_v9 = vpop.f32.mrf.mxu0 }
 0x1b9   : > { %v1904_v17 = vpop.f32.mrf.mxu2 }
 0x1ba   : > { %v1947_v14 = vpop.f32.mrf.mxu3  ;;  %v1905_v18 = vadd.f32 %v1904_v17, %v1862_v5 }
 0x1bb   : > { %v1864_v25 = vpop.f32.mrf.mxu1 }
 0x1bc   : > { %v1948_v27 = vadd.f32 %v1947_v14, %v1905_v18  ;;  %v1865_v26 = vadd.f32 %v1864_v25, %v3904_v28 }
 0x1be   : > { %2040 = vmatmul.bf16.gmra.mxu1 %v1288_v21  ;;  %2083 = vmatmul.bf16.gmra.mxu2 %v1289_v24  ;;  %v4071_v57 = vadd.f32 %v1990_v9, %v1948_v27 }
 0x1bf   : > { %2126 = vmatmul.bf16.gmra.mxu3 %v1290_v16  ;;  %v1993_v31 = vpop.f32.mrf.mxu0 }
 0x1c1   : > { %v1907_v34 = vpop.f32.mrf.mxu2 }
 0x1c2   : > { %v1950_v33 = vpop.f32.mrf.mxu3  ;;  %2169 = vmatmul.bf16.gmra.mxu0 %v1291_v19  ;;  %v1908_v35 = vadd.f32 %v1907_v34, %v1865_v26 }
 0x1c3   : > { %v1866_v22 = vpop.f32.mrf.mxu1 }
 0x1c4   : > { %v1951_v36 = vadd.f32 %v1950_v33, %v1908_v35  ;;  %v1867_v30 = vadd.f32 %v1866_v22, %v3934_v42 }
 0x1c6   : > { %v4074_v39 = vadd.f32 %v1993_v31, %v1951_v36 }
 0x1c7   : > { %v1995_v38 = vpop.f32.mrf.mxu0 }
 0x1c9   : > { %v1909_v41 = vpop.f32.mrf.mxu2 }
 0x1ca   : > { %v1952_v40 = vpop.f32.mrf.mxu3  ;;  %v1910_v28 = vadd.f32 %v1909_v41, %v1867_v30 }
 0x1cb   : > { %v1869_v43 = vpop.f32.mrf.mxu1 }
 0x1cc   : > { %v1953_v3 = vadd.f32 %v1952_v40, %v1910_v28  ;;  %v1870_v29 = vadd.f32 %v1869_v43, %v3872_v8 }
 0x1ce   : > { %v4077_v46 = vadd.f32 %v1995_v38, %v1953_v3 }
 0x1cf   : > { %v1998_v45 = vpop.f32.mrf.mxu0 }
 0x1d1   : > { %v1912_v48 = vpop.f32.mrf.mxu2 }
 0x1d2   : > { %v1955_v47 = vpop.f32.mrf.mxu3  ;;  %v1913_v49 = vadd.f32 %v1912_v48, %v1870_v29 }
 0x1d3   : > { %v1871_v50 = vpop.f32.mrf.mxu1 }
 0x1d4   : > { %v1956_v51 = vadd.f32 %v1955_v47, %v1913_v49 }
 0x1d6   : > { %v4079_v42 = vadd.f32 %v1998_v45, %v1956_v51 }
 0x1d7   : > { %v2000_v52 = vpop.f32.mrf.mxu0 }
 0x1d9   : > { %v1914_v54 = vpop.f32.mrf.mxu2 }
 0x1da   : > { %v1957_v53 = vpop.f32.mrf.mxu3 }
 0x1db   : > { %v2011_v56 = vpop.f32.mrf.mxu1 }
 0x1dc   : > { %v2012_v0 = vadd.f32 %v2011_v56, %v3946_v61 }
 0x1df   : > { %v2140_v58 = vpop.f32.mrf.mxu0 }
 0x1e1   : > { %v2054_v8 = vpop.f32.mrf.mxu2 }
 0x1e2   : > { %v2097_v59 = vpop.f32.mrf.mxu3  ;;  %v2055_v62 = vadd.f32 %v2054_v8, %v2012_v0 }
 0x1e3   : > { %v2013_v63 = vpop.f32.mrf.mxu1 }
 0x1e4   : > { %v2098_v2 = vadd.f32 %v2097_v59, %v2055_v62  ;;  %v2014_v6 = vadd.f32 %v2013_v63, %v3964_v20 }
 0x1e6   : > { %v2141_v9 = vadd.f32 %v2140_v58, %v2098_v2 }
 0x1e7   : > { %v2142_v1 = vpop.f32.mrf.mxu0 }
 0x1e8   : > { %v2187_v14 = vmul.f32 0.2, %v2141_v9  ;;  %vm2174_vm0 = vcmp.ge.f32.partialorder %v2141_v9, 0.0 }
 0x1e9   : > { %v2056_v5 = vpop.f32.mrf.mxu2 }
 0x1ea   : > { %v2099_v23 = vpop.f32.mrf.mxu3  ;;  %v2057_v4 = vadd.f32 %v2056_v5, %v2014_v6  ;;  %v2200_v21 = vsel %vm2174_vm0, %v2141_v9, %v2187_v14 }
 0x1eb   : > { %v2016_v10 = vpop.f32.mrf.mxu1 }
 0x1ec   : > { %v2100_v11 = vadd.f32 %v2099_v23, %v2057_v4  ;;  %v2017_v17 = vadd.f32 %v2016_v10, %v3976_v37 }
 0x1ee   : > { %v2143_v15 = vadd.f32 %v2142_v1, %v2100_v11 }
 0x1ef   : > { %v2145_v12 = vpop.f32.mrf.mxu0 }
 0x1f0   : > { %vm2175_vm1 = vcmp.ge.f32.partialorder %v2143_v15, 0.0  ;;  %v2188_v16 = vmul.f32 0.2, %v2143_v15 }
 0x1f1   : > { %v2059_v18 = vpop.f32.mrf.mxu2 }
 0x1f2   : > { %v2102_v61 = vpop.f32.mrf.mxu3  ;;  %v2201_v24 = vsel %vm2175_vm1, %v2143_v15, %v2188_v16  ;;  %v2060_v20 = vadd.f32 %v2059_v18, %v2017_v17 }
 0x1f3   : > { %v3074_v25 = vpack.c.bf16 %v2201_v24, %v2200_v21  ;;  %v2018_v19 = vpop.f32.mrf.mxu1 }
 0x1f4   : > { %v2103_v26 = vadd.f32 %v2102_v61, %v2060_v20  ;;  %v2019_v33 = vadd.f32 %v2018_v19, %v3995_v55 }
 0x1f5   : > { %3075 = vst [vmem:[%s4086_s11] sm:$0xff] %v3074_v25  }
 0x1f6   : > { %v2146_v35 = vadd.f32 %v2145_v12, %v2103_v26 }
 0x1f7   : > { %v2147_v27 = vpop.f32.mrf.mxu0 }
 0x1f8   : > { %v2189_v38 = vmul.f32 0.2, %v2146_v35  ;;  %vm2176_vm2 = vcmp.ge.f32.partialorder %v2146_v35, 0.0 }
 0x1f9   : > { %v2061_v34 = vpop.f32.mrf.mxu2 }
 0x1fa   : > { %v2104_v31 = vpop.f32.mrf.mxu3  ;;  %v2062_v22 = vadd.f32 %v2061_v34, %v2019_v33  ;;  %v2202_v29 = vsel %vm2176_vm2, %v2146_v35, %v2189_v38 }
 0x1fb   : > { %v2021_v36 = vpop.f32.mrf.mxu1 }
 0x1fc   : > { %v2105_v37 = vadd.f32 %v2104_v31, %v2062_v22  ;;  %v2022_v43 = vadd.f32 %v2021_v36, %v4008_v7 }
 0x1fe   : > { %v2148_v40 = vadd.f32 %v2147_v27, %v2105_v37 }
 0x1ff   : > { %v2150_v30 = vpop.f32.mrf.mxu0 }
 0x200   : > { %vm2177_vm3 = vcmp.ge.f32.partialorder %v2148_v40, 0.0  ;;  %v2190_v28 = vmul.f32 0.2, %v2148_v40 }
 0x201   : > { %v2064_v3 = vpop.f32.mrf.mxu2 }
 0x202   : > { %v2107_v41 = vpop.f32.mrf.mxu3  ;;  %v2203_v45 = vsel %vm2177_vm3, %v2148_v40, %v2190_v28  ;;  %v2065_v47 = vadd.f32 %v2064_v3, %v2022_v43 }
 0x203   : > { %v3079_v55 = vpack.c.bf16 %v2203_v45, %v2202_v29  ;;  %v2023_v48 = vpop.f32.mrf.mxu1 }
 0x204   : > { %v2108_v50 = vadd.f32 %v2107_v41, %v2065_v47  ;;  %v2024_v52 = vadd.f32 %v2023_v48, %v4027_v32 }
 0x205   : > { %3101 = vst [vmem:[%s4086_s11 + $0x8] sm:$0xff] %v3079_v55  }
 0x206   : > { %v2151_v54 = vadd.f32 %v2150_v30, %v2108_v50 }
 0x207   : > { %v2152_v49 = vpop.f32.mrf.mxu0 }
 0x208   : > { %v2191_v7 = vmul.f32 0.2, %v2151_v54  ;;  %vm2178_vm4 = vcmp.ge.f32.partialorder %v2151_v54, 0.0 }
 0x209   : > { %v2066_v53 = vpop.f32.mrf.mxu2 }
 0x20a   : > { %v2109_v51 = vpop.f32.mrf.mxu3  ;;  %v2067_v56 = vadd.f32 %v2066_v53, %v2024_v52  ;;  %v2204_v23 = vsel %vm2178_vm4, %v2151_v54, %v2191_v7 }
 0x20b   : > { %v2026_v58 = vpop.f32.mrf.mxu1 }
 0x20c   : > { %v2110_v59 = vadd.f32 %v2109_v51, %v2067_v56  ;;  %v2027_v1 = vadd.f32 %v2026_v58, %v4040_v44 }
 0x20e   : > { %v2153_v8 = vadd.f32 %v2152_v49, %v2110_v59 }
 0x20f   : > { %v2155_v0 = vpop.f32.mrf.mxu0 }
 0x210   : > { %vm2179_vm5 = vcmp.ge.f32.partialorder %v2153_v8, 0.0  ;;  %v2192_v63 = vmul.f32 0.2, %v2153_v8 }
 0x211   : > { %v2069_v2 = vpop.f32.mrf.mxu2 }
 0x212   : > { %v2112_v62 = vpop.f32.mrf.mxu3  ;;  %v2205_v6 = vsel %vm2179_vm5, %v2153_v8, %v2192_v63  ;;  %v2070_v5 = vadd.f32 %v2069_v2, %v2027_v1 }
 0x213   : > { %v3084_v32 = vpack.c.bf16 %v2205_v6, %v2204_v23  ;;  %v2028_v9 = vpop.f32.mrf.mxu1 }
 0x214   : > { %v2113_v10 = vadd.f32 %v2112_v62, %v2070_v5  ;;  %v2029_v12 = vadd.f32 %v2028_v9, %v4058_v60 }
 0x215   : > { %3102 = vst [vmem:[%s4086_s11 + $0x10] sm:$0xff] %v3084_v32  }
 0x216   : > { %v2156_v15 = vadd.f32 %v2155_v0, %v2113_v10 }
 0x217   : > { %v2157_v4 = vpop.f32.mrf.mxu0 }
 0x218   : > { %v2193_v44 = vmul.f32 0.2, %v2156_v15  ;;  %vm2180_vm6 = vcmp.ge.f32.partialorder %v2156_v15, 0.0 }
 0x219   : > { %v2071_v14 = vpop.f32.mrf.mxu2 }
 0x21a   : > { %v2114_v11 = vpop.f32.mrf.mxu3  ;;  %v2072_v61 = vadd.f32 %v2071_v14, %v2029_v12  ;;  %v2206_v27 = vsel %vm2180_vm6, %v2156_v15, %v2193_v44  ;;  %v2273_v44 = vld [vmem:[%s4086_s11 + $0xc] sm:$0xf] (%p3269_p6) }
 0x21b   : > { %v2031_v16 = vpop.f32.mrf.mxu1  ;;  %2274 = vst [vmem:[%s2250_s19 + $0x18] sm:$0xf] (%p3269_p6), %v2273_v44 }
 0x21c   : > { %v2115_v17 = vadd.f32 %v2114_v11, %v2072_v61  ;;  %v2032_v25 = vadd.f32 %v2031_v16, %v4068_v13 }
 0x21e   : > { %v2158_v21 = vadd.f32 %v2157_v4, %v2115_v17  ;;  %v2269_v17 = vld [vmem:[%s4086_s11 + $0x4] sm:$0xf] (%p3269_p6) }
 0x21f   : > { %v2160_v18 = vpop.f32.mrf.mxu0  ;;  %2270 = vst [vmem:[%s2250_s19 + $0x8] sm:$0xf] (%p3269_p6), %v2269_v17 }
 0x220   : > { %vm2181_vm7 = vcmp.ge.f32.partialorder %v2158_v21, 0.0  ;;  %v2194_v20 = vmul.f32 0.2, %v2158_v21 }
 0x221   : > { %v2074_v19 = vpop.f32.mrf.mxu2 }
 0x222   : > { %v2117_v24 = vpop.f32.mrf.mxu3  ;;  %v2207_v26 = vsel %vm2181_vm7, %v2158_v21, %v2194_v20  ;;  %v2075_v31 = vadd.f32 %v2074_v19, %v2032_v25  ;;  %v2275_v21 = vld [vmem:[%s4086_s11 + $0x10] sm:$0xf] (%p3269_p6) }
 0x223   : > { %v3089_v60 = vpack.c.bf16 %v2207_v26, %v2206_v27  ;;  %v2033_v33 = vpop.f32.mrf.mxu1  ;;  %2276 = vst [vmem:[%s2250_s19 + $0x20] sm:$0xf] (%p3269_p6), %v2275_v21 }
 0x224   : > { %v2118_v35 = vadd.f32 %v2117_v24, %v2075_v31  ;;  %v2034_v36 = vadd.f32 %v2033_v33, %v4071_v57  ;;  %v2277_v24 = vld [vmem:[%s4086_s11 + $0x14] sm:$0xf] (%p3269_p6) }
 0x225   : > { %3103 = vst [vmem:[%s4086_s11 + $0x18] sm:$0xff] %v3089_v60  }
 0x226   : > { %v2161_v30 = vadd.f32 %v2160_v18, %v2118_v35  ;;  %v2271_v18 = vld [vmem:[%s4086_s11 + $0x8] sm:$0xf] (%p3269_p6)  ;;  %2278 = vst [vmem:[%s2250_s19 + $0x28] sm:$0xf] (%p3269_p6), %v2277_v24 }
 0x227   : > { %v2162_v34 = vpop.f32.mrf.mxu0  ;;  %2272 = vst [vmem:[%s2250_s19 + $0x10] sm:$0xf] (%p3269_p6), %v2271_v18 }
 0x228   : > { %v2195_v13 = vmul.f32 0.2, %v2161_v30  ;;  %vm2182_vm8 = vcmp.ge.f32.partialorder %v2161_v30, 0.0 }
 0x229   : > { %v2076_v37 = vpop.f32.mrf.mxu2 }
 0x22a   : > { %v2119_v22 = vpop.f32.mrf.mxu3  ;;  %v2077_v38 = vadd.f32 %v2076_v37, %v2034_v36  ;;  %v2208_v55 = vsel %vm2182_vm8, %v2161_v30, %v2195_v13 }
 0x22b   : > { %v2036_v40 = vpop.f32.mrf.mxu1 }
 0x22c   : > { %v2120_v41 = vadd.f32 %v2119_v22, %v2077_v38  ;;  %v2037_v45 = vadd.f32 %v2036_v40, %v4074_v39  ;;  %v2279_v20 = vld [vmem:[%s4086_s11 + $0x18] sm:$0xf] (%p3269_p6)  ;;  %v2281_v25 = vld [vmem:[%s4086_s11 + $0x1c] sm:$0xf] (%p3269_p6) }
 0x22d   : > { %2280 = vst [vmem:[%s2250_s19 + $0x30] sm:$0xf] (%p3269_p6), %v2279_v20 }
 0x22e   : > { %v2163_v43 = vadd.f32 %v2162_v34, %v2120_v41  ;;  %2282 = vst [vmem:[%s2250_s19 + $0x38] sm:$0xf] (%p3269_p6), %v2281_v25 }
 0x22f   : > { %v2165_v28 = vpop.f32.mrf.mxu0 }
 0x230   : > { %vm2183_vm9 = vcmp.ge.f32.partialorder %v2163_v43, 0.0  ;;  %v2196_v29 = vmul.f32 0.2, %v2163_v43 }
 0x231   : > { %v2079_v47 = vpop.f32.mrf.mxu2 }
 0x232   : > { %v2122_v3 = vpop.f32.mrf.mxu3  ;;  %v2209_v48 = vsel %vm2183_vm9, %v2163_v43, %v2196_v29  ;;  %v2080_v49 = vadd.f32 %v2079_v47, %v2037_v45 }
 0x233   : > { %v3094_v57 = vpack.c.bf16 %v2209_v48, %v2208_v55  ;;  %v2038_v50 = vpop.f32.mrf.mxu1 }
 0x234   : > { %v2123_v52 = vadd.f32 %v2122_v3, %v2080_v49  ;;  %v2039_v54 = vadd.f32 %v2038_v50, %v4077_v46 }
 0x235   : > { %3104 = vst [vmem:[%s4086_s11 + $0x20] sm:$0xff] %v3094_v57  }
 0x236   : > { %v2166_v58 = vadd.f32 %v2165_v28, %v2123_v52 }
 0x237   : > { %v2167_v51 = vpop.f32.mrf.mxu0 }
 0x238   : > { %v2197_v39 = vmul.f32 0.2, %v2166_v58  ;;  %vm2184_vm10 = vcmp.ge.f32.partialorder %v2166_v58, 0.0 }
 0x239   : > { %v2081_v56 = vpop.f32.mrf.mxu2 }
 0x23a   : > { %v2124_v53 = vpop.f32.mrf.mxu3  ;;  %v2082_v59 = vadd.f32 %v2081_v56, %v2039_v54  ;;  %v2210_v6 = vsel %vm2184_vm10, %v2166_v58, %v2197_v39 }
 0x23b   : > { %v2041_v0 = vpop.f32.mrf.mxu1 }
 0x23c   : > { %v2125_v7 = vadd.f32 %v2124_v53, %v2082_v59  ;;  %v2042_v2 = vadd.f32 %v2041_v0, %v4079_v42  ;;  %v2267_v42 = vld [vmem:[%s4086_s11] sm:$0xf] (%p3269_p6)  ;;  %v2285_v27 = vld [vmem:[%s4086_s11 + $0x24] sm:$0xf] (%p3269_p6) }
 0x23d   : > { %2268 = vst [vmem:[%s2250_s19] sm:$0xf] (%p3269_p6), %v2267_v42  ;;  %v2283_v19 = vld [vmem:[%s4086_s11 + $0x20] sm:$0xf] (%p3269_p6) }
 0x23e   : > { %v2168_v62 = vadd.f32 %v2167_v51, %v2125_v7  ;;  %2284 = vst [vmem:[%s2250_s19 + $0x40] sm:$0xf] (%p3269_p6), %v2283_v19 }
 0x23f   : > { %v2170_v8 = vpop.f32.mrf.mxu0  ;;  %2286 = vst [vmem:[%s2250_s19 + $0x48] sm:$0xf] (%p3269_p6), %v2285_v27 }
 0x240   : > { %vm2185_vm11 = vcmp.ge.f32.partialorder %v2168_v62, 0.0  ;;  %v2198_v1 = vmul.f32 0.2, %v2168_v62 }
 0x241   : > { %v2084_v23 = vpop.f32.mrf.mxu2 }
 0x242   : > { %v2127_v63 = vpop.f32.mrf.mxu3  ;;  %v2211_v5 = vsel %vm2185_vm11, %v2168_v62, %v2198_v1  ;;  %v2085_v46 = vadd.f32 %v2084_v23, %v2042_v2 }
 0x243   : > { %v3099_v32 = vpack.c.bf16 %v2211_v5, %v2210_v6  ;;  %v2043_v9 = vpop.f32.mrf.mxu1 }
 0x244   : > { %v2128_v4 = vadd.f32 %v2127_v63, %v2085_v46 }
 0x245   : > { %3105 = vst [vmem:[%s4086_s11 + $0x28] sm:$0xff] %v3099_v32  }
 0x246   : > { %v2171_v11 = vadd.f32 %v2170_v8, %v2128_v4 }
 0x247   : > { %v2172_v10 = vpop.f32.mrf.mxu0 }
 0x248   : > { %vm2186_vm12 = vcmp.ge.f32.partialorder %v2171_v11, 0.0  ;;  %v2199_v14 = vmul.f32 0.2, %v2171_v11 }
 0x249   : > { %v2086_v15 = vpop.f32.mrf.mxu2  ;;  %2245 = sbr.rel (!%p3269_p6) target bundleno = 598 (0x256), region = 77 }
 0x24a   : > { %v2129_v12 = vpop.f32.mrf.mxu3  ;;  %v2212_v61 = vsel %vm2186_vm12, %v2171_v11, %v2199_v14 }
 0x24b   : > { %v2225_v16 = vpack.c.bf16 %v2212_v61, %v2212_v61 }
 0x24c   : > { %v2287_v26 = vld [vmem:[%s4086_s11 + $0x28] sm:$0xf] (%p3269_p6)  ;;  %v2289_v31 = vld [vmem:[%s4086_s11 + $0x2c] sm:$0xf] (%p3269_p6) }
 0x24d   : > { %2238 = vst [vmem:[%s4086_s11 + $0x30] sm:$0xf] %v2225_v16 }
 0x24e   : > { %2288 = vst [vmem:[%s2250_s19 + $0x50] sm:$0xf] %v2287_v26 }
 0x24f   : > { %2290 = vst [vmem:[%s2250_s19 + $0x58] sm:$0xf] %v2289_v31 }
 0x254   : > { %v2291_v60 = vld [vmem:[%s4086_s11 + $0x30] sm:$0xf] }
 0x255   : > { %2292 = vst [vmem:[%s2250_s19 + $0x60] sm:$0xf] %v2291_v60 }
 0x256 PF: > { %s13_s16 = sadd.s32 1, %s3212_s16   ;;  %s4144_s12 = smov %s3200_s13 }
 0x257   : > { %p10_p12 = scmp.ge.s32.totalorder %s13_s16, 4   ;;  %s4145_s13 = smov %s3274_s22 }
 0x258   : > { %s4146_s14 = smov %s3208_s15  ;;  %s4147_s15 = smov %s4149_s17 }
 0x259   :  { %12 = sbr.rel (!%p10_p12) target bundleno = 3 (0x3), region = 155 }

</bundles_post_ra>
